<compile_context>
chip_gen: v7x
topology: tpu7x:2x2x1
jax: 0.10.0
libtpu: 0.0.40
codegen_flags: <defaults>
</compile_context>

<pallas_src>
import functools
import math

import jax
import jax.numpy as jnp
from jax.experimental import pallas as pl
from jax.experimental.pallas import tpu as pltpu

LN_EPS = 1e-12
BN_EPS = 1e-5
# <= ~48 MiB leaves headroom on v7x (64 MiB physical VMEM) while still letting
# v5e/v6e (128 MiB) pipeline the larger tiles.
_VMEM_LIMIT = 48 * 1024 * 1024

# Tile caps (multiples of 256 so tiled K/N feed the 256-deep v6e/v7x MXU).
_TM_CAP = 512    # row tile for plain matmul / matmul+LN
_TM_FFN_CAP = 256
_TN_CAP = 512
_TK_CAP = 1024
_TJ_CAP = 256    # FFN intermediate tile (bounds the live f32 GELU block)


# ------------------------------ tiling helpers ------------------------------

def _round_up(x, m):
    return -(-x // m) * m


def _tile_m(m, cap=_TM_CAP):
    """Row (sublane) tiling: full block if it fits, else a 16-aligned tile
    (bf16 sublane packing). Pick the tile first, then pad M up to a multiple of
    it; prefer a large divisor of the 16-rounded M to avoid extra padding."""
    if m <= cap:
        return m, m
    padded = _round_up(m, 16)
    t = cap
    while t >= cap // 2 and padded % t:
        t -= 16
    if t >= cap // 2:
        return t, padded
    return cap, _round_up(padded, cap)


def _tile_lane(dim, cap):
    """Lane-dim tiling (128-aligned): full 128-padded block if it fits, else a
    large 128-aligned tile dividing the padded dim (fallback: cap-aligned)."""
    padded = _round_up(dim, 128)
    if padded <= cap:
        return padded, padded
    t = cap
    while t >= cap // 2 and padded % t:
        t -= 128
    if t >= cap // 2:
        return t, padded
    return cap, _round_up(padded, cap)


def _pad_k(k):
    """Contraction dim: keep the full K as a single block when it fits (no acc
    init/finalize steps); otherwise 128-pad and tile."""
    return k if k <= _TK_CAP else _tile_lane(k, _TK_CAP)[1]


def _pick_tile_for_padded(dp, cap):
    """Tile for an already-padded dim (matches the pack-time padding rule)."""
    return dp if dp <= cap else _tile_lane(dp, cap)[0]


def _pad2(a, rows, cols):
    r, c = a.shape
    if r == rows and c == cols:
        return a
    return jnp.pad(a, ((0, rows - r), (0, cols - c)))


def _gelu(y):
    # TODO(synk): HF BertConfig default is exact (erf) GELU; tanh approximation
    # used here for guaranteed Mosaic lowering.
    return jax.nn.gelu(y, approximate=True)


# ------------------------- tiled matmul (+bias+act) -------------------------

def _mm_kernel(x_ref, w_ref, b_ref, o_ref, acc_ref, *, act):
    @pl.when(pl.program_id(2) == 0)
    def _init():
        acc_ref[...] = jnp.zeros_like(acc_ref)

    acc_ref[...] += jnp.dot(x_ref[...], w_ref[...],
                            preferred_element_type=jnp.float32)

    @pl.when(pl.program_id(2) == pl.num_programs(2) - 1)
    def _finalize():
        y = acc_ref[...] + b_ref[...].astype(jnp.float32)
        if act == "relu":
            y = jnp.maximum(y, 0.0)
        elif act == "gelu":
            y = _gelu(y)
        o_ref[...] = y.astype(o_ref.dtype)


def pallas_matmul(x, w_p, b_p, n_out=None, act="none", out_dtype=jnp.bfloat16):
    """y = act(x @ W + b) with pre-packed (Kp, Np) bf16 W and (1, Np) f32 b."""
    M, _ = x.shape
    Kp, Np = w_p.shape
    tm, Mp = _tile_m(M)
    tk = _pick_tile_for_padded(Kp, _TK_CAP)
    tn = _pick_tile_for_padded(Np, _TN_CAP)
    xb = _pad2(x.astype(jnp.bfloat16), Mp, Kp)
    out = pl.pallas_call(
        functools.partial(_mm_kernel, act=act),
        out_shape=jax.ShapeDtypeStruct((Mp, Np), out_dtype),
        grid=(Mp // tm, Np // tn, Kp // tk),
        in_specs=[
            pl.BlockSpec((tm, tk), lambda i, j, k: (i, k)),
            pl.BlockSpec((tk, tn), lambda i, j, k: (k, j)),
            pl.BlockSpec((1, tn), lambda i, j, k: (0, j)),
        ],
        out_specs=pl.BlockSpec((tm, tn), lambda i, j, k: (i, j)),
        scratch_shapes=[pltpu.VMEM((tm, tn), jnp.float32)],
        compiler_params=pltpu.CompilerParams(
            dimension_semantics=("parallel", "parallel", "arbitrary"),
            vmem_limit_bytes=_VMEM_LIMIT),
    )(xb, w_p, b_p)
    if n_out is None:
        n_out = Np
    return out[:M, :n_out]


# ---------------- matmul + bias + residual + LayerNorm (fused) ---------------

def _mm_res_ln_kernel(x_ref, w_ref, b_ref, res_ref, g_ref, beta_ref,
                      o_ref, acc_ref, *, eps):
    @pl.when(pl.program_id(1) == 0)
    def _init():
        acc_ref[...] = jnp.zeros_like(acc_ref)

    acc_ref[...] += jnp.dot(x_ref[...], w_ref[...],
                            preferred_element_type=jnp.float32)

    @pl.when(pl.program_id(1) == pl.num_programs(1) - 1)
    def _finalize():
        y = (acc_ref[...] + b_ref[...].astype(jnp.float32)
             + res_ref[...].astype(jnp.float32))
        mu = jnp.mean(y, axis=-1, keepdims=True)
        var = jnp.mean(jnp.square(y - mu), axis=-1, keepdims=True)
        yn = (y - mu) * jax.lax.rsqrt(var + eps)
        o_ref[...] = (yn * g_ref[...].astype(jnp.float32)
                      + beta_ref[...].astype(jnp.float32)).astype(o_ref.dtype)


def pallas_matmul_res_ln(x, w_p, b_p, res, g_p, beta_p, eps):
    """LayerNorm(x @ W + b + res); N (=H) kept as one full lane block."""
    M, _ = x.shape
    Kp, N = w_p.shape
    tm, Mp = _tile_m(M)
    tk = _pick_tile_for_padded(Kp, _TK_CAP)
    xb = _pad2(x.astype(jnp.bfloat16), Mp, Kp)
    rb = _pad2(res.astype(jnp.bfloat16), Mp, N)
    out = pl.pallas_call(
        functools.partial(_mm_res_ln_kernel, eps=eps),
        out_shape=jax.ShapeDtypeStruct((Mp, N), jnp.bfloat16),
        grid=(Mp // tm, Kp // tk),
        in_specs=[
            pl.BlockSpec((tm, tk), lambda i, k: (i, k)),
            pl.BlockSpec((tk, N), lambda i, k: (k, 0)),
            pl.BlockSpec((1, N), lambda i, k: (0, 0)),
            pl.BlockSpec((tm, N), lambda i, k: (i, 0)),
            pl.BlockSpec((1, N), lambda i, k: (0, 0)),
            pl.BlockSpec((1, N), lambda i, k: (0, 0)),
        ],
        out_specs=pl.BlockSpec((tm, N), lambda i, k: (i, 0)),
        scratch_shapes=[pltpu.VMEM((tm, N), jnp.float32)],
        compiler_params=pltpu.CompilerParams(
            dimension_semantics=("parallel", "arbitrary"),
            vmem_limit_bytes=_VMEM_LIMIT),
    )(xb, w_p, b_p, rb, g_p, beta_p)
    return out[:M]


# ---------------- fused FFN: GELU(x Wi + bi) Wo + bo + res -> LN -------------

def _ffn_kernel(x_ref, wi_ref, bi_ref, wo_ref, bo_ref, res_ref, g_ref, beta_ref,
                o_ref, acc_ref, *, eps):
    j = pl.program_id(1)

    @pl.when(j == 0)
    def _init():
        acc_ref[...] = jnp.zeros_like(acc_ref)

    h = jnp.dot(x_ref[...], wi_ref[...], preferred_element_type=jnp.float32)
    h = _gelu(h + bi_ref[...].astype(jnp.float32))
    # intermediate stays in VMEM/vregs; contract immediately with the Wo slice
    acc_ref[...] += jnp.dot(h.astype(x_ref.dtype), wo_ref[...],
                            preferred_element_type=jnp.float32)

    @pl.when(j == pl.num_programs(1) - 1)
    def _finalize():
        y = (acc_ref[...] + bo_ref[...].astype(jnp.float32)
             + res_ref[...].astype(jnp.float32))
        mu = jnp.mean(y, axis=-1, keepdims=True)
        var = jnp.mean(jnp.square(y - mu), axis=-1, keepdims=True)
        yn = (y - mu) * jax.lax.rsqrt(var + eps)
        o_ref[...] = (yn * g_ref[...].astype(jnp.float32)
                      + beta_ref[...].astype(jnp.float32)).astype(o_ref.dtype)


def pallas_ffn_res_ln(x, wi_p, bi_p, wo_p, bo_p, res, g_p, beta_p, eps):
    M, H = x.shape
    Ip = wi_p.shape[1]
    tm, Mp = _tile_m(M, cap=_TM_FFN_CAP)
    tj = _pick_tile_for_padded(Ip, _TJ_CAP)
    xb = _pad2(x.astype(jnp.bfloat16), Mp, H)
    rb = _pad2(res.astype(jnp.bfloat16), Mp, H)
    out = pl.pallas_call(
        functools.partial(_ffn_kernel, eps=eps),
        out_shape=jax.ShapeDtypeStruct((Mp, H), jnp.bfloat16),
        grid=(Mp // tm, Ip // tj),
        in_specs=[
            pl.BlockSpec((tm, H), lambda i, j: (i, 0)),
            pl.BlockSpec((H, tj), lambda i, j: (0, j)),
            pl.BlockSpec((1, tj), lambda i, j: (0, j)),
            pl.BlockSpec((tj, H), lambda i, j: (j, 0)),
            pl.BlockSpec((1, H), lambda i, j: (0, 0)),
            pl.BlockSpec((tm, H), lambda i, j: (i, 0)),
            pl.BlockSpec((1, H), lambda i, j: (0, 0)),
            pl.BlockSpec((1, H), lambda i, j: (0, 0)),
        ],
        out_specs=pl.BlockSpec((tm, H), lambda i, j: (i, 0)),
        scratch_shapes=[pltpu.VMEM((tm, H), jnp.float32)],
        compiler_params=pltpu.CompilerParams(
            dimension_semantics=("parallel", "arbitrary"),
            vmem_limit_bytes=_VMEM_LIMIT),
    )(xb, wi_p, bi_p, wo_p, bo_p, rb, g_p, beta_p)
    return out[:M]


# ----------------------- residual add + LayerNorm (tiled) --------------------

def _add_ln_kernel(x_ref, r_ref, g_ref, b_ref, o_ref, *, eps):
    y = x_ref[...].astype(jnp.float32) + r_ref[...].astype(jnp.float32)
    mu = jnp.mean(y, axis=-1, keepdims=True)
    var = jnp.mean(jnp.square(y - mu), axis=-1, keepdims=True)
    yn = (y - mu) * jax.lax.rsqrt(var + eps)
    o_ref[...] = (yn * g_ref[...].astype(jnp.float32)
                  + b_ref[...].astype(jnp.float32)).astype(o_ref.dtype)


def pallas_add_ln(x, res, g_p, b_p, eps):
    M, H = x.shape
    tm, Mp = _tile_m(M, cap=512)
    xb = _pad2(x.astype(jnp.bfloat16), Mp, H)
    rb = _pad2(res.astype(jnp.bfloat16), Mp, H)
    out = pl.pallas_call(
        functools.partial(_add_ln_kernel, eps=eps),
        out_shape=jax.ShapeDtypeStruct((Mp, H), jnp.bfloat16),
        grid=(Mp // tm,),
        in_specs=[
            pl.BlockSpec((tm, H), lambda i: (i, 0)),
            pl.BlockSpec((tm, H), lambda i: (i, 0)),
            pl.BlockSpec((1, H), lambda i: (0, 0)),
            pl.BlockSpec((1, H), lambda i: (0, 0)),
        ],
        out_specs=pl.BlockSpec((tm, H), lambda i: (i, 0)),
        compiler_params=pltpu.CompilerParams(
            dimension_semantics=("parallel",),
            vmem_limit_bytes=_VMEM_LIMIT),
    )(xb, rb, g_p, b_p)
    return out[:M]


# --------------------------- multi-head attention ----------------------------

def _attn_kernel(qkv_ref, o_ref, *, n_heads):
    # qkv_ref: (1, S, >=3H) fused projection (1/sqrt(dh) folded into Q weights).
    # o_ref:   (1, S, H) lane-dense output block.
    H = o_ref.shape[2]
    dh = H // n_heads
    qkv = qkv_ref[0]                                   # (S, >=3H) bf16
    for h in range(n_heads):                           # static unroll over heads
        lo = h * dh
        qh = qkv[:, lo:lo + dh]
        kh = qkv[:, H + lo:H + lo + dh]
        vh = qkv[:, 2 * H + lo:2 * H + lo + dh]
        s = jax.lax.dot_general(qh, kh, (((1,), (1,)), ((), ())),
                                preferred_element_type=jnp.float32)   # (S, S)
        m = jnp.max(s, axis=-1, keepdims=True)
        p = jnp.exp(s - m)
        p = p * pl.reciprocal(jnp.sum(p, axis=-1, keepdims=True), approx=True)
        ctx = jnp.dot(p.astype(vh.dtype), vh, preferred_element_type=jnp.float32)
        # per-head result stored directly; nothing stays live across heads
        o_ref[0, :, lo:lo + dh] = ctx.astype(o_ref.dtype)
    # TODO(synk): for long S use a flash-style online softmax over K/V tiles and
    # add a head / q-tile parallel grid axis (v7x has 2 TensorCores).


def pallas_attention(qkv, n_heads, hidden):
    """qkv: (B, S, >=3H) fused projection -> (B, S, H) context."""
    B, S, Cq = qkv.shape
    return pl.pallas_call(
        functools.partial(_attn_kernel, n_heads=n_heads),
        out_shape=jax.ShapeDtypeStruct((B, S, hidden), jnp.bfloat16),
        grid=(B,),
        in_specs=[pl.BlockSpec((1, S, Cq), lambda b: (b, 0, 0))],
        out_specs=pl.BlockSpec((1, S, hidden), lambda b: (b, 0, 0)),
        compiler_params=pltpu.CompilerParams(
            dimension_semantics=("parallel",),
            vmem_limit_bytes=_VMEM_LIMIT),
    )(qkv.astype(jnp.bfloat16))


# -------------------------- Conv1d (+ReLU), in-kernel ------------------------

def _conv_relu_kernel(x_ref, w_ref, b_ref, o_ref, *, ktaps):
    # x_ref: (1, L+K-1, Cin) padded sequence; w_ref: (K*Cin, Cout)
    L = o_ref.shape[1]
    x = x_ref[0]                                       # (L+K-1, Cin)
    # one deeper MXU contraction instead of K shallow rank-Cin matmuls;
    # the (L, K*Cin) tap matrix is built in VMEM only (no im2col in HBM).
    xk = jnp.concatenate([x[k:k + L, :] for k in range(ktaps)], axis=-1)
    y = jnp.dot(xk, w_ref[...], preferred_element_type=jnp.float32)
    y = jnp.maximum(y + b_ref[...].astype(jnp.float32), 0.0)
    o_ref[0] = y.astype(o_ref.dtype)


def pallas_conv1d_relu(x_blc, w_p, b_p):
    """'same'-padded Conv1d + ReLU.  x:(B,L,Cin)  w_p:(K*Cin,Cout)  -> (B,L,Cout)."""
    B, L, Cin = x_blc.shape
    KC, Cout = w_p.shape
    ktaps = KC // Cin
    pad = (ktaps - 1) // 2
    xp = jnp.pad(x_blc.astype(jnp.bfloat16), ((0, 0), (pad, pad), (0, 0)))
    Lp = L + 2 * pad
    return pl.pallas_call(
        functools.partial(_conv_relu_kernel, ktaps=ktaps),
        out_shape=jax.ShapeDtypeStruct((B, L, Cout), jnp.bfloat16),
        grid=(B,),
        in_specs=[
            pl.BlockSpec((1, Lp, Cin), lambda bi: (bi, 0, 0)),
            pl.BlockSpec((KC, Cout), lambda bi: (0, 0)),
            pl.BlockSpec((1, Cout), lambda bi: (0, 0)),
        ],
        out_specs=pl.BlockSpec((1, L, Cout), lambda bi: (bi, 0, 0)),
        compiler_params=pltpu.CompilerParams(
            dimension_semantics=("parallel",),
            vmem_limit_bytes=_VMEM_LIMIT),
    )(xp, w_p, b_p)


# ------------------------------- model pieces --------------------------------

def bert_layer(h_flat, p, *, n_heads, B, S):
    H = h_flat.shape[-1]
    # fused Q/K/V projection: single (H, 3H) matmul (scale pre-folded into Q)
    qkv = pallas_matmul(h_flat, p["wqkv"], p["bqkv"])                  # (B*S, >=3H)
    ctx = pallas_attention(qkv.reshape(B, S, -1), n_heads, hidden=H)   # (B, S, H)
    # output projection + bias + residual + LayerNorm fused
    x1 = pallas_matmul_res_ln(ctx.reshape(B * S, H), p["wo"], p["bo"],
                              h_flat, p["ln1_g"], p["ln1_b"], LN_EPS)
    # fully fused FFN (+ residual + LayerNorm); 4H intermediate never hits HBM
    x2 = pallas_ffn_res_ln(x1, p["wi"], p["bi"], p["wo2"], p["bo2"],
                           x1, p["ln2_g"], p["ln2_b"], LN_EPS)
    return x2


def forward(packed, x, *, n_heads, num_labels):
    """x: (B, L, input_size) float32 -> logits (B, num_labels) float32."""
    B, L, _ = x.shape
    H = packed["cls"].shape[0]
    S = L + 1
    assert S <= packed["pos_emb"].shape[0], "sequence exceeds max_position_embeddings"

    # BatchNorm1d over the feature channel (eval mode, running stats)
    bn = packed["bn"]
    x = (x - bn["mean"]) * jax.lax.rsqrt(bn["var"] + BN_EPS) * bn["gamma"] + bn["beta"]
    # (training-time gaussian noise + dropout are identity in eval mode)
    x = x.astype(jnp.bfloat16)

    x = pallas_conv1d_relu(x, packed["conv1_w"], packed["conv1_b"])
    x = pallas_conv1d_relu(x, packed["conv2_w"], packed["conv2_b"])
    x = pallas_conv1d_relu(x, packed["conv3_w"], packed["conv3_b"])

    cls_tok = jnp.broadcast_to(packed["cls"][None, None, :], (B, 1, H))
    x = jnp.concatenate([x, cls_tok], axis=1)                          # (B, S, H)

    # BERT embeddings: inputs_embeds + position + token_type(0), add fused into LN
    pt = packed["pos_emb"][:S] + packed["type_emb"][0][None, :]        # (S, H)
    res = jnp.broadcast_to(pt[None].astype(jnp.bfloat16), (B, S, H)).reshape(B * S, H)
    h = pallas_add_ln(x.reshape(B * S, H), res,
                      packed["emb_ln_g"], packed["emb_ln_b"], LN_EPS)

    for lp in packed["layers"]:
        h = bert_layer(h, lp, n_heads=n_heads, B=B, S=S)

    cls_out = h.reshape(B, S, H)[:, -1, :]                             # (B, H)
    logits = pallas_matmul(cls_out, packed["cls_w"], packed["cls_b"],
                           n_out=num_labels, out_dtype=jnp.float32)
    return logits


# ---------------------- parameter init + one-time packing --------------------

def init_params(key, input_size, hidden, num_labels, n_heads, n_layers, n_inter,
                max_pos=300):
    c1 = int(hidden * 1 / 3)
    c2 = int(hidden * 2 / 3)
    inter = hidden * n_inter
    keys = iter(jax.random.split(key, 256))

    def nrm(shape, scale=0.02):
        return scale * jax.random.normal(next(keys), shape, jnp.float32)

    params = {
        "bn": {"gamma": jnp.ones((input_size,), jnp.float32),
               "beta": jnp.zeros((input_size,), jnp.float32),
               "mean": jnp.zeros((input_size,), jnp.float32),
               "var": jnp.ones((input_size,), jnp.float32)},
        "conv1_w": nrm((c1, input_size, 3), 0.1), "conv1_b": nrm((c1,), 0.1),
        "conv2_w": nrm((c2, c1, 5), 0.1),         "conv2_b": nrm((c2,), 0.1),
        "conv3_w": nrm((hidden, c2, 7), 0.1),     "conv3_b": nrm((hidden,), 0.1),
        "cls": nrm((hidden,), 1.0),
        "pos_emb": nrm((max_pos, hidden)),
        "type_emb": nrm((2, hidden)),
        "emb_ln_g": jnp.ones((hidden,), jnp.float32),
        "emb_ln_b": jnp.zeros((hidden,), jnp.float32),
        "cls_w": nrm((hidden, num_labels), 0.1),
        "cls_b": jnp.zeros((num_labels,), jnp.float32),
        "layers": [],
    }
    for _ in range(n_layers):
        params["layers"].append({
            "wqkv": nrm((hidden, 3 * hidden)),
            "bqkv": jnp.zeros((3 * hidden,), jnp.float32),
            "wo": nrm((hidden, hidden)),
            "bo": jnp.zeros((hidden,), jnp.float32),
            "ln1_g": jnp.ones((hidden,), jnp.float32),
            "ln1_b": jnp.zeros((hidden,), jnp.float32),
            "wi": nrm((hidden, inter)),
            "bi": jnp.zeros((inter,), jnp.float32),
            "wo2": nrm((inter, hidden)),
            "bo2": jnp.zeros((hidden,), jnp.float32),
            "ln2_g": jnp.ones((hidden,), jnp.float32),
            "ln2_b": jnp.zeros((hidden,), jnp.float32),
        })
    return params


def pack_params(params, n_heads):
    """One-time host-side packing: pad + cast weights to kernel-ready layouts,
    fold the 1/sqrt(dh) attention scale into the Q projection."""
    H = int(params["cls"].shape[0])
    dh = H // n_heads
    scale = 1.0 / math.sqrt(dh)
    num_labels = int(params["cls_b"].shape[0])
    inter = int(params["layers"][0]["bi"].shape[0]) if params["layers"] else H
    _, np_qkv = _tile_lane(3 * H, _TN_CAP)
    _, np_cls = _tile_lane(num_labels, _TN_CAP)
    _, ip = _tile_lane(inter, _TJ_CAP)
    kp_h = _pad_k(H)

    def vec(v):
        return jnp.asarray(v, jnp.float32).reshape(1, -1)

    def pack_w(w, b, kp, npad):
        K, N = jnp.asarray(w).shape
        wp = _pad2(jnp.asarray(w, jnp.bfloat16), kp, npad)
        bp = jnp.pad(jnp.asarray(b, jnp.float32), (0, npad - N)).reshape(1, npad)
        return wp, bp

    def pack_conv(w, b):
        cout, cin, k = w.shape                               # PyTorch layout
        wm = jnp.transpose(jnp.asarray(w, jnp.float32), (2, 1, 0)).reshape(k * cin, cout)
        return wm.astype(jnp.bfloat16), vec(b)

    cw1, cb1 = pack_conv(params["conv1_w"], params["conv1_b"])
    cw2, cb2 = pack_conv(params["conv2_w"], params["conv2_b"])
    cw3, cb3 = pack_conv(params["conv3_w"], params["conv3_b"])
    clsw, clsb = pack_w(params["cls_w"], params["cls_b"], kp_h, np_cls)

    packed = {
        "bn": {k: jnp.asarray(v, jnp.float32) for k, v in params["bn"].items()},
        "conv1_w": cw1, "conv1_b": cb1,
        "conv2_w": cw2, "conv2_b": cb2,
        "conv3_w": cw3, "conv3_b": cb3,
        "cls": jnp.asarray(params["cls"], jnp.bfloat16),
        "pos_emb": jnp.asarray(params["pos_emb"], jnp.float32),
        "type_emb": jnp.asarray(params["type_emb"], jnp.float32),
        "emb_ln_g": vec(params["emb_ln_g"]), "emb_ln_b": vec(params["emb_ln_b"]),
        "cls_w": clsw, "cls_b": clsb,
        "layers": [],
    }
    for lp in params["layers"]:
        wqkv = jnp.asarray(lp["wqkv"], jnp.float32).at[:, :H].multiply(scale)
        bqkv = jnp.asarray(lp["bqkv"], jnp.float32).at[:H].multiply(scale)
        wqkv_p, bqkv_p = pack_w(wqkv, bqkv, kp_h, np_qkv)
        wo_p, bo_p = pack_w(lp["wo"], lp["bo"], kp_h, H)
        wi_p, bi_p = pack_w(lp["wi"], lp["bi"], H, ip)
        wo2_p, bo2_p = pack_w(lp["wo2"], lp["bo2"], ip, H)
        packed["layers"].append({
            "wqkv": wqkv_p, "bqkv": bqkv_p,
            "wo": wo_p, "bo": bo_p,
            "ln1_g": vec(lp["ln1_g"]), "ln1_b": vec(lp["ln1_b"]),
            "wi": wi_p, "bi": bi_p,
            "wo2": wo2_p, "bo2": bo2_p,
            "ln2_g": vec(lp["ln2_g"]), "ln2_b": vec(lp["ln2_b"]),
        })
    return packed


# ----------------------------------- main ------------------------------------

if __name__ == "__main__":
    B, L = 2, 8
    input_size = 1
    hidden = 64
    num_labels = 2
    n_heads = 4
    n_layers = 2
    n_inter = 2

    key = jax.random.PRNGKey(0)
    pkey, xkey = jax.random.split(key)
    params = init_params(pkey, input_size, hidden, num_labels,
                         n_heads, n_layers, n_inter)
    packed = pack_params(params, n_heads)   # one-time pack (outside jit)
    x = jax.random.normal(xkey, (B, L, input_size), dtype=jnp.float32)

    fwd = jax.jit(functools.partial(forward, n_heads=n_heads,
                                    num_labels=num_labels))
    logits = fwd(packed, x)
    jax.block_until_ready(logits)
    assert logits.shape == (B, num_labels)
    assert bool(jnp.all(jnp.isfinite(logits)))
    print("KERNEL_OK")
</pallas_src>

<mosaic_0001>
module attributes {stable_mosaic.version = 11 : i64} {
  func.func @_conv_relu_kernel(%arg0: i32, %arg1: memref<1x12x21xbf16, #tpu.memory_space<vmem>>, %arg2: memref<105x42xbf16, #tpu.memory_space<vmem>>, %arg3: memref<1x42xf32, #tpu.memory_space<vmem>>, %arg4: memref<1x8x42xbf16, #tpu.memory_space<vmem>>) attributes {dimension_semantics = [#tpu.dimension_semantics<parallel>], iteration_bounds = array<i64: 2>, scalar_prefetch = 0 : i64, scratch_operands = 0 : i64, tpu.core_type = #tpu.core_type<tc>, window_params = [{transform_indices = @transform_0, window_bounds = array<i64: 1, 12, 21>}, {pipeline_mode = #tpu.pipeline_mode<synchronous>, transform_indices = @transform_1, window_bounds = array<i64: 105, 42>}, {pipeline_mode = #tpu.pipeline_mode<synchronous>, transform_indices = @transform_2, window_bounds = array<i64: 1, 42>}, {transform_indices = @transform_3, window_bounds = array<i64: 1, 8, 42>}]} {
    %c0 = arith.constant 0 : index
    %c0_0 = arith.constant 0 : index
    %c0_1 = arith.constant 0 : index
    %0 = vector.load %arg1[%c0, %c0_0, %c0_1] : memref<1x12x21xbf16, #tpu.memory_space<vmem>>, vector<1x12x21xbf16>
    %1 = vector.shape_cast %0 : vector<1x12x21xbf16> to vector<12x21xbf16>
    %2 = vector.extract_strided_slice %1 {offsets = [0, 0], sizes = [8, 21], strides = [1, 1]} : vector<12x21xbf16> to vector<8x21xbf16>
    %3 = vector.extract_strided_slice %1 {offsets = [1, 0], sizes = [8, 21], strides = [1, 1]} : vector<12x21xbf16> to vector<8x21xbf16>
    %4 = vector.extract_strided_slice %1 {offsets = [2, 0], sizes = [8, 21], strides = [1, 1]} : vector<12x21xbf16> to vector<8x21xbf16>
    %5 = vector.extract_strided_slice %1 {offsets = [3, 0], sizes = [8, 21], strides = [1, 1]} : vector<12x21xbf16> to vector<8x21xbf16>
    %6 = vector.extract_strided_slice %1 {offsets = [4, 0], sizes = [8, 21], strides = [1, 1]} : vector<12x21xbf16> to vector<8x21xbf16>
    %7 = tpu.concatenate %2, %3, %4, %5, %6 in 1 : vector<8x21xbf16>, vector<8x21xbf16>, vector<8x21xbf16>, vector<8x21xbf16>, vector<8x21xbf16> -> vector<8x105xbf16>
    %c0_2 = arith.constant 0 : index
    %c0_3 = arith.constant 0 : index
    %8 = vector.load %arg2[%c0_2, %c0_3] : memref<105x42xbf16, #tpu.memory_space<vmem>>, vector<105x42xbf16>
    %cst = arith.constant dense<0.000000e+00> : vector<8x42xf32>
    %9 = tpu.matmul %7, %8, %cst {dimension_numbers = #tpu.dot_dimension_numbers<[1], [0], [0], [1], [0, 0, 1, 1], [], []>} : vector<8x105xbf16>, vector<105x42xbf16>, vector<8x42xf32> -> vector<8x42xf32>
    %c0_4 = arith.constant 0 : index
    %c0_5 = arith.constant 0 : index
    %10 = vector.load %arg3[%c0_4, %c0_5] : memref<1x42xf32, #tpu.memory_space<vmem>>, vector<1x42xf32>
    %11 = vector.broadcast %10 : vector<1x42xf32> to vector<8x42xf32>
    %12 = arith.addf %9, %11 : vector<8x42xf32>
    %cst_6 = arith.constant 0.000000e+00 : f32
    %13 = vector.broadcast %cst_6 : f32 to vector<8x42xf32>
    %14 = arith.maximumf %12, %13 : vector<8x42xf32>
    %15 = arith.truncf %14 : vector<8x42xf32> to vector<8x42xbf16>
    %c0_7 = arith.constant 0 : index
    %c0_8 = arith.constant 0 : index
    %c0_9 = arith.constant 0 : index
    %16 = vector.load %arg4[%c0_7, %c0_8, %c0_9] : memref<1x8x42xbf16, #tpu.memory_space<vmem>>, vector<1x8x42xbf16>
    %17 = vector.shape_cast %16 : vector<1x8x42xbf16> to vector<8x42xbf16>
    %18 = vector.shape_cast %15 : vector<8x42xbf16> to vector<1x8x42xbf16>
    tpu.vector_store %arg4[%c0_7, %c0_8, %c0_9], %18 {strides = array<i32>} : memref<1x8x42xbf16, #tpu.memory_space<vmem>>, vector<1x8x42xbf16>,
    return
  }
  func.func @transform_0(%arg0: i32) -> (i32, i32, i32) {
    %c0_i32 = arith.constant 0 : i32
    %c0_i32_0 = arith.constant 0 : i32
    %c0_i32_1 = arith.constant 0 : i32
    return %arg0, %c0_i32, %c0_i32_0 : i32, i32, i32
  }
  func.func @transform_1(%arg0: i32) -> (i32, i32) {
    %c0_i32 = arith.constant 0 : i32
    %c0_i32_0 = arith.constant 0 : i32
    %c0_i32_1 = arith.constant 0 : i32
    return %c0_i32, %c0_i32_0 : i32, i32
  }
  func.func @transform_2(%arg0: i32) -> (i32, i32) {
    %c0_i32 = arith.constant 0 : i32
    %c0_i32_0 = arith.constant 0 : i32
    %c0_i32_1 = arith.constant 0 : i32
    return %c0_i32, %c0_i32_0 : i32, i32
  }
  func.func @transform_3(%arg0: i32) -> (i32, i32, i32) {
    %c0_i32 = arith.constant 0 : i32
    %c0_i32_0 = arith.constant 0 : i32
    %c0_i32_1 = arith.constant 0 : i32
    return %arg0, %c0_i32, %c0_i32_0 : i32, i32, i32
  }
}

module attributes {stable_mosaic.version = 11 : i64} {
  func.func @_conv_relu_kernel(%arg0: i32, %arg1: memref<1x10x1xbf16, #tpu.memory_space<vmem>>, %arg2: memref<3x21xbf16, #tpu.memory_space<vmem>>, %arg3: memref<1x21xf32, #tpu.memory_space<vmem>>, %arg4: memref<1x8x21xbf16, #tpu.memory_space<vmem>>) attributes {dimension_semantics = [#tpu.dimension_semantics<parallel>], iteration_bounds = array<i64: 2>, scalar_prefetch = 0 : i64, scratch_operands = 0 : i64, tpu.core_type = #tpu.core_type<tc>, window_params = [{transform_indices = @transform_0, window_bounds = array<i64: 1, 10, 1>}, {pipeline_mode = #tpu.pipeline_mode<synchronous>, transform_indices = @transform_1, window_bounds = array<i64: 3, 21>}, {pipeline_mode = #tpu.pipeline_mode<synchronous>, transform_indices = @transform_2, window_bounds = array<i64: 1, 21>}, {transform_indices = @transform_3, window_bounds = array<i64: 1, 8, 21>}]} {
    %c0 = arith.constant 0 : index
    %c0_0 = arith.constant 0 : index
    %c0_1 = arith.constant 0 : index
    %0 = vector.load %arg1[%c0, %c0_0, %c0_1] : memref<1x10x1xbf16, #tpu.memory_space<vmem>>, vector<1x10x1xbf16>
    %1 = vector.shape_cast %0 : vector<1x10x1xbf16> to vector<10x1xbf16>
    %2 = vector.extract_strided_slice %1 {offsets = [0, 0], sizes = [8, 1], strides = [1, 1]} : vector<10x1xbf16> to vector<8x1xbf16>
    %3 = vector.extract_strided_slice %1 {offsets = [1, 0], sizes = [8, 1], strides = [1, 1]} : vector<10x1xbf16> to vector<8x1xbf16>
    %4 = vector.extract_strided_slice %1 {offsets = [2, 0], sizes = [8, 1], strides = [1, 1]} : vector<10x1xbf16> to vector<8x1xbf16>
    %5 = tpu.concatenate %2, %3, %4 in 1 : vector<8x1xbf16>, vector<8x1xbf16>, vector<8x1xbf16> -> vector<8x3xbf16>
    %c0_2 = arith.constant 0 : index
    %c0_3 = arith.constant 0 : index
    %6 = vector.load %arg2[%c0_2, %c0_3] : memref<3x21xbf16, #tpu.memory_space<vmem>>, vector<3x21xbf16>
    %cst = arith.constant dense<0.000000e+00> : vector<8x21xf32>
    %7 = tpu.matmul %5, %6, %cst {dimension_numbers = #tpu.dot_dimension_numbers<[1], [0], [0], [1], [0, 0, 1, 1], [], []>} : vector<8x3xbf16>, vector<3x21xbf16>, vector<8x21xf32> -> vector<8x21xf32>
    %c0_4 = arith.constant 0 : index
    %c0_5 = arith.constant 0 : index
    %8 = vector.load %arg3[%c0_4, %c0_5] : memref<1x21xf32, #tpu.memory_space<vmem>>, vector<1x21xf32>
    %9 = vector.broadcast %8 : vector<1x21xf32> to vector<8x21xf32>
    %10 = arith.addf %7, %9 : vector<8x21xf32>
    %cst_6 = arith.constant 0.000000e+00 : f32
    %11 = vector.broadcast %cst_6 : f32 to vector<8x21xf32>
    %12 = arith.maximumf %10, %11 : vector<8x21xf32>
    %13 = arith.truncf %12 : vector<8x21xf32> to vector<8x21xbf16>
    %c0_7 = arith.constant 0 : index
    %c0_8 = arith.constant 0 : index
    %c0_9 = arith.constant 0 : index
    %14 = vector.load %arg4[%c0_7, %c0_8, %c0_9] : memref<1x8x21xbf16, #tpu.memory_space<vmem>>, vector<1x8x21xbf16>
    %15 = vector.shape_cast %14 : vector<1x8x21xbf16> to vector<8x21xbf16>
    %16 = vector.shape_cast %13 : vector<8x21xbf16> to vector<1x8x21xbf16>
    tpu.vector_store %arg4[%c0_7, %c0_8, %c0_9], %16 {strides = array<i32>} : memref<1x8x21xbf16, #tpu.memory_space<vmem>>, vector<1x8x21xbf16>,
    return
  }
  func.func @transform_0(%arg0: i32) -> (i32, i32, i32) {
    %c0_i32 = arith.constant 0 : i32
    %c0_i32_0 = arith.constant 0 : i32
    %c0_i32_1 = arith.constant 0 : i32
    return %arg0, %c0_i32, %c0_i32_0 : i32, i32, i32
  }
  func.func @transform_1(%arg0: i32) -> (i32, i32) {
    %c0_i32 = arith.constant 0 : i32
    %c0_i32_0 = arith.constant 0 : i32
    %c0_i32_1 = arith.constant 0 : i32
    return %c0_i32, %c0_i32_0 : i32, i32
  }
  func.func @transform_2(%arg0: i32) -> (i32, i32) {
    %c0_i32 = arith.constant 0 : i32
    %c0_i32_0 = arith.constant 0 : i32
    %c0_i32_1 = arith.constant 0 : i32
    return %c0_i32, %c0_i32_0 : i32, i32
  }
  func.func @transform_3(%arg0: i32) -> (i32, i32, i32) {
    %c0_i32 = arith.constant 0 : i32
    %c0_i32_0 = arith.constant 0 : i32
    %c0_i32_1 = arith.constant 0 : i32
    return %arg0, %c0_i32, %c0_i32_0 : i32, i32, i32
  }
}

module attributes {stable_mosaic.version = 11 : i64} {
  func.func @_conv_relu_kernel(%arg0: i32, %arg1: memref<1x14x42xbf16, #tpu.memory_space<vmem>>, %arg2: memref<294x64xbf16, #tpu.memory_space<vmem>>, %arg3: memref<1x64xf32, #tpu.memory_space<vmem>>, %arg4: memref<1x8x64xbf16, #tpu.memory_space<vmem>>) attributes {dimension_semantics = [#tpu.dimension_semantics<parallel>], iteration_bounds = array<i64: 2>, scalar_prefetch = 0 : i64, scratch_operands = 0 : i64, tpu.core_type = #tpu.core_type<tc>, window_params = [{transform_indices = @transform_0, window_bounds = array<i64: 1, 14, 42>}, {pipeline_mode = #tpu.pipeline_mode<synchronous>, transform_indices = @transform_1, window_bounds = array<i64: 294, 64>}, {pipeline_mode = #tpu.pipeline_mode<synchronous>, transform_indices = @transform_2, window_bounds = array<i64: 1, 64>}, {transform_indices = @transform_3, window_bounds = array<i64: 1, 8, 64>}]} {
    %c0 = arith.constant 0 : index
    %c0_0 = arith.constant 0 : index
    %c0_1 = arith.constant 0 : index
    %0 = vector.load %arg1[%c0, %c0_0, %c0_1] : memref<1x14x42xbf16, #tpu.memory_space<vmem>>, vector<1x14x42xbf16>
    %1 = vector.shape_cast %0 : vector<1x14x42xbf16> to vector<14x42xbf16>
    %2 = vector.extract_strided_slice %1 {offsets = [0, 0], sizes = [8, 42], strides = [1, 1]} : vector<14x42xbf16> to vector<8x42xbf16>
    %3 = vector.extract_strided_slice %1 {offsets = [1, 0], sizes = [8, 42], strides = [1, 1]} : vector<14x42xbf16> to vector<8x42xbf16>
    %4 = vector.extract_strided_slice %1 {offsets = [2, 0], sizes = [8, 42], strides = [1, 1]} : vector<14x42xbf16> to vector<8x42xbf16>
    %5 = vector.extract_strided_slice %1 {offsets = [3, 0], sizes = [8, 42], strides = [1, 1]} : vector<14x42xbf16> to vector<8x42xbf16>
    %6 = vector.extract_strided_slice %1 {offsets = [4, 0], sizes = [8, 42], strides = [1, 1]} : vector<14x42xbf16> to vector<8x42xbf16>
    %7 = vector.extract_strided_slice %1 {offsets = [5, 0], sizes = [8, 42], strides = [1, 1]} : vector<14x42xbf16> to vector<8x42xbf16>
    %8 = vector.extract_strided_slice %1 {offsets = [6, 0], sizes = [8, 42], strides = [1, 1]} : vector<14x42xbf16> to vector<8x42xbf16>
    %9 = tpu.concatenate %2, %3, %4, %5, %6, %7, %8 in 1 : vector<8x42xbf16>, vector<8x42xbf16>, vector<8x42xbf16>, vector<8x42xbf16>, vector<8x42xbf16>, vector<8x42xbf16>, vector<8x42xbf16> -> vector<8x294xbf16>
    %c0_2 = arith.constant 0 : index
    %c0_3 = arith.constant 0 : index
    %10 = vector.load %arg2[%c0_2, %c0_3] : memref<294x64xbf16, #tpu.memory_space<vmem>>, vector<294x64xbf16>
    %cst = arith.constant dense<0.000000e+00> : vector<8x64xf32>
    %11 = tpu.matmul %9, %10, %cst {dimension_numbers = #tpu.dot_dimension_numbers<[1], [0], [0], [1], [0, 0, 1, 1], [], []>} : vector<8x294xbf16>, vector<294x64xbf16>, vector<8x64xf32> -> vector<8x64xf32>
    %c0_4 = arith.constant 0 : index
    %c0_5 = arith.constant 0 : index
    %12 = vector.load %arg3[%c0_4, %c0_5] : memref<1x64xf32, #tpu.memory_space<vmem>>, vector<1x64xf32>
    %13 = vector.broadcast %12 : vector<1x64xf32> to vector<8x64xf32>
    %14 = arith.addf %11, %13 : vector<8x64xf32>
    %cst_6 = arith.constant 0.000000e+00 : f32
    %15 = vector.broadcast %cst_6 : f32 to vector<8x64xf32>
    %16 = arith.maximumf %14, %15 : vector<8x64xf32>
    %17 = arith.truncf %16 : vector<8x64xf32> to vector<8x64xbf16>
    %c0_7 = arith.constant 0 : index
    %c0_8 = arith.constant 0 : index
    %c0_9 = arith.constant 0 : index
    %18 = vector.load %arg4[%c0_7, %c0_8, %c0_9] : memref<1x8x64xbf16, #tpu.memory_space<vmem>>, vector<1x8x64xbf16>
    %19 = vector.shape_cast %18 : vector<1x8x64xbf16> to vector<8x64xbf16>
    %20 = vector.shape_cast %17 : vector<8x64xbf16> to vector<1x8x64xbf16>
    tpu.vector_store %arg4[%c0_7, %c0_8, %c0_9], %20 {strides = array<i32>} : memref<1x8x64xbf16, #tpu.memory_space<vmem>>, vector<1x8x64xbf16>,
    return
  }
  func.func @transform_0(%arg0: i32) -> (i32, i32, i32) {
    %c0_i32 = arith.constant 0 : i32
    %c0_i32_0 = arith.constant 0 : i32
    %c0_i32_1 = arith.constant 0 : i32
    return %arg0, %c0_i32, %c0_i32_0 : i32, i32, i32
  }
  func.func @transform_1(%arg0: i32) -> (i32, i32) {
    %c0_i32 = arith.constant 0 : i32
    %c0_i32_0 = arith.constant 0 : i32
    %c0_i32_1 = arith.constant 0 : i32
    return %c0_i32, %c0_i32_0 : i32, i32
  }
  func.func @transform_2(%arg0: i32) -> (i32, i32) {
    %c0_i32 = arith.constant 0 : i32
    %c0_i32_0 = arith.constant 0 : i32
    %c0_i32_1 = arith.constant 0 : i32
    return %c0_i32, %c0_i32_0 : i32, i32
  }
  func.func @transform_3(%arg0: i32) -> (i32, i32, i32) {
    %c0_i32 = arith.constant 0 : i32
    %c0_i32_0 = arith.constant 0 : i32
    %c0_i32_1 = arith.constant 0 : i32
    return %arg0, %c0_i32, %c0_i32_0 : i32, i32, i32
  }
}

module attributes {stable_mosaic.version = 11 : i64} {
  func.func @_add_ln_kernel(%arg0: i32, %arg1: memref<18x64xbf16, #tpu.memory_space<vmem>>, %arg2: memref<18x64xbf16, #tpu.memory_space<vmem>>, %arg3: memref<1x64xf32, #tpu.memory_space<vmem>>, %arg4: memref<1x64xf32, #tpu.memory_space<vmem>>, %arg5: memref<18x64xbf16, #tpu.memory_space<vmem>>) attributes {dimension_semantics = [#tpu.dimension_semantics<parallel>], iteration_bounds = array<i64: 1>, scalar_prefetch = 0 : i64, scratch_operands = 0 : i64, tpu.core_type = #tpu.core_type<tc>, window_params = [{transform_indices = @transform_0, window_bounds = array<i64: 18, 64>}, {transform_indices = @transform_1, window_bounds = array<i64: 18, 64>}, {pipeline_mode = #tpu.pipeline_mode<synchronous>, transform_indices = @transform_2, window_bounds = array<i64: 1, 64>}, {pipeline_mode = #tpu.pipeline_mode<synchronous>, transform_indices = @transform_3, window_bounds = array<i64: 1, 64>}, {transform_indices = @transform_4, window_bounds = array<i64: 18, 64>}]} {
    %c0 = arith.constant 0 : index
    %c0_0 = arith.constant 0 : index
    %0 = vector.load %arg1[%c0, %c0_0] : memref<18x64xbf16, #tpu.memory_space<vmem>>, vector<18x64xbf16>
    %1 = arith.extf %0 : vector<18x64xbf16> to vector<18x64xf32>
    %c0_1 = arith.constant 0 : index
    %c0_2 = arith.constant 0 : index
    %2 = vector.load %arg2[%c0_1, %c0_2] : memref<18x64xbf16, #tpu.memory_space<vmem>>, vector<18x64xbf16>
    %3 = arith.extf %2 : vector<18x64xbf16> to vector<18x64xf32>
    %4 = arith.addf %1, %3 : vector<18x64xf32>
    %cst = arith.constant dense<0.000000e+00> : vector<18xf32>
    %5 = vector.multi_reduction <add>, %4, %cst [1] : vector<18x64xf32> to vector<18xf32>
    %6 = vector.shape_cast %5 : vector<18xf32> to vector<18x1xf32>
    %cst_3 = arith.constant 6.400000e+01 : f32
    %7 = vector.broadcast %cst_3 : f32 to vector<18x1xf32>
    %8 = arith.divf %6, %7 : vector<18x1xf32>
    %9 = vector.broadcast %8 : vector<18x1xf32> to vector<18x64xf32>
    %10 = arith.subf %4, %9 : vector<18x64xf32>
    %11 = arith.mulf %10, %10 : vector<18x64xf32>
    %cst_4 = arith.constant dense<0.000000e+00> : vector<18xf32>
    %12 = vector.multi_reduction <add>, %11, %cst_4 [1] : vector<18x64xf32> to vector<18xf32>
    %13 = vector.shape_cast %12 : vector<18xf32> to vector<18x1xf32>
    %cst_5 = arith.constant 6.400000e+01 : f32
    %14 = vector.broadcast %cst_5 : f32 to vector<18x1xf32>
    %15 = arith.divf %13, %14 : vector<18x1xf32>
    %16 = vector.broadcast %8 : vector<18x1xf32> to vector<18x64xf32>
    %17 = arith.subf %4, %16 : vector<18x64xf32>
    %cst_6 = arith.constant 9.99999996E-13 : f32
    %18 = vector.broadcast %cst_6 : f32 to vector<18x1xf32>
    %19 = arith.addf %15, %18 : vector<18x1xf32>
    %20 = math.rsqrt %19 : vector<18x1xf32>
    %21 = vector.broadcast %20 : vector<18x1xf32> to vector<18x64xf32>
    %22 = arith.mulf %17, %21 : vector<18x64xf32>
    %c0_7 = arith.constant 0 : index
    %c0_8 = arith.constant 0 : index
    %23 = vector.load %arg3[%c0_7, %c0_8] : memref<1x64xf32, #tpu.memory_space<vmem>>, vector<1x64xf32>
    %24 = vector.broadcast %23 : vector<1x64xf32> to vector<18x64xf32>
    %25 = arith.mulf %22, %24 : vector<18x64xf32>
    %c0_9 = arith.constant 0 : index
    %c0_10 = arith.constant 0 : index
    %26 = vector.load %arg4[%c0_9, %c0_10] : memref<1x64xf32, #tpu.memory_space<vmem>>, vector<1x64xf32>
    %27 = vector.broadcast %26 : vector<1x64xf32> to vector<18x64xf32>
    %28 = arith.addf %25, %27 : vector<18x64xf32>
    %29 = arith.truncf %28 : vector<18x64xf32> to vector<18x64xbf16>
    %c0_11 = arith.constant 0 : index
    %c0_12 = arith.constant 0 : index
    %30 = vector.load %arg5[%c0_11, %c0_12] : memref<18x64xbf16, #tpu.memory_space<vmem>>, vector<18x64xbf16>
    tpu.vector_store %arg5[%c0_11, %c0_12], %29 {strides = array<i32>} : memref<18x64xbf16, #tpu.memory_space<vmem>>, vector<18x64xbf16>,
    return
  }
  func.func @transform_0(%arg0: i32) -> (i32, i32) {
    %c0_i32 = arith.constant 0 : i32
    %c0_i32_0 = arith.constant 0 : i32
    return %arg0, %c0_i32 : i32, i32
  }
  func.func @transform_1(%arg0: i32) -> (i32, i32) {
    %c0_i32 = arith.constant 0 : i32
    %c0_i32_0 = arith.constant 0 : i32
    return %arg0, %c0_i32 : i32, i32
  }
  func.func @transform_2(%arg0: i32) -> (i32, i32) {
    %c0_i32 = arith.constant 0 : i32
    %c0_i32_0 = arith.constant 0 : i32
    %c0_i32_1 = arith.constant 0 : i32
    return %c0_i32, %c0_i32_0 : i32, i32
  }
  func.func @transform_3(%arg0: i32) -> (i32, i32) {
    %c0_i32 = arith.constant 0 : i32
    %c0_i32_0 = arith.constant 0 : i32
    %c0_i32_1 = arith.constant 0 : i32
    return %c0_i32, %c0_i32_0 : i32, i32
  }
  func.func @transform_4(%arg0: i32) -> (i32, i32) {
    %c0_i32 = arith.constant 0 : i32
    %c0_i32_0 = arith.constant 0 : i32
    return %arg0, %c0_i32 : i32, i32
  }
}

module attributes {stable_mosaic.version = 11 : i64} {
  func.func @_attn_kernel(%arg0: i32, %arg1: memref<1x9x256xbf16, #tpu.memory_space<vmem>>, %arg2: memref<1x9x64xbf16, #tpu.memory_space<vmem>>) attributes {dimension_semantics = [#tpu.dimension_semantics<parallel>], iteration_bounds = array<i64: 2>, scalar_prefetch = 0 : i64, scratch_operands = 0 : i64, tpu.core_type = #tpu.core_type<tc>, window_params = [{transform_indices = @transform_0, window_bounds = array<i64: 1, 9, 256>}, {transform_indices = @transform_1, window_bounds = array<i64: 1, 9, 64>}]} {
    %c0 = arith.constant 0 : index
    %c0_0 = arith.constant 0 : index
    %c0_1 = arith.constant 0 : index
    %0 = vector.load %arg1[%c0, %c0_0, %c0_1] : memref<1x9x256xbf16, #tpu.memory_space<vmem>>, vector<1x9x256xbf16>
    %1 = vector.shape_cast %0 : vector<1x9x256xbf16> to vector<9x256xbf16>
    %2 = vector.extract_strided_slice %1 {offsets = [0, 0], sizes = [9, 16], strides = [1, 1]} : vector<9x256xbf16> to vector<9x16xbf16>
    %3 = vector.extract_strided_slice %1 {offsets = [0, 64], sizes = [9, 16], strides = [1, 1]} : vector<9x256xbf16> to vector<9x16xbf16>
    %4 = vector.extract_strided_slice %1 {offsets = [0, 128], sizes = [9, 16], strides = [1, 1]} : vector<9x256xbf16> to vector<9x16xbf16>
    %cst = arith.constant dense<0.000000e+00> : vector<9x9xf32>
    %5 = tpu.matmul %2, %3, %cst {dimension_numbers = #tpu.dot_dimension_numbers<[1], [1], [0], [0], [0, 0, 1, 0], [], []>} : vector<9x16xbf16>, vector<9x16xbf16>, vector<9x9xf32> -> vector<9x9xf32>
    %cst_2 = arith.constant dense<0xFF800000> : vector<9xf32>
    %6 = vector.multi_reduction <maximumf>, %5, %cst_2 [1] : vector<9x9xf32> to vector<9xf32>
    %7 = vector.shape_cast %6 : vector<9xf32> to vector<9x1xf32>
    %8 = vector.broadcast %7 : vector<9x1xf32> to vector<9x9xf32>
    %9 = arith.subf %5, %8 : vector<9x9xf32>
    %10 = math.exp %9 : vector<9x9xf32>
    %cst_3 = arith.constant dense<0.000000e+00> : vector<9xf32>
    %11 = vector.multi_reduction <add>, %10, %cst_3 [1] : vector<9x9xf32> to vector<9xf32>
    %12 = vector.shape_cast %11 : vector<9xf32> to vector<9x1xf32>
    %13 = tpu.reciprocal %12 {approx = true} : vector<9x1xf32> -> vector<9x1xf32>
    %14 = vector.broadcast %13 : vector<9x1xf32> to vector<9x9xf32>
    %15 = arith.mulf %10, %14 : vector<9x9xf32>
    %16 = arith.truncf %15 : vector<9x9xf32> to vector<9x9xbf16>
    %cst_4 = arith.constant dense<0.000000e+00> : vector<9x16xf32>
    %17 = tpu.matmul %16, %4, %cst_4 {dimension_numbers = #tpu.dot_dimension_numbers<[1], [0], [0], [1], [0, 0, 1, 1], [], []>} : vector<9x9xbf16>, vector<9x16xbf16>, vector<9x16xf32> -> vector<9x16xf32>
    %18 = arith.truncf %17 : vector<9x16xf32> to vector<9x16xbf16>
    %c0_5 = arith.constant 0 : index
    %c0_6 = arith.constant 0 : index
    %c0_7 = arith.constant 0 : index
    %19 = vector.load %arg2[%c0_5, %c0_6, %c0_7] : memref<1x9x64xbf16, #tpu.memory_space<vmem>>, vector<1x9x16xbf16>
    %20 = vector.shape_cast %19 : vector<1x9x16xbf16> to vector<9x16xbf16>
    %21 = vector.shape_cast %18 : vector<9x16xbf16> to vector<1x9x16xbf16>
    tpu.vector_store %arg2[%c0_5, %c0_6, %c0_7], %21 {strides = array<i32>} : memref<1x9x64xbf16, #tpu.memory_space<vmem>>, vector<1x9x16xbf16>,
    %22 = vector.extract_strided_slice %1 {offsets = [0, 16], sizes = [9, 16], strides = [1, 1]} : vector<9x256xbf16> to vector<9x16xbf16>
    %23 = vector.extract_strided_slice %1 {offsets = [0, 80], sizes = [9, 16], strides = [1, 1]} : vector<9x256xbf16> to vector<9x16xbf16>
    %24 = vector.extract_strided_slice %1 {offsets = [0, 144], sizes = [9, 16], strides = [1, 1]} : vector<9x256xbf16> to vector<9x16xbf16>
    %cst_8 = arith.constant dense<0.000000e+00> : vector<9x9xf32>
    %25 = tpu.matmul %22, %23, %cst_8 {dimension_numbers = #tpu.dot_dimension_numbers<[1], [1], [0], [0], [0, 0, 1, 0], [], []>} : vector<9x16xbf16>, vector<9x16xbf16>, vector<9x9xf32> -> vector<9x9xf32>
    %cst_9 = arith.constant dense<0xFF800000> : vector<9xf32>
    %26 = vector.multi_reduction <maximumf>, %25, %cst_9 [1] : vector<9x9xf32> to vector<9xf32>
    %27 = vector.shape_cast %26 : vector<9xf32> to vector<9x1xf32>
    %28 = vector.broadcast %27 : vector<9x1xf32> to vector<9x9xf32>
    %29 = arith.subf %25, %28 : vector<9x9xf32>
    %30 = math.exp %29 : vector<9x9xf32>
    %cst_10 = arith.constant dense<0.000000e+00> : vector<9xf32>
    %31 = vector.multi_reduction <add>, %30, %cst_10 [1] : vector<9x9xf32> to vector<9xf32>
    %32 = vector.shape_cast %31 : vector<9xf32> to vector<9x1xf32>
    %33 = tpu.reciprocal %32 {approx = true} : vector<9x1xf32> -> vector<9x1xf32>
    %34 = vector.broadcast %33 : vector<9x1xf32> to vector<9x9xf32>
    %35 = arith.mulf %30, %34 : vector<9x9xf32>
    %36 = arith.truncf %35 : vector<9x9xf32> to vector<9x9xbf16>
    %cst_11 = arith.constant dense<0.000000e+00> : vector<9x16xf32>
    %37 = tpu.matmul %36, %24, %cst_11 {dimension_numbers = #tpu.dot_dimension_numbers<[1], [0], [0], [1], [0, 0, 1, 1], [], []>} : vector<9x9xbf16>, vector<9x16xbf16>, vector<9x16xf32> -> vector<9x16xf32>
    %38 = arith.truncf %37 : vector<9x16xf32> to vector<9x16xbf16>
    %c0_12 = arith.constant 0 : index
    %c0_13 = arith.constant 0 : index
    %c16 = arith.constant 16 : index
    %39 = vector.load %arg2[%c0_12, %c0_13, %c16] : memref<1x9x64xbf16, #tpu.memory_space<vmem>>, vector<1x9x16xbf16>
    %40 = vector.shape_cast %39 : vector<1x9x16xbf16> to vector<9x16xbf16>
    %41 = vector.shape_cast %38 : vector<9x16xbf16> to vector<1x9x16xbf16>
    tpu.vector_store %arg2[%c0_12, %c0_13, %c16], %41 {strides = array<i32>} : memref<1x9x64xbf16, #tpu.memory_space<vmem>>, vector<1x9x16xbf16>,
    %42 = vector.extract_strided_slice %1 {offsets = [0, 32], sizes = [9, 16], strides = [1, 1]} : vector<9x256xbf16> to vector<9x16xbf16>
    %43 = vector.extract_strided_slice %1 {offsets = [0, 96], sizes = [9, 16], strides = [1, 1]} : vector<9x256xbf16> to vector<9x16xbf16>
    %44 = vector.extract_strided_slice %1 {offsets = [0, 160], sizes = [9, 16], strides = [1, 1]} : vector<9x256xbf16> to vector<9x16xbf16>
    %cst_14 = arith.constant dense<0.000000e+00> : vector<9x9xf32>
    %45 = tpu.matmul %42, %43, %cst_14 {dimension_numbers = #tpu.dot_dimension_numbers<[1], [1], [0], [0], [0, 0, 1, 0], [], []>} : vector<9x16xbf16>, vector<9x16xbf16>, vector<9x9xf32> -> vector<9x9xf32>
    %cst_15 = arith.constant dense<0xFF800000> : vector<9xf32>
    %46 = vector.multi_reduction <maximumf>, %45, %cst_15 [1] : vector<9x9xf32> to vector<9xf32>
    %47 = vector.shape_cast %46 : vector<9xf32> to vector<9x1xf32>
    %48 = vector.broadcast %47 : vector<9x1xf32> to vector<9x9xf32>
    %49 = arith.subf %45, %48 : vector<9x9xf32>
    %50 = math.exp %49 : vector<9x9xf32>
    %cst_16 = arith.constant dense<0.000000e+00> : vector<9xf32>
    %51 = vector.multi_reduction <add>, %50, %cst_16 [1] : vector<9x9xf32> to vector<9xf32>
    %52 = vector.shape_cast %51 : vector<9xf32> to vector<9x1xf32>
    %53 = tpu.reciprocal %52 {approx = true} : vector<9x1xf32> -> vector<9x1xf32>
    %54 = vector.broadcast %53 : vector<9x1xf32> to vector<9x9xf32>
    %55 = arith.mulf %50, %54 : vector<9x9xf32>
    %56 = arith.truncf %55 : vector<9x9xf32> to vector<9x9xbf16>
    %cst_17 = arith.constant dense<0.000000e+00> : vector<9x16xf32>
    %57 = tpu.matmul %56, %44, %cst_17 {dimension_numbers = #tpu.dot_dimension_numbers<[1], [0], [0], [1], [0, 0, 1, 1], [], []>} : vector<9x9xbf16>, vector<9x16xbf16>, vector<9x16xf32> -> vector<9x16xf32>
    %58 = arith.truncf %57 : vector<9x16xf32> to vector<9x16xbf16>
    %c0_18 = arith.constant 0 : index
    %c0_19 = arith.constant 0 : index
    %c32 = arith.constant 32 : index
    %59 = vector.load %arg2[%c0_18, %c0_19, %c32] : memref<1x9x64xbf16, #tpu.memory_space<vmem>>, vector<1x9x16xbf16>
    %60 = vector.shape_cast %59 : vector<1x9x16xbf16> to vector<9x16xbf16>
    %61 = vector.shape_cast %58 : vector<9x16xbf16> to vector<1x9x16xbf16>
    tpu.vector_store %arg2[%c0_18, %c0_19, %c32], %61 {strides = array<i32>} : memref<1x9x64xbf16, #tpu.memory_space<vmem>>, vector<1x9x16xbf16>,
    %62 = vector.extract_strided_slice %1 {offsets = [0, 48], sizes = [9, 16], strides = [1, 1]} : vector<9x256xbf16> to vector<9x16xbf16>
    %63 = vector.extract_strided_slice %1 {offsets = [0, 112], sizes = [9, 16], strides = [1, 1]} : vector<9x256xbf16> to vector<9x16xbf16>
    %64 = vector.extract_strided_slice %1 {offsets = [0, 176], sizes = [9, 16], strides = [1, 1]} : vector<9x256xbf16> to vector<9x16xbf16>
    %cst_20 = arith.constant dense<0.000000e+00> : vector<9x9xf32>
    %65 = tpu.matmul %62, %63, %cst_20 {dimension_numbers = #tpu.dot_dimension_numbers<[1], [1], [0], [0], [0, 0, 1, 0], [], []>} : vector<9x16xbf16>, vector<9x16xbf16>, vector<9x9xf32> -> vector<9x9xf32>
    %cst_21 = arith.constant dense<0xFF800000> : vector<9xf32>
    %66 = vector.multi_reduction <maximumf>, %65, %cst_21 [1] : vector<9x9xf32> to vector<9xf32>
    %67 = vector.shape_cast %66 : vector<9xf32> to vector<9x1xf32>
    %68 = vector.broadcast %67 : vector<9x1xf32> to vector<9x9xf32>
    %69 = arith.subf %65, %68 : vector<9x9xf32>
    %70 = math.exp %69 : vector<9x9xf32>
    %cst_22 = arith.constant dense<0.000000e+00> : vector<9xf32>
    %71 = vector.multi_reduction <add>, %70, %cst_22 [1] : vector<9x9xf32> to vector<9xf32>
    %72 = vector.shape_cast %71 : vector<9xf32> to vector<9x1xf32>
    %73 = tpu.reciprocal %72 {approx = true} : vector<9x1xf32> -> vector<9x1xf32>
    %74 = vector.broadcast %73 : vector<9x1xf32> to vector<9x9xf32>
    %75 = arith.mulf %70, %74 : vector<9x9xf32>
    %76 = arith.truncf %75 : vector<9x9xf32> to vector<9x9xbf16>
    %cst_23 = arith.constant dense<0.000000e+00> : vector<9x16xf32>
    %77 = tpu.matmul %76, %64, %cst_23 {dimension_numbers = #tpu.dot_dimension_numbers<[1], [0], [0], [1], [0, 0, 1, 1], [], []>} : vector<9x9xbf16>, vector<9x16xbf16>, vector<9x16xf32> -> vector<9x16xf32>
    %78 = arith.truncf %77 : vector<9x16xf32> to vector<9x16xbf16>
    %c0_24 = arith.constant 0 : index
    %c0_25 = arith.constant 0 : index
    %c48 = arith.constant 48 : index
    %79 = vector.load %arg2[%c0_24, %c0_25, %c48] : memref<1x9x64xbf16, #tpu.memory_space<vmem>>, vector<1x9x16xbf16>
    %80 = vector.shape_cast %79 : vector<1x9x16xbf16> to vector<9x16xbf16>
    %81 = vector.shape_cast %78 : vector<9x16xbf16> to vector<1x9x16xbf16>
    tpu.vector_store %arg2[%c0_24, %c0_25, %c48], %81 {strides = array<i32>} : memref<1x9x64xbf16, #tpu.memory_space<vmem>>, vector<1x9x16xbf16>,
    return
  }
  func.func @transform_0(%arg0: i32) -> (i32, i32, i32) {
    %c0_i32 = arith.constant 0 : i32
    %c0_i32_0 = arith.constant 0 : i32
    %c0_i32_1 = arith.constant 0 : i32
    return %arg0, %c0_i32, %c0_i32_0 : i32, i32, i32
  }
  func.func @transform_1(%arg0: i32) -> (i32, i32, i32) {
    %c0_i32 = arith.constant 0 : i32
    %c0_i32_0 = arith.constant 0 : i32
    %c0_i32_1 = arith.constant 0 : i32
    return %arg0, %c0_i32, %c0_i32_0 : i32, i32, i32
  }
}

module attributes {stable_mosaic.version = 11 : i64} {
  func.func @_mm_res_ln_kernel(%arg0: i32, %arg1: i32, %arg2: memref<18x64xbf16, #tpu.memory_space<vmem>>, %arg3: memref<64x64xbf16, #tpu.memory_space<vmem>>, %arg4: memref<1x64xf32, #tpu.memory_space<vmem>>, %arg5: memref<18x64xbf16, #tpu.memory_space<vmem>>, %arg6: memref<1x64xf32, #tpu.memory_space<vmem>>, %arg7: memref<1x64xf32, #tpu.memory_space<vmem>>, %arg8: memref<18x64xbf16, #tpu.memory_space<vmem>>, %arg9: memref<18x64xf32, #tpu.memory_space<vmem>>) attributes {dimension_semantics = [#tpu.dimension_semantics<parallel>, #tpu.dimension_semantics<arbitrary>], iteration_bounds = array<i64: 1, 1>, scalar_prefetch = 0 : i64, scratch_operands = 1 : i64, tpu.core_type = #tpu.core_type<tc>, window_params = [{transform_indices = @transform_0, window_bounds = array<i64: 18, 64>}, {transform_indices = @transform_1, window_bounds = array<i64: 64, 64>}, {pipeline_mode = #tpu.pipeline_mode<synchronous>, transform_indices = @transform_2, window_bounds = array<i64: 1, 64>}, {transform_indices = @transform_3, window_bounds = array<i64: 18, 64>}, {pipeline_mode = #tpu.pipeline_mode<synchronous>, transform_indices = @transform_4, window_bounds = array<i64: 1, 64>}, {pipeline_mode = #tpu.pipeline_mode<synchronous>, transform_indices = @transform_5, window_bounds = array<i64: 1, 64>}, {transform_indices = @transform_6, window_bounds = array<i64: 18, 64>}]} {
    %c0_i32 = arith.constant 0 : i32
    %0 = arith.cmpi eq, %arg1, %c0_i32 : i32
    %1 = arith.extui %0 : i1 to i32
    %c0_i32_0 = arith.constant 0 : i32
    %2 = arith.cmpi ne, %1, %c0_i32_0 : i32
    scf.if %2 {
      %cst_10 = arith.constant 0.000000e+00 : f32
      %12 = vector.broadcast %cst_10 : f32 to vector<18x64xf32>
      %c0_11 = arith.constant 0 : index
      %c0_12 = arith.constant 0 : index
      %13 = vector.load %arg9[%c0_11, %c0_12] : memref<18x64xf32, #tpu.memory_space<vmem>>, vector<18x64xf32>
      tpu.vector_store %arg9[%c0_11, %c0_12], %12 {strides = array<i32>} : memref<18x64xf32, #tpu.memory_space<vmem>>, vector<18x64xf32>,
    } else {
    }
    %c0 = arith.constant 0 : index
    %c0_1 = arith.constant 0 : index
    %3 = vector.load %arg9[%c0, %c0_1] : memref<18x64xf32, #tpu.memory_space<vmem>>, vector<18x64xf32>
    %c0_2 = arith.constant 0 : index
    %c0_3 = arith.constant 0 : index
    %4 = vector.load %arg2[%c0_2, %c0_3] : memref<18x64xbf16, #tpu.memory_space<vmem>>, vector<18x64xbf16>
    %c0_4 = arith.constant 0 : index
    %c0_5 = arith.constant 0 : index
    %5 = vector.load %arg3[%c0_4, %c0_5] : memref<64x64xbf16, #tpu.memory_space<vmem>>, vector<64x64xbf16>
    %cst = arith.constant dense<0.000000e+00> : vector<18x64xf32>
    %6 = tpu.matmul %4, %5, %cst {dimension_numbers = #tpu.dot_dimension_numbers<[1], [0], [0], [1], [0, 0, 1, 1], [], []>} : vector<18x64xbf16>, vector<64x64xbf16>, vector<18x64xf32> -> vector<18x64xf32>
    %7 = arith.addf %3, %6 : vector<18x64xf32>
    %c0_6 = arith.constant 0 : index
    %c0_7 = arith.constant 0 : index
    %8 = vector.load %arg9[%c0_6, %c0_7] : memref<18x64xf32, #tpu.memory_space<vmem>>, vector<18x64xf32>
    tpu.vector_store %arg9[%c0_6, %c0_7], %7 {strides = array<i32>} : memref<18x64xf32, #tpu.memory_space<vmem>>, vector<18x64xf32>,
    %c0_i32_8 = arith.constant 0 : i32
    %9 = arith.cmpi eq, %arg1, %c0_i32_8 : i32
    %10 = arith.extui %9 : i1 to i32
    %c0_i32_9 = arith.constant 0 : i32
    %11 = arith.cmpi ne, %10, %c0_i32_9 : i32
    scf.if %11 {
      %c0_10 = arith.constant 0 : index
      %c0_11 = arith.constant 0 : index
      %12 = vector.load %arg9[%c0_10, %c0_11] : memref<18x64xf32, #tpu.memory_space<vmem>>, vector<18x64xf32>
      %c0_12 = arith.constant 0 : index
      %c0_13 = arith.constant 0 : index
      %13 = vector.load %arg4[%c0_12, %c0_13] : memref<1x64xf32, #tpu.memory_space<vmem>>, vector<1x64xf32>
      %14 = vector.broadcast %13 : vector<1x64xf32> to vector<18x64xf32>
      %15 = arith.addf %12, %14 : vector<18x64xf32>
      %c0_14 = arith.constant 0 : index
      %c0_15 = arith.constant 0 : index
      %16 = vector.load %arg5[%c0_14, %c0_15] : memref<18x64xbf16, #tpu.memory_space<vmem>>, vector<18x64xbf16>
      %17 = arith.extf %16 : vector<18x64xbf16> to vector<18x64xf32>
      %18 = arith.addf %15, %17 : vector<18x64xf32>
      %cst_16 = arith.constant dense<0.000000e+00> : vector<18xf32>
      %19 = vector.multi_reduction <add>, %18, %cst_16 [1] : vector<18x64xf32> to vector<18xf32>
      %20 = vector.shape_cast %19 : vector<18xf32> to vector<18x1xf32>
      %cst_17 = arith.constant 6.400000e+01 : f32
      %21 = vector.broadcast %cst_17 : f32 to vector<18x1xf32>
      %22 = arith.divf %20, %21 : vector<18x1xf32>
      %23 = vector.broadcast %22 : vector<18x1xf32> to vector<18x64xf32>
      %24 = arith.subf %18, %23 : vector<18x64xf32>
      %25 = arith.mulf %24, %24 : vector<18x64xf32>
      %cst_18 = arith.constant dense<0.000000e+00> : vector<18xf32>
      %26 = vector.multi_reduction <add>, %25, %cst_18 [1] : vector<18x64xf32> to vector<18xf32>
      %27 = vector.shape_cast %26 : vector<18xf32> to vector<18x1xf32>
      %cst_19 = arith.constant 6.400000e+01 : f32
      %28 = vector.broadcast %cst_19 : f32 to vector<18x1xf32>
      %29 = arith.divf %27, %28 : vector<18x1xf32>
      %30 = vector.broadcast %22 : vector<18x1xf32> to vector<18x64xf32>
      %31 = arith.subf %18, %30 : vector<18x64xf32>
      %cst_20 = arith.constant 9.99999996E-13 : f32
      %32 = vector.broadcast %cst_20 : f32 to vector<18x1xf32>
      %33 = arith.addf %29, %32 : vector<18x1xf32>
      %34 = math.rsqrt %33 : vector<18x1xf32>
      %35 = vector.broadcast %34 : vector<18x1xf32> to vector<18x64xf32>
      %36 = arith.mulf %31, %35 : vector<18x64xf32>
      %c0_21 = arith.constant 0 : index
      %c0_22 = arith.constant 0 : index
      %37 = vector.load %arg6[%c0_21, %c0_22] : memref<1x64xf32, #tpu.memory_space<vmem>>, vector<1x64xf32>
      %38 = vector.broadcast %37 : vector<1x64xf32> to vector<18x64xf32>
      %39 = arith.mulf %36, %38 : vector<18x64xf32>
      %c0_23 = arith.constant 0 : index
      %c0_24 = arith.constant 0 : index
      %40 = vector.load %arg7[%c0_23, %c0_24] : memref<1x64xf32, #tpu.memory_space<vmem>>, vector<1x64xf32>
      %41 = vector.broadcast %40 : vector<1x64xf32> to vector<18x64xf32>
      %42 = arith.addf %39, %41 : vector<18x64xf32>
      %43 = arith.truncf %42 : vector<18x64xf32> to vector<18x64xbf16>
      %c0_25 = arith.constant 0 : index
      %c0_26 = arith.constant 0 : index
      %44 = vector.load %arg8[%c0_25, %c0_26] : memref<18x64xbf16, #tpu.memory_space<vmem>>, vector<18x64xbf16>
      tpu.vector_store %arg8[%c0_25, %c0_26], %43 {strides = array<i32>} : memref<18x64xbf16, #tpu.memory_space<vmem>>, vector<18x64xbf16>,
    } else {
    }
    return
  }
  func.func @transform_0(%arg0: i32, %arg1: i32) -> (i32, i32) {
    %c0_i32 = arith.constant 0 : i32
    return %arg0, %arg1 : i32, i32
  }
  func.func @transform_1(%arg0: i32, %arg1: i32) -> (i32, i32) {
    %c0_i32 = arith.constant 0 : i32
    %c0_i32_0 = arith.constant 0 : i32
    return %arg1, %c0_i32 : i32, i32
  }
  func.func @transform_2(%arg0: i32, %arg1: i32) -> (i32, i32) {
    %c0_i32 = arith.constant 0 : i32
    %c0_i32_0 = arith.constant 0 : i32
    %c0_i32_1 = arith.constant 0 : i32
    return %c0_i32, %c0_i32_0 : i32, i32
  }
  func.func @transform_3(%arg0: i32, %arg1: i32) -> (i32, i32) {
    %c0_i32 = arith.constant 0 : i32
    %c0_i32_0 = arith.constant 0 : i32
    return %arg0, %c0_i32 : i32, i32
  }
  func.func @transform_4(%arg0: i32, %arg1: i32) -> (i32, i32) {
    %c0_i32 = arith.constant 0 : i32
    %c0_i32_0 = arith.constant 0 : i32
    %c0_i32_1 = arith.constant 0 : i32
    return %c0_i32, %c0_i32_0 : i32, i32
  }
  func.func @transform_5(%arg0: i32, %arg1: i32) -> (i32, i32) {
    %c0_i32 = arith.constant 0 : i32
    %c0_i32_0 = arith.constant 0 : i32
    %c0_i32_1 = arith.constant 0 : i32
    return %c0_i32, %c0_i32_0 : i32, i32
  }
  func.func @transform_6(%arg0: i32, %arg1: i32) -> (i32, i32) {
    %c0_i32 = arith.constant 0 : i32
    %c0_i32_0 = arith.constant 0 : i32
    return %arg0, %c0_i32 : i32, i32
  }
}

module attributes {stable_mosaic.version = 11 : i64} {
  func.func @_mm_kernel(%arg0: i32, %arg1: i32, %arg2: i32, %arg3: memref<18x64xbf16, #tpu.memory_space<vmem>>, %arg4: memref<64x256xbf16, #tpu.memory_space<vmem>>, %arg5: memref<1x256xf32, #tpu.memory_space<vmem>>, %arg6: memref<18x256xbf16, #tpu.memory_space<vmem>>, %arg7: memref<18x256xf32, #tpu.memory_space<vmem>>) attributes {dimension_semantics = [#tpu.dimension_semantics<parallel>, #tpu.dimension_semantics<parallel>, #tpu.dimension_semantics<arbitrary>], iteration_bounds = array<i64: 1, 1, 1>, scalar_prefetch = 0 : i64, scratch_operands = 1 : i64, tpu.core_type = #tpu.core_type<tc>, window_params = [{transform_indices = @transform_0, window_bounds = array<i64: 18, 64>}, {transform_indices = @transform_1, window_bounds = array<i64: 64, 256>}, {transform_indices = @transform_2, window_bounds = array<i64: 1, 256>}, {transform_indices = @transform_3, window_bounds = array<i64: 18, 256>}]} {
    %c0_i32 = arith.constant 0 : i32
    %0 = arith.cmpi eq, %arg2, %c0_i32 : i32
    %1 = arith.extui %0 : i1 to i32
    %c0_i32_0 = arith.constant 0 : i32
    %2 = arith.cmpi ne, %1, %c0_i32_0 : i32
    scf.if %2 {
      %cst_10 = arith.constant 0.000000e+00 : f32
      %12 = vector.broadcast %cst_10 : f32 to vector<18x256xf32>
      %c0_11 = arith.constant 0 : index
      %c0_12 = arith.constant 0 : index
      %13 = vector.load %arg7[%c0_11, %c0_12] : memref<18x256xf32, #tpu.memory_space<vmem>>, vector<18x256xf32>
      tpu.vector_store %arg7[%c0_11, %c0_12], %12 {strides = array<i32>} : memref<18x256xf32, #tpu.memory_space<vmem>>, vector<18x256xf32>,
    } else {
    }
    %c0 = arith.constant 0 : index
    %c0_1 = arith.constant 0 : index
    %3 = vector.load %arg7[%c0, %c0_1] : memref<18x256xf32, #tpu.memory_space<vmem>>, vector<18x256xf32>
    %c0_2 = arith.constant 0 : index
    %c0_3 = arith.constant 0 : index
    %4 = vector.load %arg3[%c0_2, %c0_3] : memref<18x64xbf16, #tpu.memory_space<vmem>>, vector<18x64xbf16>
    %c0_4 = arith.constant 0 : index
    %c0_5 = arith.constant 0 : index
    %5 = vector.load %arg4[%c0_4, %c0_5] : memref<64x256xbf16, #tpu.memory_space<vmem>>, vector<64x256xbf16>
    %cst = arith.constant dense<0.000000e+00> : vector<18x256xf32>
    %6 = tpu.matmul %4, %5, %cst {dimension_numbers = #tpu.dot_dimension_numbers<[1], [0], [0], [1], [0, 0, 1, 1], [], []>} : vector<18x64xbf16>, vector<64x256xbf16>, vector<18x256xf32> -> vector<18x256xf32>
    %7 = arith.addf %3, %6 : vector<18x256xf32>
    %c0_6 = arith.constant 0 : index
    %c0_7 = arith.constant 0 : index
    %8 = vector.load %arg7[%c0_6, %c0_7] : memref<18x256xf32, #tpu.memory_space<vmem>>, vector<18x256xf32>
    tpu.vector_store %arg7[%c0_6, %c0_7], %7 {strides = array<i32>} : memref<18x256xf32, #tpu.memory_space<vmem>>, vector<18x256xf32>,
    %c0_i32_8 = arith.constant 0 : i32
    %9 = arith.cmpi eq, %arg2, %c0_i32_8 : i32
    %10 = arith.extui %9 : i1 to i32
    %c0_i32_9 = arith.constant 0 : i32
    %11 = arith.cmpi ne, %10, %c0_i32_9 : i32
    scf.if %11 {
      %c0_10 = arith.constant 0 : index
      %c0_11 = arith.constant 0 : index
      %12 = vector.load %arg7[%c0_10, %c0_11] : memref<18x256xf32, #tpu.memory_space<vmem>>, vector<18x256xf32>
      %c0_12 = arith.constant 0 : index
      %c0_13 = arith.constant 0 : index
      %13 = vector.load %arg5[%c0_12, %c0_13] : memref<1x256xf32, #tpu.memory_space<vmem>>, vector<1x256xf32>
      %14 = vector.broadcast %13 : vector<1x256xf32> to vector<18x256xf32>
      %15 = arith.addf %12, %14 : vector<18x256xf32>
      %16 = arith.truncf %15 : vector<18x256xf32> to vector<18x256xbf16>
      %c0_14 = arith.constant 0 : index
      %c0_15 = arith.constant 0 : index
      %17 = vector.load %arg6[%c0_14, %c0_15] : memref<18x256xbf16, #tpu.memory_space<vmem>>, vector<18x256xbf16>
      tpu.vector_store %arg6[%c0_14, %c0_15], %16 {strides = array<i32>} : memref<18x256xbf16, #tpu.memory_space<vmem>>, vector<18x256xbf16>,
    } else {
    }
    return
  }
  func.func @transform_0(%arg0: i32, %arg1: i32, %arg2: i32) -> (i32, i32) {
    %c0_i32 = arith.constant 0 : i32
    return %arg0, %arg2 : i32, i32
  }
  func.func @transform_1(%arg0: i32, %arg1: i32, %arg2: i32) -> (i32, i32) {
    %c0_i32 = arith.constant 0 : i32
    return %arg2, %arg1 : i32, i32
  }
  func.func @transform_2(%arg0: i32, %arg1: i32, %arg2: i32) -> (i32, i32) {
    %c0_i32 = arith.constant 0 : i32
    %c0_i32_0 = arith.constant 0 : i32
    return %c0_i32, %arg1 : i32, i32
  }
  func.func @transform_3(%arg0: i32, %arg1: i32, %arg2: i32) -> (i32, i32) {
    %c0_i32 = arith.constant 0 : i32
    return %arg0, %arg1 : i32, i32
  }
}

module attributes {stable_mosaic.version = 11 : i64} {
  func.func @_ffn_kernel(%arg0: i32, %arg1: i32, %arg2: memref<18x64xbf16, #tpu.memory_space<vmem>>, %arg3: memref<64x128xbf16, #tpu.memory_space<vmem>>, %arg4: memref<1x128xf32, #tpu.memory_space<vmem>>, %arg5: memref<128x64xbf16, #tpu.memory_space<vmem>>, %arg6: memref<1x64xf32, #tpu.memory_space<vmem>>, %arg7: memref<18x64xbf16, #tpu.memory_space<vmem>>, %arg8: memref<1x64xf32, #tpu.memory_space<vmem>>, %arg9: memref<1x64xf32, #tpu.memory_space<vmem>>, %arg10: memref<18x64xbf16, #tpu.memory_space<vmem>>, %arg11: memref<18x64xf32, #tpu.memory_space<vmem>>) attributes {dimension_semantics = [#tpu.dimension_semantics<parallel>, #tpu.dimension_semantics<arbitrary>], iteration_bounds = array<i64: 1, 1>, scalar_prefetch = 0 : i64, scratch_operands = 1 : i64, tpu.core_type = #tpu.core_type<tc>, window_params = [{transform_indices = @transform_0, window_bounds = array<i64: 18, 64>}, {transform_indices = @transform_1, window_bounds = array<i64: 64, 128>}, {transform_indices = @transform_2, window_bounds = array<i64: 1, 128>}, {transform_indices = @transform_3, window_bounds = array<i64: 128, 64>}, {pipeline_mode = #tpu.pipeline_mode<synchronous>, transform_indices = @transform_4, window_bounds = array<i64: 1, 64>}, {transform_indices = @transform_5, window_bounds = array<i64: 18, 64>}, {pipeline_mode = #tpu.pipeline_mode<synchronous>, transform_indices = @transform_6, window_bounds = array<i64: 1, 64>}, {pipeline_mode = #tpu.pipeline_mode<synchronous>, transform_indices = @transform_7, window_bounds = array<i64: 1, 64>}, {transform_indices = @transform_8, window_bounds = array<i64: 18, 64>}]} {
    %c0_i32 = arith.constant 0 : i32
    %0 = arith.cmpi eq, %arg1, %c0_i32 : i32
    %1 = arith.extui %0 : i1 to i32
    %c0_i32_0 = arith.constant 0 : i32
    %2 = arith.cmpi ne, %1, %c0_i32_0 : i32
    scf.if %2 {
      %cst_19 = arith.constant 0.000000e+00 : f32
      %31 = vector.broadcast %cst_19 : f32 to vector<18x64xf32>
      %c0_20 = arith.constant 0 : index
      %c0_21 = arith.constant 0 : index
      %32 = vector.load %arg11[%c0_20, %c0_21] : memref<18x64xf32, #tpu.memory_space<vmem>>, vector<18x64xf32>
      tpu.vector_store %arg11[%c0_20, %c0_21], %31 {strides = array<i32>} : memref<18x64xf32, #tpu.memory_space<vmem>>, vector<18x64xf32>,
    } else {
    }
    %c0 = arith.constant 0 : index
    %c0_1 = arith.constant 0 : index
    %3 = vector.load %arg2[%c0, %c0_1] : memref<18x64xbf16, #tpu.memory_space<vmem>>, vector<18x64xbf16>
    %c0_2 = arith.constant 0 : index
    %c0_3 = arith.constant 0 : index
    %4 = vector.load %arg3[%c0_2, %c0_3] : memref<64x128xbf16, #tpu.memory_space<vmem>>, vector<64x128xbf16>
    %cst = arith.constant dense<0.000000e+00> : vector<18x128xf32>
    %5 = tpu.matmul %3, %4, %cst {dimension_numbers = #tpu.dot_dimension_numbers<[1], [0], [0], [1], [0, 0, 1, 1], [], []>} : vector<18x64xbf16>, vector<64x128xbf16>, vector<18x128xf32> -> vector<18x128xf32>
    %c0_4 = arith.constant 0 : index
    %c0_5 = arith.constant 0 : index
    %6 = vector.load %arg4[%c0_4, %c0_5] : memref<1x128xf32, #tpu.memory_space<vmem>>, vector<1x128xf32>
    %7 = vector.broadcast %6 : vector<1x128xf32> to vector<18x128xf32>
    %8 = arith.addf %5, %7 : vector<18x128xf32>
    %9 = arith.mulf %8, %8 : vector<18x128xf32>
    %10 = arith.mulf %8, %9 : vector<18x128xf32>
    %cst_6 = arith.constant 4.471500e-02 : f32
    %11 = vector.broadcast %cst_6 : f32 to vector<18x128xf32>
    %12 = arith.mulf %11, %10 : vector<18x128xf32>
    %13 = arith.addf %8, %12 : vector<18x128xf32>
    %cst_7 = arith.constant 0.797884583 : f32
    %14 = vector.broadcast %cst_7 : f32 to vector<18x128xf32>
    %15 = arith.mulf %14, %13 : vector<18x128xf32>
    %16 = math.tanh %15 : vector<18x128xf32>
    %cst_8 = arith.constant 1.000000e+00 : f32
    %17 = vector.broadcast %cst_8 : f32 to vector<18x128xf32>
    %18 = arith.addf %17, %16 : vector<18x128xf32>
    %cst_9 = arith.constant 5.000000e-01 : f32
    %19 = vector.broadcast %cst_9 : f32 to vector<18x128xf32>
    %20 = arith.mulf %19, %18 : vector<18x128xf32>
    %21 = arith.mulf %8, %20 : vector<18x128xf32>
    %c0_10 = arith.constant 0 : index
    %c0_11 = arith.constant 0 : index
    %22 = vector.load %arg11[%c0_10, %c0_11] : memref<18x64xf32, #tpu.memory_space<vmem>>, vector<18x64xf32>
    %23 = arith.truncf %21 : vector<18x128xf32> to vector<18x128xbf16>
    %c0_12 = arith.constant 0 : index
    %c0_13 = arith.constant 0 : index
    %24 = vector.load %arg5[%c0_12, %c0_13] : memref<128x64xbf16, #tpu.memory_space<vmem>>, vector<128x64xbf16>
    %cst_14 = arith.constant dense<0.000000e+00> : vector<18x64xf32>
    %25 = tpu.matmul %23, %24, %cst_14 {dimension_numbers = #tpu.dot_dimension_numbers<[1], [0], [0], [1], [0, 0, 1, 1], [], []>} : vector<18x128xbf16>, vector<128x64xbf16>, vector<18x64xf32> -> vector<18x64xf32>
    %26 = arith.addf %22, %25 : vector<18x64xf32>
    %c0_15 = arith.constant 0 : index
    %c0_16 = arith.constant 0 : index
    %27 = vector.load %arg11[%c0_15, %c0_16] : memref<18x64xf32, #tpu.memory_space<vmem>>, vector<18x64xf32>
    tpu.vector_store %arg11[%c0_15, %c0_16], %26 {strides = array<i32>} : memref<18x64xf32, #tpu.memory_space<vmem>>, vector<18x64xf32>,
    %c0_i32_17 = arith.constant 0 : i32
    %28 = arith.cmpi eq, %arg1, %c0_i32_17 : i32
    %29 = arith.extui %28 : i1 to i32
    %c0_i32_18 = arith.constant 0 : i32
    %30 = arith.cmpi ne, %29, %c0_i32_18 : i32
    scf.if %30 {
      %c0_19 = arith.constant 0 : index
      %c0_20 = arith.constant 0 : index
      %31 = vector.load %arg11[%c0_19, %c0_20] : memref<18x64xf32, #tpu.memory_space<vmem>>, vector<18x64xf32>
      %c0_21 = arith.constant 0 : index
      %c0_22 = arith.constant 0 : index
      %32 = vector.load %arg6[%c0_21, %c0_22] : memref<1x64xf32, #tpu.memory_space<vmem>>, vector<1x64xf32>
      %33 = vector.broadcast %32 : vector<1x64xf32> to vector<18x64xf32>
      %34 = arith.addf %31, %33 : vector<18x64xf32>
      %c0_23 = arith.constant 0 : index
      %c0_24 = arith.constant 0 : index
      %35 = vector.load %arg7[%c0_23, %c0_24] : memref<18x64xbf16, #tpu.memory_space<vmem>>, vector<18x64xbf16>
      %36 = arith.extf %35 : vector<18x64xbf16> to vector<18x64xf32>
      %37 = arith.addf %34, %36 : vector<18x64xf32>
      %cst_25 = arith.constant dense<0.000000e+00> : vector<18xf32>
      %38 = vector.multi_reduction <add>, %37, %cst_25 [1] : vector<18x64xf32> to vector<18xf32>
      %39 = vector.shape_cast %38 : vector<18xf32> to vector<18x1xf32>
      %cst_26 = arith.constant 6.400000e+01 : f32
      %40 = vector.broadcast %cst_26 : f32 to vector<18x1xf32>
      %41 = arith.divf %39, %40 : vector<18x1xf32>
      %42 = vector.broadcast %41 : vector<18x1xf32> to vector<18x64xf32>
      %43 = arith.subf %37, %42 : vector<18x64xf32>
      %44 = arith.mulf %43, %43 : vector<18x64xf32>
      %cst_27 = arith.constant dense<0.000000e+00> : vector<18xf32>
      %45 = vector.multi_reduction <add>, %44, %cst_27 [1] : vector<18x64xf32> to vector<18xf32>
      %46 = vector.shape_cast %45 : vector<18xf32> to vector<18x1xf32>
      %cst_28 = arith.constant 6.400000e+01 : f32
      %47 = vector.broadcast %cst_28 : f32 to vector<18x1xf32>
      %48 = arith.divf %46, %47 : vector<18x1xf32>
      %49 = vector.broadcast %41 : vector<18x1xf32> to vector<18x64xf32>
      %50 = arith.subf %37, %49 : vector<18x64xf32>
      %cst_29 = arith.constant 9.99999996E-13 : f32
      %51 = vector.broadcast %cst_29 : f32 to vector<18x1xf32>
      %52 = arith.addf %48, %51 : vector<18x1xf32>
      %53 = math.rsqrt %52 : vector<18x1xf32>
      %54 = vector.broadcast %53 : vector<18x1xf32> to vector<18x64xf32>
      %55 = arith.mulf %50, %54 : vector<18x64xf32>
      %c0_30 = arith.constant 0 : index
      %c0_31 = arith.constant 0 : index
      %56 = vector.load %arg8[%c0_30, %c0_31] : memref<1x64xf32, #tpu.memory_space<vmem>>, vector<1x64xf32>
      %57 = vector.broadcast %56 : vector<1x64xf32> to vector<18x64xf32>
      %58 = arith.mulf %55, %57 : vector<18x64xf32>
      %c0_32 = arith.constant 0 : index
      %c0_33 = arith.constant 0 : index
      %59 = vector.load %arg9[%c0_32, %c0_33] : memref<1x64xf32, #tpu.memory_space<vmem>>, vector<1x64xf32>
      %60 = vector.broadcast %59 : vector<1x64xf32> to vector<18x64xf32>
      %61 = arith.addf %58, %60 : vector<18x64xf32>
      %62 = arith.truncf %61 : vector<18x64xf32> to vector<18x64xbf16>
      %c0_34 = arith.constant 0 : index
      %c0_35 = arith.constant 0 : index
      %63 = vector.load %arg10[%c0_34, %c0_35] : memref<18x64xbf16, #tpu.memory_space<vmem>>, vector<18x64xbf16>
      tpu.vector_store %arg10[%c0_34, %c0_35], %62 {strides = array<i32>} : memref<18x64xbf16, #tpu.memory_space<vmem>>, vector<18x64xbf16>,
    } else {
    }
    return
  }
  func.func @transform_0(%arg0: i32, %arg1: i32) -> (i32, i32) {
    %c0_i32 = arith.constant 0 : i32
    %c0_i32_0 = arith.constant 0 : i32
    return %arg0, %c0_i32 : i32, i32
  }
  func.func @transform_1(%arg0: i32, %arg1: i32) -> (i32, i32) {
    %c0_i32 = arith.constant 0 : i32
    %c0_i32_0 = arith.constant 0 : i32
    return %c0_i32, %arg1 : i32, i32
  }
  func.func @transform_2(%arg0: i32, %arg1: i32) -> (i32, i32) {
    %c0_i32 = arith.constant 0 : i32
    %c0_i32_0 = arith.constant 0 : i32
    return %c0_i32, %arg1 : i32, i32
  }
  func.func @transform_3(%arg0: i32, %arg1: i32) -> (i32, i32) {
    %c0_i32 = arith.constant 0 : i32
    %c0_i32_0 = arith.constant 0 : i32
    return %arg1, %c0_i32 : i32, i32
  }
  func.func @transform_4(%arg0: i32, %arg1: i32) -> (i32, i32) {
    %c0_i32 = arith.constant 0 : i32
    %c0_i32_0 = arith.constant 0 : i32
    %c0_i32_1 = arith.constant 0 : i32
    return %c0_i32, %c0_i32_0 : i32, i32
  }
  func.func @transform_5(%arg0: i32, %arg1: i32) -> (i32, i32) {
    %c0_i32 = arith.constant 0 : i32
    %c0_i32_0 = arith.constant 0 : i32
    return %arg0, %c0_i32 : i32, i32
  }
  func.func @transform_6(%arg0: i32, %arg1: i32) -> (i32, i32) {
    %c0_i32 = arith.constant 0 : i32
    %c0_i32_0 = arith.constant 0 : i32
    %c0_i32_1 = arith.constant 0 : i32
    return %c0_i32, %c0_i32_0 : i32, i32
  }
  func.func @transform_7(%arg0: i32, %arg1: i32) -> (i32, i32) {
    %c0_i32 = arith.constant 0 : i32
    %c0_i32_0 = arith.constant 0 : i32
    %c0_i32_1 = arith.constant 0 : i32
    return %c0_i32, %c0_i32_0 : i32, i32
  }
  func.func @transform_8(%arg0: i32, %arg1: i32) -> (i32, i32) {
    %c0_i32 = arith.constant 0 : i32
    %c0_i32_0 = arith.constant 0 : i32
    return %arg0, %c0_i32 : i32, i32
  }
}

module attributes {stable_mosaic.version = 11 : i64} {
  func.func @_mm_kernel(%arg0: i32, %arg1: i32, %arg2: i32, %arg3: memref<2x64xbf16, #tpu.memory_space<vmem>>, %arg4: memref<64x128xbf16, #tpu.memory_space<vmem>>, %arg5: memref<1x128xf32, #tpu.memory_space<vmem>>, %arg6: memref<2x128xf32, #tpu.memory_space<vmem>>, %arg7: memref<2x128xf32, #tpu.memory_space<vmem>>) attributes {dimension_semantics = [#tpu.dimension_semantics<parallel>, #tpu.dimension_semantics<parallel>, #tpu.dimension_semantics<arbitrary>], iteration_bounds = array<i64: 1, 1, 1>, scalar_prefetch = 0 : i64, scratch_operands = 1 : i64, tpu.core_type = #tpu.core_type<tc>, window_params = [{transform_indices = @transform_0, window_bounds = array<i64: 2, 64>}, {transform_indices = @transform_1, window_bounds = array<i64: 64, 128>}, {transform_indices = @transform_2, window_bounds = array<i64: 1, 128>}, {transform_indices = @transform_3, window_bounds = array<i64: 2, 128>}]} {
    %c0_i32 = arith.constant 0 : i32
    %0 = arith.cmpi eq, %arg2, %c0_i32 : i32
    %1 = arith.extui %0 : i1 to i32
    %c0_i32_0 = arith.constant 0 : i32
    %2 = arith.cmpi ne, %1, %c0_i32_0 : i32
    scf.if %2 {
      %cst_10 = arith.constant 0.000000e+00 : f32
      %12 = vector.broadcast %cst_10 : f32 to vector<2x128xf32>
      %c0_11 = arith.constant 0 : index
      %c0_12 = arith.constant 0 : index
      %13 = vector.load %arg7[%c0_11, %c0_12] : memref<2x128xf32, #tpu.memory_space<vmem>>, vector<2x128xf32>
      tpu.vector_store %arg7[%c0_11, %c0_12], %12 {strides = array<i32>} : memref<2x128xf32, #tpu.memory_space<vmem>>, vector<2x128xf32>,
    } else {
    }
    %c0 = arith.constant 0 : index
    %c0_1 = arith.constant 0 : index
    %3 = vector.load %arg7[%c0, %c0_1] : memref<2x128xf32, #tpu.memory_space<vmem>>, vector<2x128xf32>
    %c0_2 = arith.constant 0 : index
    %c0_3 = arith.constant 0 : index
    %4 = vector.load %arg3[%c0_2, %c0_3] : memref<2x64xbf16, #tpu.memory_space<vmem>>, vector<2x64xbf16>
    %c0_4 = arith.constant 0 : index
    %c0_5 = arith.constant 0 : index
    %5 = vector.load %arg4[%c0_4, %c0_5] : memref<64x128xbf16, #tpu.memory_space<vmem>>, vector<64x128xbf16>
    %cst = arith.constant dense<0.000000e+00> : vector<2x128xf32>
    %6 = tpu.matmul %4, %5, %cst {dimension_numbers = #tpu.dot_dimension_numbers<[1], [0], [0], [1], [0, 0, 1, 1], [], []>} : vector<2x64xbf16>, vector<64x128xbf16>, vector<2x128xf32> -> vector<2x128xf32>
    %7 = arith.addf %3, %6 : vector<2x128xf32>
    %c0_6 = arith.constant 0 : index
    %c0_7 = arith.constant 0 : index
    %8 = vector.load %arg7[%c0_6, %c0_7] : memref<2x128xf32, #tpu.memory_space<vmem>>, vector<2x128xf32>
    tpu.vector_store %arg7[%c0_6, %c0_7], %7 {strides = array<i32>} : memref<2x128xf32, #tpu.memory_space<vmem>>, vector<2x128xf32>,
    %c0_i32_8 = arith.constant 0 : i32
    %9 = arith.cmpi eq, %arg2, %c0_i32_8 : i32
    %10 = arith.extui %9 : i1 to i32
    %c0_i32_9 = arith.constant 0 : i32
    %11 = arith.cmpi ne, %10, %c0_i32_9 : i32
    scf.if %11 {
      %c0_10 = arith.constant 0 : index
      %c0_11 = arith.constant 0 : index
      %12 = vector.load %arg7[%c0_10, %c0_11] : memref<2x128xf32, #tpu.memory_space<vmem>>, vector<2x128xf32>
      %c0_12 = arith.constant 0 : index
      %c0_13 = arith.constant 0 : index
      %13 = vector.load %arg5[%c0_12, %c0_13] : memref<1x128xf32, #tpu.memory_space<vmem>>, vector<1x128xf32>
      %14 = vector.broadcast %13 : vector<1x128xf32> to vector<2x128xf32>
      %15 = arith.addf %12, %14 : vector<2x128xf32>
      %c0_14 = arith.constant 0 : index
      %c0_15 = arith.constant 0 : index
      %16 = vector.load %arg6[%c0_14, %c0_15] : memref<2x128xf32, #tpu.memory_space<vmem>>, vector<2x128xf32>
      tpu.vector_store %arg6[%c0_14, %c0_15], %15 {strides = array<i32>} : memref<2x128xf32, #tpu.memory_space<vmem>>, vector<2x128xf32>,
    } else {
    }
    return
  }
  func.func @transform_0(%arg0: i32, %arg1: i32, %arg2: i32) -> (i32, i32) {
    %c0_i32 = arith.constant 0 : i32
    return %arg0, %arg2 : i32, i32
  }
  func.func @transform_1(%arg0: i32, %arg1: i32, %arg2: i32) -> (i32, i32) {
    %c0_i32 = arith.constant 0 : i32
    return %arg2, %arg1 : i32, i32
  }
  func.func @transform_2(%arg0: i32, %arg1: i32, %arg2: i32) -> (i32, i32) {
    %c0_i32 = arith.constant 0 : i32
    %c0_i32_0 = arith.constant 0 : i32
    return %c0_i32, %arg1 : i32, i32
  }
  func.func @transform_3(%arg0: i32, %arg1: i32, %arg2: i32) -> (i32, i32) {
    %c0_i32 = arith.constant 0 : i32
    return %arg0, %arg1 : i32, i32
  }
}

</mosaic_0001>

<bundles_post_ra>
// kernel: forward.14
= control target key start
LH: loop header
LB: loop body
LE: loop exit
PB: predicated region body
PF: predicated region fallthrough
CT: control target
= control target key end

     0   :  { %s484_s12 = smov 0   ;;  %s529_s0 = inlined_call_operand.vmem [shape: bf16[2,12,21], index: 0, kind: input, shape index: {}]   ;;  %s530_s1 = inlined_call_operand.vmem [shape: bf16[105,42], index: 1, kind: input, shape index: {}]   ;;  %s531_s2 = inlined_call_operand.vmem [shape: f32[1,42], index: 2, kind: input, shape index: {}]   ;;  %s532_s3 = inlined_call_operand.vmem [shape: bf16[2,8,42], index: 3, kind: output, shape index: {}]  }
   0x1 LB: > { %s379_s13 = sadd.s32 4294967295, %s455_s12   ;;  %p383_p0 = scmp.ge.s32.totalorder %s455_s12, 1  ;;  %s455_s12 = sphi %s484_s12, %s13_s12  }
   0x2   : > { %p137_p1 = scmp.lt.s32.totalorder %s455_s12, 3 }
   0x4   : > { %p138_p2 = pnand %p383_p0, %p137_p1 }
   0x5   : > { %p160_p3 = scmp.lt.s32.totalorder (!%p138_p2), %s379_s13, 1  ;;  %v442_v0 = vld [vmem:[%s530_s1] sm:$0xff] (!%p138_p2)   ;;  %v457_v1 = vmov (!%p138_p2), 0.0   ;;  %v443_v2 = vld [vmem:[%s530_s1 + $0x8] sm:$0xff] (!%p138_p2)   ;;  %v444_v3 = vld [vmem:[%s530_s1 + $0x10] sm:$0xff] (!%p138_p2)   ;;  %vm458_vm0 = vmmov (!%p138_p2), 0  }
   0x6   : > { %141 = sbr.rel (%p138_p2) target bundleno = 366 (0x16e), region = 32  ;;  %408 = vmatprep.subr.bf16.mxu0 (!%p138_p2), %v457_v1  ;;  %v445_v9 = vld [vmem:[%s530_s1 + $0x18] sm:$0xff] (!%p138_p2)   ;;  %422 = vmatprep.mubr.msk.bf16.mxu0 (!%p138_p2), %vm458_vm0, %v457_v1  ;;  %vm275_vm1 = vcmask (!%p138_p2), 1043456   ;;  %v446_v15 = vld [vmem:[%s530_s1 + $0x20] sm:$0xff] (!%p138_p2)   ;;  %s459_s28 = smov (!%p138_p2), 21   ;;  %vm276_vm2 = vcmask (!%p138_p2), 1044480  }
   0x7   : > { %409 = vmatpush3.bf16.msra.mxu0 (!%p138_p2), %v442_v0  ;;  %s460_s29 = smov (!%p138_p2), 63   ;;  %v461_v18 = vmov (!%p138_p2), 65535   ;;  %v447_v20 = vld [vmem:[%s530_s1 + $0x28] sm:$0xff] (!%p138_p2)   ;;  %v448_v21 = vld [vmem:[%s530_s1 + $0x30] sm:$0x1f] (!%p138_p2)   ;;  %s462_s7 = smov (!%p138_p2), 42  }
   0x8   : > { %410 = vmatprep.subr.bf16.mxu0 (!%p138_p2), %v457_v1  ;;  %v277_v19 = vsel (!%p138_p2), %vm275_vm1, 4294967295, %v461_v18  ;;  %s463_s8 = smov (!%p138_p2), 84   ;;  %vm197_vm3 = vcmask (!%p138_p2), 171008   ;;  %vm201_vm4 = vcmask (!%p138_p2), 343040   ;;  %vm204_vm5 = vcmask (!%p138_p2), 515072  }
   0x9   : > { %v278_v22 = vsel (!%p138_p2), %vm276_vm2, %v277_v19, 0  ;;  %vm207_vm6 = vcmask (!%p138_p2), 687104   ;;  %vm272_vm7 = vcmask (!%p138_p2), 859136   ;;  %v388_v32 = vld [vmem:[%s531_s2] ss:$0 sm:$0xff] (!%p138_p2)  ;;  %vm324_vm8 = vcmask (!%p138_p2), 338944  }
   0xa   : > { %v280_v23 = vand.u32 (!%p138_p2), %v448_v21, %v278_v22 }
   0xb   : > { %411 = vmatpush3.bf16.msra.mxu0 (!%p138_p2), %v443_v2 }
   0xc   : > { %412 = vmatprep.subr.bf16.mxu0 (!%p138_p2), %v457_v1 }
   0xd   : > { %s534_s13 = smov (!%p160_p3, %s379_s13), 1 }
   0xe   : > { %s399_s18 = sshll.u32 %s534_s13, 3  ;;  %s386_s11 = sshll.u32 %s534_s13, 2 }
   0xf   : > { %s164_s21 = scalar_lea.vmem %s529_s0, %s399_s18  ;;  %413 = vmatpush3.bf16.msra.mxu0 %v444_v3  ;;  %s168_s16 = scalar_lea.vmem %s532_s3, %s386_s11 }
  0x10   : > { %v170_v4 = vld [vmem:[%s164_s21] sm:$0xf]  ;;  %v171_v5 = vld [vmem:[%s164_s21 + $0x4] sm:$0x3]  ;;  %414 = vmatprep.subr.bf16.mxu0 %v457_v1 }
  0x11   : > { %v387_v6 = vcombine.low %v170_v4, %v171_v5 }
  0x13   : > { %v178_v7 = vshrl.u32 %v387_v6, 16  ;;  %v180_v8 = vshll.u32 %v387_v6, 16  ;;  %415 = vmatpush3.bf16.msra.mxu0 %v445_v9  ;;  %v186_v16 = vrot.slane %v387_v6, 1  ;;  %v194_v17 = vrot.slane %v387_v6, 2 }
  0x14   : > { %416 = vmatprep.subr.bf16.mxu0 %v457_v1 }
  0x15   : > { %v182_v10 = vrot.slane %v180_v8, 1  ;;  %v189_v11 = vrot.slane %v178_v7, 1  ;;  %v190_v12 = vrot.slane %v180_v8, 2 }
  0x17   : > { %v183_v13 = vor.u32 %v182_v10, %v178_v7  ;;  %v191_v14 = vor.u32 %v190_v12, %v189_v11  ;;  %417 = vmatpush3.bf16.msra.mxu0 %v446_v15 }
  0x18   : > { %418 = vmatprep.subr.bf16.mxu0 %v457_v1 }
  0x19   : > { %184 = vrot.lane.b32.xlu0 %v183_v13, %s459_s28  ;;  %192 = vrot.lane.b32.xlu1 %v191_v14, %s460_s29 }
  0x1b   : > { %419 = vmatpush3.bf16.msra.mxu0 %v447_v20 }
  0x1c   : > { %420 = vmatprep.subr.bf16.mxu0 %v457_v1 }
  0x1d   : > { %187 = vrot.lane.b32.xlu0 %v186_v16, %s462_s7  ;;  %195 = vrot.lane.b32.xlu1 %v194_v17, %s463_s8 }
  0x1f   : > { %421 = vmatpush3.bf16.msra.mxu0 %v280_v23 }
  0x8b   : > { %v185_v24 = vpop.permute.xlu0 %184  ;;  %v193_v25 = vpop.permute.xlu1 %192 }
  0x8c   : > { %v200_v26 = vsel %vm197_vm3, %v170_v4, %v185_v24 }
  0x8f   : > { %v188_v27 = vpop.permute.xlu0 %187  ;;  %v196_v28 = vpop.permute.xlu1 %195 }
  0x90   : > { %v203_v29 = vsel %vm201_vm4, %v200_v26, %v188_v27 }
  0x91   : > { %v206_v30 = vsel %vm204_vm5, %v203_v29, %v193_v25 }
  0x92   : > { %v209_v31 = vsel %vm207_vm6, %v206_v30, %v196_v28 }
  0x93   : > { %423 = vmatmul.mubr.msk.bf16.vlgmr.msra.gmra.mrb[0].mxu0 %vm272_vm7, %v209_v31 }
 0x166   : > { %v316_v33 = vpop.f32.mrb[0].mxu0 }
 0x167   : > { %v317_v34 = vadd.f32 %v388_v32, %v316_v33  ;;  %v424_v35 = vpop.f32.mrb[1].mxu0 }
 0x168   : > { %v319_v36 = vpop.f32.mrb[2].mxu0 }
 0x169   : > { %v322_v37 = vmax.f32 %v317_v34, 0.0  ;;  %v425_v38 = vpop.f32.mrb[3].mxu0 }
 0x16b   : > { %v323_v39 = vpack.c.bf16 %v322_v37, %v322_v37 }
 0x16d   : > { %325 = vst.msk [vmem:[%s168_s16] sm:$0xf] %vm324_vm8, %v323_v39 }
 0x16e PF: > { %s13_s12 = sadd.s32 1, %s455_s12  }
 0x16f   : > { %p10_p4 = scmp.ge.s32.totalorder %s13_s12, 4  }
 0x171   :  { %12 = sbr.rel (!%p10_p4) target bundleno = 1 (0x1), region = 62 }

// kernel: forward.13
= control target key start
LH: loop header
LB: loop body
LE: loop exit
PB: predicated region body
PF: predicated region fallthrough
CT: control target
= control target key end

     0   :  { %s380_s12 = smov 0   ;;  %s407_s0 = inlined_call_operand.vmem [shape: bf16[2,10,1], index: 0, kind: input, shape index: {}]   ;;  %s408_s1 = inlined_call_operand.vmem [shape: bf16[3,21], index: 1, kind: input, shape index: {}]   ;;  %s409_s2 = inlined_call_operand.vmem [shape: f32[1,21], index: 2, kind: input, shape index: {}]   ;;  %s410_s3 = inlined_call_operand.vmem [shape: bf16[2,8,21], index: 3, kind: output, shape index: {}]  }
   0x1 LB: > { %s311_s13 = sadd.s32 4294967295, %s353_s12   ;;  %p315_p0 = scmp.ge.s32.totalorder %s353_s12, 1  ;;  %s353_s12 = sphi %s380_s12, %s13_s12  }
   0x2   : > { %p137_p1 = scmp.lt.s32.totalorder %s353_s12, 3 }
   0x4   : > { %p138_p2 = pnand %p315_p0, %p137_p1 }
   0x5   : > { %p160_p3 = scmp.lt.s32.totalorder (!%p138_p2), %s311_s13, 1  ;;  %vm207_vm0 = vcmask (!%p138_p2), 1040384   ;;  %vm208_vm1 = vcmask (!%p138_p2), 1041408   ;;  %v196_v0 = vld [vmem:[%s408_s1] sm:$0x3] (!%p138_p2)  ;;  %v355_v1 = vmov (!%p138_p2), 65535  }
   0x6   : > { %141 = sbr.rel (%p138_p2) target bundleno = 364 (0x16c), region = 32  ;;  %v209_v2 = vsel (!%p138_p2), %vm207_vm0, 4294967295, %v355_v1  ;;  %v356_v4 = vmov (!%p138_p2), 0.0   ;;  %vm357_vm2 = vmmov (!%p138_p2), 0   ;;  %s358_s20 = smov (!%p138_p2), 1   ;;  %vm189_vm3 = vcmask (!%p138_p2), 7168  }
   0x7   : > { %v210_v3 = vsel (!%p138_p2), %vm208_vm1, %v209_v2, 0  ;;  %327 = vmatprep.subr.bf16.mxu0 (!%p138_p2), %v356_v4  ;;  %329 = vmatprep.mubr.msk.bf16.mxu0 (!%p138_p2), %vm357_vm2, %v356_v4  ;;  %s359_s21 = smov (!%p138_p2), 2   ;;  %vm193_vm4 = vcmask (!%p138_p2), 15360   ;;  %vm204_vm5 = vcmask (!%p138_p2), 23552   ;;  %v320_v18 = vld [vmem:[%s409_s2] ss:$0 sm:$0xff] (!%p138_p2) }
   0x8   : > { %v212_v5 = vand.u32 (!%p138_p2), %v210_v3, %v196_v0  ;;  %vm256_vm6 = vcmask (!%p138_p2), 166912  }
   0xa   : > { %328 = vmatpush3.bf16.msra.mxu0 (!%p138_p2), %v212_v5 }
   0xd   : > { %s412_s13 = smov (!%p160_p3, %s311_s13), 1 }
   0xe   : > { %s324_s16 = sshll.u32 %s412_s13, 3  ;;  %s318_s24 = sshll.u32 %s412_s13, 2 }
   0xf   : > { %s164_s19 = scalar_lea.vmem %s407_s0, %s324_s16  ;;  %s168_s27 = scalar_lea.vmem %s410_s3, %s318_s24 }
  0x10   : > { %v170_v6 = vld [vmem:[%s164_s19] sm:$0xf]  ;;  %v171_v7 = vld [vmem:[%s164_s19 + $0x4] sm:$0x1] }
  0x11   : > { %v319_v8 = vcombine.low %v170_v6, %v171_v7 }
  0x13   : > { %v178_v9 = vshrl.u32 %v319_v8, 16  ;;  %v180_v10 = vshll.u32 %v319_v8, 16  ;;  %v186_v13 = vrot.slane %v319_v8, 1 }
  0x15   : > { %v182_v11 = vrot.slane %v180_v10, 1 }
  0x17   : > { %v183_v12 = vor.u32 %v182_v11, %v178_v9 }
  0x19   : > { %184 = vrot.lane.b32.xlu0 %v183_v12, %s358_s20 }
  0x1d   : > { %187 = vrot.lane.b32.xlu0 %v186_v13, %s359_s21 }
  0x8b   : > { %v185_v14 = vpop.permute.xlu0 %184 }
  0x8c   : > { %v192_v15 = vsel %vm189_vm3, %v170_v6, %v185_v14 }
  0x8f   : > { %v188_v16 = vpop.permute.xlu0 %187 }
  0x90   : > { %v195_v17 = vsel %vm193_vm4, %v192_v15, %v188_v16 }
  0x91   : > { %330 = vmatmul.mubr.msk.bf16.vlgmr.msra.gmra.mrb[0].mxu0 %vm204_vm5, %v195_v17 }
 0x164   : > { %v248_v19 = vpop.f32.mrb[0].mxu0 }
 0x165   : > { %v249_v20 = vadd.f32 %v320_v18, %v248_v19  ;;  %v331_v21 = vpop.f32.mrb[1].mxu0 }
 0x166   : > { %v251_v22 = vpop.f32.mrb[2].mxu0 }
 0x167   : > { %v254_v23 = vmax.f32 %v249_v20, 0.0  ;;  %v332_v24 = vpop.f32.mrb[3].mxu0 }
 0x169   : > { %v255_v25 = vpack.c.bf16 %v254_v23, %v254_v23 }
 0x16b   : > { %257 = vst.msk [vmem:[%s168_s27] sm:$0xf] %vm256_vm6, %v255_v25 }
 0x16c PF: > { %s13_s12 = sadd.s32 1, %s353_s12  }
 0x16d   : > { %p10_p4 = scmp.ge.s32.totalorder %s13_s12, 4  }
 0x16f   :  { %12 = sbr.rel (!%p10_p4) target bundleno = 1 (0x1), region = 62 }

// kernel: forward.15
= control target key start
LH: loop header
LB: loop body
LE: loop exit
PB: predicated region body
PF: predicated region fallthrough
CT: control target
= control target key end

     0   :  { %s666_s12 = smov 0   ;;  %s751_s0 = inlined_call_operand.vmem [shape: bf16[2,14,42], index: 0, kind: input, shape index: {}]   ;;  %s752_s1 = inlined_call_operand.vmem [shape: bf16[294,64], index: 1, kind: input, shape index: {}]   ;;  %s753_s2 = inlined_call_operand.vmem [shape: f32[1,64], index: 2, kind: input, shape index: {}]   ;;  %s754_s3 = inlined_call_operand.vmem [shape: bf16[2,8,64], index: 3, kind: output, shape index: {}]  }
   0x1 LB: > { %s525_s13 = sadd.s32 4294967295, %s636_s12   ;;  %p529_p0 = scmp.ge.s32.totalorder %s636_s12, 1  ;;  %s636_s12 = sphi %s666_s12, %s13_s12  }
   0x2   : > { %p137_p1 = scmp.lt.s32.totalorder %s636_s12, 3 }
   0x4   : > { %p138_p2 = pnand %p529_p0, %p137_p1 }
   0x5   : > { %p160_p3 = scmp.lt.s32.totalorder (!%p138_p2), %s525_s13, 1  ;;  %v611_v0 = vld [vmem:[%s752_s1 + $0x40] sm:$0xff] (!%p138_p2)   ;;  %v613_v2 = vld [vmem:[%s752_s1 + $0x48] sm:$0xff] (!%p138_p2)   ;;  %v615_v4 = vld [vmem:[%s752_s1 + $0x50] sm:$0xff] (!%p138_p2)   ;;  %v638_v9 = vmov (!%p138_p2), 0.0   ;;  %s639_s7 = smov (!%p138_p2), 40  }
   0x6   : > { %141 = sbr.rel (%p138_p2) target bundleno = 374 (0x176), region = 32  ;;  %v612_v1 = vld [vmem:[%s752_s1] sm:$0xff] (!%p138_p2)   ;;  %558 = vmatprep.subr.bf16.mxu0 (!%p138_p2), %v611_v0  ;;  %v614_v3 = vld [vmem:[%s752_s1 + $0x8] sm:$0xff] (!%p138_p2)   ;;  %v616_v8 = vld [vmem:[%s752_s1 + $0x10] sm:$0xff] (!%p138_p2)   ;;  %584 = vmatprep.subr.bf16.mxu1 (!%p138_p2), %v638_v9  ;;  %s640_s14 = smov (!%p138_p2), 126   ;;  %vm642_vm0 = vmmov (!%p138_p2), 0  }
   0x7   : > { %559 = vmatpush3.bf16.msra.mxu0 (!%p138_p2), %v612_v1  ;;  %v617_v13 = vld [vmem:[%s752_s1 + $0x58] sm:$0xff] (!%p138_p2)   ;;  %v619_v19 = vld [vmem:[%s752_s1 + $0x60] sm:$0xff] (!%p138_p2)   ;;  %s641_s15 = smov (!%p138_p2), 42   ;;  %v624_v27 = vld [vmem:[%s752_s1 + $0x88] sm:$0xff] (!%p138_p2)   ;;  %590 = vmatprep.mubr.msk.bf16.mxu1 (!%p138_p2), %vm642_vm0, %v638_v9  ;;  %vm384_vm1 = vcmask (!%p138_p2), 1042432   ;;  %s643_s22 = smov (!%p138_p2), 84  }
   0x8   : > { %560 = vmatprep.subr.bf16.mxu0 (!%p138_p2), %v613_v2  ;;  %v618_v14 = vld [vmem:[%s752_s1 + $0x18] sm:$0xff] (!%p138_p2)   ;;  %v621_v21 = vld [vmem:[%s752_s1 + $0x80] sm:$0xff] (!%p138_p2)   ;;  %v622_v28 = vld [vmem:[%s752_s1 + $0x68] sm:$0xff] (!%p138_p2)   ;;  %s644_s23 = smov (!%p138_p2), 82   ;;  %s645_s30 = smov (!%p138_p2), 124   ;;  %vm205_vm2 = vcmask (!%p138_p2), 343040  }
   0x9   : > { %585 = vmatpush3.bf16.msra.mxu1 (!%p138_p2), %v621_v21  ;;  %v620_v26 = vld [vmem:[%s752_s1 + $0x20] sm:$0xff] (!%p138_p2)   ;;  %v627_v30 = vld [vmem:[%s752_s1 + $0x90] ss:$0 sps:$4 sm:$0x77] (!%p138_p2)   ;;  %v623_v31 = vld [vmem:[%s752_s1 + $0x28] sm:$0xff] (!%p138_p2)   ;;  %vm216_vm3 = vcmask (!%p138_p2), 326656  }
   0xa   : > { %586 = vmatprep.subr.bf16.mxu1 (!%p138_p2), %v638_v9  ;;  %v625_v32 = vld [vmem:[%s752_s1 + $0x70] sm:$0xff] (!%p138_p2)   ;;  %v386_v33 = vsel (!%p138_p2), %vm384_vm1, %v627_v30, 0  ;;  %v628_v35 = vld [vmem:[%s752_s1 + $0x78] sm:$0xff] (!%p138_p2)   ;;  %vm209_vm4 = vcmask (!%p138_p2), 687104   ;;  %vm219_vm5 = vcmask (!%p138_p2), 670720   ;;  %vm381_vm6 = vcmask (!%p138_p2), 310272  }
   0xb   : > { %561 = vmatpush3.bf16.msra.mxu0 (!%p138_p2), %v614_v3  ;;  %v626_v34 = vld [vmem:[%s752_s1 + $0x30] sm:$0xff] (!%p138_p2)   ;;  %v629_v36 = vld [vmem:[%s752_s1 + $0x38] sm:$0xff] (!%p138_p2)   ;;  %vm222_vm7 = vcmask (!%p138_p2), 1014784   ;;  %vm212_vm8 = vcmask (!%p138_p2), 1031168   ;;  %v534_v53 = vld [vmem:[%s753_s2] ss:$0 sm:$0xff] (!%p138_p2) }
   0xc   : > { %562 = vmatprep.subr.bf16.mxu0 (!%p138_p2), %v615_v4  ;;  %vm470_vm9 = vcmask (!%p138_p2), 519168  }
   0xd   : > { %s756_s13 = smov (!%p160_p3, %s525_s13), 1  ;;  %587 = vmatpush3.bf16.msra.mxu1 %v624_v27 }
   0xe   : > { %s557_s20 = sshll.u32 %s756_s13, 3  ;;  %588 = vmatprep.subr.bf16.mxu1 %v638_v9 }
   0xf   : > { %s164_s27 = scalar_lea.vmem %s751_s0, %s557_s20  ;;  %563 = vmatpush3.bf16.msra.mxu0 %v616_v8 }
  0x10   : > { %v695_v5 = vld [vmem:[%s164_s27] sm:$0xf]  ;;  %v171_v6 = vld [vmem:[%s164_s27 + $0x4] sm:$0x7]  ;;  %564 = vmatprep.subr.bf16.mxu0 %v617_v13 }
  0x11   : > { %v533_v7 = vcombine.low %v695_v5, %v171_v6  ;;  %589 = vmatpush3.bf16.msra.mxu1 %v386_v33 }
  0x13   : > { %v194_v10 = vrot.slane %v533_v7, 2  ;;  %v178_v11 = vshrl.u32 %v533_v7, 16  ;;  %v180_v12 = vshll.u32 %v533_v7, 16  ;;  %v186_v24 = vrot.slane %v533_v7, 1  ;;  %565 = vmatpush3.bf16.msra.mxu0 %v618_v14 }
  0x14   : > { %566 = vmatprep.subr.bf16.mxu0 %v619_v19  ;;  %v202_v29 = vrot.slane %v533_v7, 3 }
  0x15   : > { %195 = vrot.lane.b32.xlu0 %v194_v10, %s639_s7  ;;  %v189_v15 = vrot.slane %v178_v11, 1  ;;  %v190_v16 = vrot.slane %v180_v12, 2  ;;  %v182_v17 = vrot.slane %v180_v12, 1  ;;  %v197_v18 = vrot.slane %v178_v11, 2 }
  0x16   : > { %v198_v20 = vrot.slane %v180_v12, 3 }
  0x17   : > { %v191_v22 = vor.u32 %v190_v16, %v189_v15  ;;  %v183_v23 = vor.u32 %v182_v17, %v178_v11  ;;  %567 = vmatpush3.bf16.msra.mxu0 %v620_v26 }
  0x18   : > { %v199_v25 = vor.u32 %v198_v20, %v197_v18  ;;  %568 = vmatprep.subr.bf16.mxu0 %v622_v28 }
  0x19   : > { %192 = vrot.lane.b32.xlu0 %v191_v22, %s640_s14  ;;  %184 = vrot.lane.b32.xlu1 %v183_v23, %s641_s15  ;;  %s532_s14 = sshll.u32 %s756_s13, 2 }
  0x1a   : > { %s168_s17 = scalar_lea.vmem %s754_s3, %s532_s14 }
  0x1b   : > { %569 = vmatpush3.bf16.msra.mxu0 %v623_v31 }
  0x1c   : > { %570 = vmatprep.subr.bf16.mxu0 %v625_v32 }
  0x1d   : > { %187 = vrot.lane.b32.xlu0 %v186_v24, %s643_s22  ;;  %200 = vrot.lane.b32.xlu1 %v199_v25, %s644_s23 }
  0x1f   : > { %571 = vmatpush3.bf16.msra.mxu0 %v626_v34 }
  0x20   : > { %572 = vmatprep.subr.bf16.mxu0 %v628_v35 }
  0x21   : > { %203 = vrot.lane.b32.xlu1 %v202_v29, %s645_s30 }
  0x23   : > { %573 = vmatpush3.bf16.msra.mxu0 %v629_v36 }
  0x87   : > { %v196_v37 = vpop.permute.xlu0 %195 }
  0x8b   : > { %v193_v38 = vpop.permute.xlu0 %192  ;;  %v185_v39 = vpop.permute.xlu1 %184 }
  0x8c   : > { %v208_v42 = vsel %vm205_vm2, %v695_v5, %v185_v39  ;;  %v218_v43 = vsel %vm216_vm3, %v193_v38, %v196_v37 }
  0x8f   : > { %v188_v40 = vpop.permute.xlu0 %187  ;;  %v201_v41 = vpop.permute.xlu1 %200 }
  0x90   : > { %v211_v44 = vsel %vm209_vm4, %v208_v42, %v188_v40  ;;  %v221_v45 = vsel %vm219_vm5, %v218_v43, %v201_v41 }
  0x91   : > { %v214_v48 = vsel %vm212_vm8, %v211_v44, %v193_v38 }
  0x93   : > { %v204_v46 = vpop.permute.xlu1 %203 }
  0x94   : > { %591 = vmatmul.mubr.msk.bf16.vlgmr.msra.gmra.mrb[0].mxu1 %vm381_vm6, %v204_v46  ;;  %v224_v47 = vsel %vm222_vm7, %v221_v45, %v204_v46 }
  0x95   : > { %420 = vmatprep.mubr.bf16.mxu0 %v224_v47 }
  0x96   : > { %421 = vmatmul.mubr.bf16.vlgmr.msra.gmra.mrb[0].mxu0 %v214_v48 }
 0x167   : > { %v462_v49 = vpop.f32.mrb[0].mxu1 }
 0x168   : > { %v592_v50 = vpop.f32.mrb[1].mxu1 }
 0x169   : > { %v574_v51 = vpop.f32.mrb[0].mxu0  ;;  %v465_v52 = vpop.f32.mrb[2].mxu1 }
 0x16a   : > { %v575_v54 = vpop.f32.mrb[1].mxu0  ;;  %v593_v55 = vpop.f32.mrb[3].mxu1 }
 0x16b   : > { %v576_v56 = vadd.f32 %v575_v54, %v574_v51  ;;  %v577_v57 = vpop.f32.mrb[2].mxu0 }
 0x16c   : > { %v578_v58 = vpop.f32.mrb[3].mxu0 }
 0x16d   : > { %v423_v59 = vadd.f32 %v576_v56, %v534_v53 }
 0x16f   : > { %v463_v60 = vadd.f32 %v462_v49, %v423_v59 }
 0x171   : > { %v468_v61 = vmax.f32 %v463_v60, 0.0 }
 0x173   : > { %v469_v62 = vpack.c.bf16 %v468_v61, %v468_v61 }
 0x175   : > { %471 = vst.msk [vmem:[%s168_s17] sm:$0xf] %vm470_vm9, %v469_v62 }
 0x176 PF: > { %s13_s12 = sadd.s32 1, %s636_s12  }
 0x177   : > { %p10_p4 = scmp.ge.s32.totalorder %s13_s12, 4  }
 0x179   :  { %12 = sbr.rel (!%p10_p4) target bundleno = 1 (0x1), region = 62 }

// kernel: forward.16
= control target key start
LH: loop header
LB: loop body
LE: loop exit
PB: predicated region body
PF: predicated region fallthrough
CT: control target
= control target key end

     0   :  { %vm32_vm0 = vcmask 523264   ;;  %vm39_vm1 = vcmask 517120   ;;  %vm107_vm2 = vcmask 519168   ;;  %vm110_vm3 = vcmask 516096   ;;  %s196_s0 = inlined_call_operand.vmem [shape: bf16[18,64], index: 0, kind: input, shape index: {}]   ;;  %s197_s1 = inlined_call_operand.vmem [shape: bf16[18,64], index: 1, kind: input, shape index: {}]   ;;  %s198_s2 = inlined_call_operand.vmem [shape: f32[1,64], index: 2, kind: input, shape index: {}]   ;;  %s199_s3 = inlined_call_operand.vmem [shape: f32[1,64], index: 3, kind: input, shape index: {}]   ;;  %s200_s4 = inlined_call_operand.vmem [shape: bf16[18,64], index: 4, kind: output, shape index: {}]  }
   0x1   :  { %v125_v0 = vld [vmem:[%s196_s0] sm:$0xff]   ;;  %v19_v2 = vld [vmem:[%s196_s0 + $0x8] sm:$0x1] }
   0x2   :  { %v129_v1 = vld [vmem:[%s197_s1] sm:$0xff]   ;;  %v126_v3 = vunpack.c.l.bf16 %v125_v0  ;;  %v22_v5 = vunpack.c.l.bf16 %v19_v2  ;;  %v25_v6 = vld [vmem:[%s197_s1 + $0x8] sm:$0x1]  ;;  %v127_v7 = vunpack.c.h.bf16 %v125_v0 }
   0x3   :  { %v130_v4 = vunpack.c.l.bf16 %v129_v1  ;;  %v28_v8 = vunpack.c.l.bf16 %v25_v6  ;;  %v131_v9 = vunpack.c.h.bf16 %v129_v1  ;;  %v116_v41 = vld [vmem:[%s198_s2] ss:$0 sm:$0xff] }
   0x4   :  { %v117_v43 = vld [vmem:[%s199_s3] ss:$0 sm:$0xff] }
   0x5   :  { %v29_v10 = vadd.f32 %v130_v4, %v126_v3  ;;  %v31_v11 = vadd.f32 %v28_v8, %v22_v5  ;;  %v30_v12 = vadd.f32 %v131_v9, %v127_v7 }
   0x7   :  { %v33_v13 = vsel %vm32_vm0, %v29_v10, 0.0  ;;  %v40_v14 = vsel %vm39_vm1, %v31_v11, 0.0  ;;  %v36_v15 = vsel %vm32_vm0, %v30_v12, 0.0 }
   0x8   :  { %34 = vadd.xlane.f32.xlu0 %v33_v13  ;;  %41 = vadd.xlane.f32.xlu1 %v40_v14 }
   0xc   :  { %37 = vadd.xlane.f32.xlu0 %v36_v15 }
  0x95   :  { %v35_v16 = vpop.xlane.xlu0 %34  ;;  %v42_v18 = vpop.xlane.xlu1 %41 }
  0x96   :  { %v44_v17 = vmul.f32 0.015625, %v35_v16  ;;  %v46_v19 = vmul.f32 0.015625, %v42_v18 }
  0x98   :  { %v47_v20 = vsub.f32 %v29_v10, %v44_v17  ;;  %v49_v21 = vsub.f32 %v31_v11, %v46_v19 }
  0x99   :  { %v38_v22 = vpop.xlane.xlu0 %37 }
  0x9a   :  { %v45_v23 = vmul.f32 0.015625, %v38_v22  ;;  %v50_v24 = vmul.f32 %v47_v20, %v47_v20  ;;  %v52_v25 = vmul.f32 %v49_v21, %v49_v21 }
  0x9c   :  { %v48_v26 = vsub.f32 %v30_v12, %v45_v23  ;;  %v53_v27 = vsel %vm32_vm0, %v50_v24, 0.0  ;;  %v59_v28 = vsel %vm39_vm1, %v52_v25, 0.0 }
  0x9d   :  { %54 = vadd.xlane.f32.xlu1 %v53_v27 }
  0x9e   :  { %v51_v29 = vmul.f32 %v48_v26, %v48_v26 }
  0xa0   :  { %v56_v30 = vsel %vm32_vm0, %v51_v29, 0.0 }
  0xa1   :  { %60 = vadd.xlane.f32.xlu1 %v59_v28  ;;  %57 = vadd.xlane.f32.xlu0 %v56_v30 }
 0x12a   :  { %v55_v31 = vpop.xlane.xlu1 %54 }
 0x12b   :  { %v62_v32 = vmul.f32 0.015625, %v55_v31 }
 0x12d   :  { %v65_v33 = vadd.f32 1e-12, %v62_v32 }
 0x12e   :  { %v61_v34 = vpop.xlane.xlu1 %60  ;;  %v58_v35 = vpop.xlane.xlu0 %57 }
 0x12f   :  { %132 = vrsqrt.f32 %v65_v33  ;;  %v64_v36 = vmul.f32 0.015625, %v61_v34  ;;  %v63_v37 = vmul.f32 0.015625, %v58_v35 }
 0x131   :  { %v67_v38 = vadd.f32 1e-12, %v64_v36  ;;  %v66_v39 = vadd.f32 1e-12, %v63_v37 }
 0x133   :  { %134 = vrsqrt.f32 %v67_v38 }
 0x134   :  { %136 = vrsqrt.f32 %v66_v39 }
 0x139   :  { %v133_v40 = vpop.eup %132 }
 0x13a   :  { %v71_v42 = vmul.f32 %v133_v40, %v47_v20 }
 0x13c   :  { %v81_v44 = vmul.f32 %v116_v41, %v71_v42 }
 0x13d   :  { %v135_v45 = vpop.eup %134 }
 0x13e   :  { %v137_v46 = vpop.eup %136  ;;  %v91_v47 = vadd.f32 %v117_v43, %v81_v44  ;;  %v73_v48 = vmul.f32 %v135_v45, %v49_v21 }
 0x13f   :  { %v72_v49 = vmul.f32 %v137_v46, %v48_v26 }
 0x140   :  { %v121_v50 = vpack.c.bf16 %v91_v47, %v91_v47  ;;  %v83_v51 = vmul.f32 %v116_v41, %v73_v48 }
 0x141   :  { %v82_v52 = vmul.f32 %v116_v41, %v72_v49 }
 0x142   :  { %108 = vst.msk [vmem:[%s200_s4] sm:$0xf] %vm107_vm2, %v121_v50  ;;  %v93_v53 = vadd.f32 %v117_v43, %v83_v51 }
 0x143   :  { %v92_v54 = vadd.f32 %v117_v43, %v82_v52 }
 0x144   :  { %v123_v55 = vpack.c.bf16 %v93_v53, %v93_v53 }
 0x145   :  { %v122_v56 = vpack.c.bf16 %v92_v54, %v92_v54 }
 0x146   :  { %111 = vst.msk [vmem:[%s200_s4 + $0x8] sm:$0x1] %vm110_vm3, %v123_v55 }
 0x147   :  { %109 = vst.msk [vmem:[%s200_s4 + $0x4] sm:$0xf] %vm107_vm2, %v122_v56 }

// kernel: forward.17
= control target key start
LH: loop header
LB: loop body
LE: loop exit
PB: predicated region body
PF: predicated region fallthrough
CT: control target
= control target key end

     0   :  { %v256_v1 = vmov 0   ;;  %v257_v2 = vmov 0.0   ;;  %vm90_vm0 = vcmask 523264   ;;  %v171_v12 = vlaneseq  ;;  %s320_s1 = inlined_call_operand.vmem [shape: bf16[64,256], index: 1, kind: input, shape index: {}]   ;;  %s321_s0 = inlined_call_operand.vmem [shape: bf16[18,64], index: 0, kind: input, shape index: {}]   ;;  %s322_s2 = inlined_call_operand.vmem [shape: f32[1,256], index: 2, kind: input, shape index: {}]   ;;  %s323_s3 = inlined_call_operand.vmem [shape: bf16[18,256], index: 3, kind: output, shape index: {}]  }
   0x1   :  { %v242_v0 = vld [vmem:[%s320_s1 + $0x4] ss:$8 sps:$4 sm:$0xff]   ;;  %129 = vmatprep.mubr.bf16.mxu0 %v256_v1  ;;  %139 = vmatprep.mubr.bf16.mxu1 %v256_v1  ;;  %23 = vst [vmem:[#allocation2 + $0x20] sm:$0x3] %v257_v2  ;;  %24 = vst [vmem:[#allocation2 + $0x28] sm:$0x3] %v257_v2 }
   0x2   :  { %v244_v3 = vld [vmem:[%s320_s1] ss:$8 sps:$4 sm:$0xff]   ;;  %97 = vmatprep.subr.bf16.mxu0 %v242_v0  ;;  %232 = vmatprep.subr.bf16.mxu1 %v242_v0  ;;  %v245_v4 = vld [vmem:[%s320_s1 + $0x14] ss:$8 sps:$4 sm:$0xff]   ;;  %v247_v5 = vld [vmem:[%s320_s1 + $0x10] ss:$8 sps:$4 sm:$0xff]  }
   0x3   :  { %98 = vmatpush1.bf16.msra.mxu0 %v244_v3  ;;  %236 = vmatpush1.bf16.msra.mxu1 %v244_v3  ;;  %v248_v6 = vld [vmem:[%s320_s1 + $0x24] ss:$8 sps:$4 sm:$0xff]   ;;  %v250_v7 = vld [vmem:[%s320_s1 + $0x20] ss:$8 sps:$4 sm:$0xff]   ;;  %v251_v8 = vld [vmem:[%s320_s1 + $0x34] ss:$8 sps:$4 sm:$0xff]  }
   0x4   :  { %99 = vmatprep.subr.bf16.mxu0 %v245_v4  ;;  %233 = vmatprep.subr.bf16.mxu1 %v245_v4  ;;  %v253_v9 = vld [vmem:[%s320_s1 + $0x30] ss:$8 sps:$4 sm:$0xff]   ;;  %v254_v10 = vld [vmem:[%s321_s0] sm:$0xff]   ;;  %v255_v11 = vld [vmem:[%s321_s0 + $0x8] ss:$0 sps:$4 sm:$0x11]  }
   0x5   :  { %v172_v13 = vshrl.u32 %v171_v12, 7  ;;  %v169_v15 = vld [vmem:[%s322_s2] sm:$0x3] }
   0x7   :  { %100 = vmatpush1.bf16.msra.mxu0 %v247_v5  ;;  %237 = vmatpush1.bf16.msra.mxu1 %v247_v5  ;;  %v173_v14 = vsub.s32 0, %v172_v13  ;;  %v177_v16 = vsub.s32 1, %v172_v13 }
   0x8   :  { %101 = vmatprep.subr.bf16.mxu0 %v248_v6  ;;  %234 = vmatprep.subr.bf16.mxu1 %v248_v6  ;;  %v29_v17 = vld [vmem:[#allocation2 + $0x20] sm:$0x3]  ;;  %v30_v19 = vld [vmem:[#allocation2 + $0x28] sm:$0x3] }
   0x9   :  { %v174_v18 = vrot.slane %v169_v15, %v173_v14  ;;  %v178_v22 = vrot.slane %v169_v15, %v177_v16 }
   0xb   :  { %102 = vmatpush1.bf16.msra.mxu0 %v250_v7  ;;  %238 = vmatpush1.bf16.msra.mxu1 %v250_v7 }
   0xc   :  { %103 = vmatprep.subr.bf16.mxu0 %v251_v8  ;;  %235 = vmatprep.subr.bf16.mxu1 %v251_v8 }
   0xf   :  { %104 = vmatpush1.bf16.msra.mxu0 %v253_v9  ;;  %239 = vmatpush1.bf16.msra.mxu1 %v253_v9 }
  0x12   :  { %224 = vmatmul.mubr.msk.bf16.vlgmr.msra.gmra.mrb[0].mxu0 %vm90_vm0, %v254_v10  ;;  %225 = vmatmul.mubr.msk.bf16.vlgmr.msra.gmra.mrb[0].mxu1 %vm90_vm0, %v255_v11 }
  0xe5   :  { %v131_v20 = vpop.f32.mrb[0].mxu0  ;;  %v141_v21 = vpop.f32.mrb[0].mxu1 }
  0xe6   :  { %v152_v23 = vadd.f32 %v141_v21, %v29_v17  ;;  %v133_v24 = vpop.f32.mrb[1].mxu0  ;;  %v143_v25 = vpop.f32.mrb[1].mxu1  ;;  %v181_v29 = vadd.f32 %v174_v18, %v131_v20 }
  0xe7   :  { %v153_v26 = vadd.f32 %v143_v25, %v30_v19  ;;  %v135_v27 = vpop.f32.mrb[2].mxu0  ;;  %v145_v28 = vpop.f32.mrb[2].mxu1  ;;  %v182_v32 = vadd.f32 %v178_v22, %v133_v24 }
  0xe8   :  { %158 = vst [vmem:[#allocation2 + $0x20] sm:$0x3] %v152_v23  ;;  %v137_v30 = vpop.f32.mrb[3].mxu0  ;;  %v146_v31 = vpop.f32.mrb[3].mxu1  ;;  %v183_v33 = vadd.f32 %v174_v18, %v135_v27 }
  0xe9   :  { %159 = vst [vmem:[#allocation2 + $0x28] sm:$0x3] %v153_v26  ;;  %v229_v34 = vpack.c.bf16 %v182_v32, %v181_v29  ;;  %v184_v35 = vadd.f32 %v178_v22, %v137_v30 }
  0xeb   :  { %207 = vst [vmem:[%s323_s3] sm:$0xff] %v229_v34  ;;  %v230_v36 = vpack.c.bf16 %v184_v35, %v183_v33 }
  0xed   :  { %208 = vst [vmem:[%s323_s3 + $0x8] sm:$0xff] %v230_v36 }
  0xef   :  { %v167_v37 = vld [vmem:[#allocation2 + $0x20] sm:$0x3] }
  0xf0   :  { %v185_v38 = vadd.f32 %v174_v18, %v167_v37  ;;  %v168_v39 = vld [vmem:[#allocation2 + $0x28] sm:$0x3] }
  0xf1   :  { %v186_v40 = vadd.f32 %v178_v22, %v168_v39 }
  0xf3   :  { %v231_v41 = vpack.c.bf16 %v186_v40, %v185_v38 }
  0xf5   :  { %209 = vst [vmem:[%s323_s3 + $0x10] sm:$0x11] %v231_v41 }

// kernel: forward.19
= control target key start
LH: loop header
LB: loop body
LE: loop exit
PB: predicated region body
PF: predicated region fallthrough
CT: control target
= control target key end

     0   :  { %vm28_vm0 = vcmask 523264   ;;  %vm31_vm1 = vcmask 517120   ;;  %v300_v1 = vmov 0.0   ;;  %vm239_vm2 = vcmask 519168   ;;  %s392_s1 = inlined_call_operand.vmem [shape: bf16[64,64], index: 1, kind: input, shape index: {}]   ;;  %s393_s0 = inlined_call_operand.vmem [shape: bf16[18,64], index: 0, kind: input, shape index: {}]   ;;  %s394_s3 = inlined_call_operand.vmem [shape: bf16[18,64], index: 3, kind: input, shape index: {}]   ;;  %s395_s2 = inlined_call_operand.vmem [shape: f32[1,64], index: 2, kind: input, shape index: {}]   ;;  %s396_s4 = inlined_call_operand.vmem [shape: f32[1,64], index: 4, kind: input, shape index: {}]   ;;  %s397_s5 = inlined_call_operand.vmem [shape: f32[1,64], index: 5, kind: input, shape index: {}]   ;;  %s398_s6 = inlined_call_operand.vmem [shape: bf16[18,64], index: 6, kind: output, shape index: {}]  }
   0x1   :  { %v288_v0 = vld [vmem:[%s392_s1] sm:$0xff]   ;;  %32 = vst.msk [vmem:[#allocation2 + $0x10] sm:$0x3] %vm31_vm1, %v300_v1  ;;  %v289_v2 = vld [vmem:[%s392_s1 + $0x8] sm:$0xff]   ;;  %v290_v3 = vld [vmem:[%s392_s1 + $0x10] sm:$0xff]   ;;  %vm242_vm3 = vcmask 516096  }
   0x2   :  { %29 = vst.msk [vmem:[#allocation2] sm:$0xff] %vm28_vm0, %v300_v1  ;;  %30 = vst.msk [vmem:[#allocation2 + $0x8] sm:$0xff] %vm28_vm0, %v300_v1  ;;  %275 = vmatprep.subr.bf16.mxu0 %v288_v0  ;;  %v292_v4 = vld [vmem:[%s393_s0] sm:$0xff]   ;;  %v291_v5 = vld [vmem:[%s392_s1 + $0x18] sm:$0xff]  }
   0x3   :  { %276 = vmatpush3.bf16.msra.mxu0 %v288_v0  ;;  %283 = vmatprep.mubr.msk.bf16.mxu0 %vm28_vm0, %v292_v4  ;;  %v293_v6 = vld [vmem:[%s393_s0 + $0x8] ss:$0 sps:$4 sm:$0x11]   ;;  %v266_v18 = vld [vmem:[%s394_s3] sm:$0xff]  }
   0x4   :  { %277 = vmatprep.subr.bf16.mxu0 %v289_v2  ;;  %v159_v17 = vld [vmem:[%s394_s3 + $0x8] sm:$0x1]  ;;  %v256_v19 = vld [vmem:[%s395_s2] ss:$0 sm:$0xff]  ;;  %v267_v22 = vunpack.c.l.bf16 %v266_v18  ;;  %v268_v26 = vunpack.c.h.bf16 %v266_v18 }
   0x5   :  { %v162_v20 = vunpack.c.l.bf16 %v159_v17  ;;  %v257_v60 = vld [vmem:[%s396_s4] ss:$0 sm:$0xff] }
   0x6   :  { %v258_v62 = vld [vmem:[%s397_s5] ss:$0 sm:$0xff] }
   0x7   :  { %278 = vmatpush3.bf16.msra.mxu0 %v289_v2 }
   0x8   :  { %279 = vmatprep.subr.bf16.mxu0 %v290_v3  ;;  %v35_v7 = vld [vmem:[#allocation2 + $0x10] sm:$0x3] }
   0x9   :  { %v33_v8 = vld [vmem:[#allocation2] sm:$0xff]  ;;  %v34_v12 = vld [vmem:[#allocation2 + $0x8] sm:$0xff] }
   0xb   :  { %280 = vmatpush3.bf16.msra.mxu0 %v290_v3 }
   0xc   :  { %281 = vmatprep.subr.bf16.mxu0 %v291_v5 }
   0xf   :  { %282 = vmatpush3.bf16.msra.mxu0 %v291_v5 }
  0x12   :  { %284 = vmatmul.mubr.msk.bf16.vlgmr.msra.gmra.mrb[0].mxu0 %vm28_vm0, %v293_v6 }
  0xe5   :  { %v285_v9 = vpop.f32.mrb[0].mxu0 }
  0xe6   :  { %v136_v10 = vadd.f32 %v285_v9, %v35_v7  ;;  %v120_v11 = vpop.f32.mrb[1].mxu0 }
  0xe7   :  { %v134_v13 = vadd.f32 %v120_v11, %v33_v8  ;;  %v286_v14 = vpop.f32.mrb[2].mxu0 }
  0xe8   :  { %140 = vst.msk [vmem:[#allocation2 + $0x10] sm:$0x3] %vm31_vm1, %v136_v10  ;;  %v123_v15 = vpop.f32.mrb[3].mxu0 }
  0xe9   :  { %137 = vst.msk [vmem:[#allocation2] sm:$0xff] %vm28_vm0, %v134_v13  ;;  %v135_v16 = vadd.f32 %v123_v15, %v34_v12 }
  0xeb   :  { %138 = vst.msk [vmem:[#allocation2 + $0x8] sm:$0xff] %vm28_vm0, %v135_v16 }
  0xef   :  { %v146_v21 = vld [vmem:[#allocation2 + $0x10] sm:$0x3] }
  0xf0   :  { %v156_v23 = vadd.f32 %v256_v19, %v146_v21  ;;  %v144_v24 = vld [vmem:[#allocation2] sm:$0xff] }
  0xf1   :  { %v154_v25 = vadd.f32 %v256_v19, %v144_v24 }
  0xf2   :  { %v165_v27 = vadd.f32 %v162_v20, %v156_v23  ;;  %v145_v28 = vld [vmem:[#allocation2 + $0x8] sm:$0xff] }
  0xf3   :  { %v163_v29 = vadd.f32 %v267_v22, %v154_v25  ;;  %v155_v30 = vadd.f32 %v256_v19, %v145_v28 }
  0xf4   :  { %v172_v31 = vsel %vm31_vm1, %v165_v27, 0.0 }
  0xf5   :  { %173 = vadd.xlane.f32.xlu1 %v172_v31  ;;  %v166_v32 = vsel %vm28_vm0, %v163_v29, 0.0  ;;  %v164_v33 = vadd.f32 %v268_v26, %v155_v30 }
  0xf6   :  { %167 = vadd.xlane.f32.xlu0 %v166_v32 }
  0xf7   :  { %v169_v34 = vsel %vm28_vm0, %v164_v33, 0.0 }
  0xfa   :  { %170 = vadd.xlane.f32.xlu0 %v169_v34 }
 0x182   :  { %v174_v35 = vpop.xlane.xlu1 %173 }
 0x183   :  { %v178_v36 = vmul.f32 0.015625, %v174_v35  ;;  %v168_v37 = vpop.xlane.xlu0 %167 }
 0x184   :  { %v176_v38 = vmul.f32 0.015625, %v168_v37 }
 0x185   :  { %v181_v39 = vsub.f32 %v165_v27, %v178_v36 }
 0x186   :  { %v179_v40 = vsub.f32 %v163_v29, %v176_v38 }
 0x187   :  { %v171_v41 = vpop.xlane.xlu0 %170  ;;  %v184_v46 = vmul.f32 %v181_v39, %v181_v39 }
 0x188   :  { %v177_v42 = vmul.f32 0.015625, %v171_v41  ;;  %v182_v43 = vmul.f32 %v179_v40, %v179_v40 }
 0x189   :  { %v191_v48 = vsel %vm31_vm1, %v184_v46, 0.0 }
 0x18a   :  { %v180_v44 = vsub.f32 %v164_v33, %v177_v42  ;;  %v185_v45 = vsel %vm28_vm0, %v182_v43, 0.0 }
 0x18b   :  { %186 = vadd.xlane.f32.xlu1 %v185_v45 }
 0x18c   :  { %v183_v47 = vmul.f32 %v180_v44, %v180_v44 }
 0x18e   :  { %v188_v49 = vsel %vm28_vm0, %v183_v47, 0.0 }
 0x18f   :  { %192 = vadd.xlane.f32.xlu1 %v191_v48  ;;  %189 = vadd.xlane.f32.xlu0 %v188_v49 }
 0x218   :  { %v187_v50 = vpop.xlane.xlu1 %186 }
 0x219   :  { %v194_v51 = vmul.f32 0.015625, %v187_v50 }
 0x21b   :  { %v197_v52 = vadd.f32 1e-12, %v194_v51 }
 0x21c   :  { %v193_v53 = vpop.xlane.xlu1 %192  ;;  %v190_v54 = vpop.xlane.xlu0 %189 }
 0x21d   :  { %294 = vrsqrt.f32 %v197_v52  ;;  %v196_v55 = vmul.f32 0.015625, %v193_v53  ;;  %v195_v56 = vmul.f32 0.015625, %v190_v54 }
 0x21f   :  { %v199_v57 = vadd.f32 1e-12, %v196_v55  ;;  %v198_v58 = vadd.f32 1e-12, %v195_v56 }
 0x221   :  { %296 = vrsqrt.f32 %v199_v57 }
 0x222   :  { %298 = vrsqrt.f32 %v198_v58 }
 0x227   :  { %v295_v59 = vpop.eup %294 }
 0x228   :  { %v203_v61 = vmul.f32 %v295_v59, %v179_v40 }
 0x22a   :  { %v213_v63 = vmul.f32 %v257_v60, %v203_v61 }
 0x22b   :  { %v297_v0 = vpop.eup %296 }
 0x22c   :  { %v299_v1 = vpop.eup %298  ;;  %v223_v2 = vadd.f32 %v258_v62, %v213_v63  ;;  %v205_v3 = vmul.f32 %v297_v0, %v181_v39 }
 0x22d   :  { %v204_v4 = vmul.f32 %v299_v1, %v180_v44 }
 0x22e   :  { %v262_v5 = vpack.c.bf16 %v223_v2, %v223_v2  ;;  %v215_v6 = vmul.f32 %v257_v60, %v205_v3 }
 0x22f   :  { %v214_v7 = vmul.f32 %v257_v60, %v204_v4 }
 0x230   :  { %240 = vst.msk [vmem:[%s398_s6] sm:$0xf] %vm239_vm2, %v262_v5  ;;  %v225_v8 = vadd.f32 %v258_v62, %v215_v6 }
 0x231   :  { %v224_v9 = vadd.f32 %v258_v62, %v214_v7 }
 0x232   :  { %v264_v10 = vpack.c.bf16 %v225_v8, %v225_v8 }
 0x233   :  { %v263_v11 = vpack.c.bf16 %v224_v9, %v224_v9 }
 0x234   :  { %243 = vst.msk [vmem:[%s398_s6 + $0x8] sm:$0x1] %vm242_vm3, %v264_v10 }
 0x235   :  { %241 = vst.msk [vmem:[%s398_s6 + $0x4] sm:$0xf] %vm239_vm2, %v263_v11 }

// kernel: forward.18
= control target key start
LH: loop header
LB: loop body
LE: loop exit
PB: predicated region body
PF: predicated region fallthrough
CT: control target
= control target key end

     0   :  { %s935_s6 = smov 0   ;;  %s1057_s0 = inlined_call_operand.vmem [shape: bf16[2,9,256], index: 0, kind: input, shape index: {}]   ;;  %s1058_s1 = inlined_call_operand.vmem [shape: bf16[2,9,64], index: 1, kind: output, shape index: {}]  }
   0x1 LB: > { %s751_s7 = sadd.s32 4294967295, %s913_s6   ;;  %p755_p0 = scmp.ge.s32.totalorder %s913_s6, 1  ;;  %s913_s6 = sphi %s935_s6, %s11_s6  }
   0x2   : > { %p87_p1 = scmp.lt.s32.totalorder %s913_s6, 3 }
   0x4   : > { %p88_p2 = pnand %p755_p0, %p87_p1 }
   0x5   : > { %p107_p3 = scmp.lt.s32.totalorder (!%p88_p2), %s751_s7, 1  ;;  %v915_v0 = vmov (!%p88_p2), 0.0   ;;  %vm916_vm0 = vmmov (!%p88_p2), 0   ;;  %s917_s12 = smov (!%p88_p2), 64   ;;  %vm127_vm1 = vcmask (!%p88_p2), 130048   ;;  %vm175_vm2 = vcmask (!%p88_p2), 72704  }
   0x6   : > { %91 = sbr.rel (%p88_p2) target bundleno = 1606 (0x646), region = 24  ;;  %806 = vmatprep.subr.bf16.mxu0 (!%p88_p2), %v915_v0  ;;  %808 = vmatprep.mubr.msk.bf16.mxu0 (!%p88_p2), %vm916_vm0, %v915_v0  ;;  %vm179_vm3 = vcmask (!%p88_p2), 65536   ;;  %s918_s13 = smov (!%p88_p2), 48   ;;  %vm206_vm4 = vcmask (!%p88_p2), 1043456   ;;  %vm207_vm5 = vcmask (!%p88_p2), 1044480   ;;  %v920_v21 = vmov (!%p88_p2), 65535  }
   0x7   : > { %812 = vmatprep.subr.bf16.mxu1 (!%p88_p2), %v915_v0  ;;  %814 = vmatprep.mubr.msk.bf16.mxu1 (!%p88_p2), %vm916_vm0, %v915_v0  ;;  %s919_s14 = smov (!%p88_p2), 96   ;;  %v208_v22 = vsel (!%p88_p2), %vm206_vm4, 4294967295, %v920_v21  ;;  %s921_s15 = smov (!%p88_p2), 112   ;;  %vm264_vm6 = vcmask (!%p88_p2), 122880   ;;  %vm265_vm7 = vsmask.f32 (!%p88_p2), 256 }
   0x8   : > { %v972_v23 = vsel (!%p88_p2), %vm207_vm5, %v208_v22, 0  ;;  %s922_s16 = smov (!%p88_p2), 32   ;;  %s923_s17 = smov (!%p88_p2), 16   ;;  %vm262_vm8 = vcmask (!%p88_p2), 125952   ;;  %vm266_vm9 = vmand (!%p88_p2), %vm264_vm6, %vm265_vm7  ;;  %vm407_vm10 = vcmask (!%p88_p2), 254080   ;;  %vm405_vm12 = vcmask (!%p88_p2), 257152  }
   0x9   : > { %s924_s18 = smov (!%p88_p2), 80   ;;  %vm408_vm11 = vmand (!%p88_p2), %vm407_vm10, %vm265_vm7  ;;  %vm549_vm13 = vcmask (!%p88_p2), 385280   ;;  %vm547_vm15 = vcmask (!%p88_p2), 388352  }
   0xa   : > { %vm550_vm14 = vmand (!%p88_p2), %vm549_vm13, %vm265_vm7 }
   0xd   : > { %s1060_s7 = smov (!%p107_p3, %s751_s7), 1 }
   0xe   : > { %s780_s8 = sshll.u32 %s1060_s7, 4  ;;  %s781_s19 = sshll.u32 %s1060_s7, 3 }
   0xf   : > { %s955_s11 = scalar_lea.vmem %s1057_s0, %s780_s8  ;;  %s1000_s22 = scalar_lea.vmem %s1058_s1, %s781_s19 }
  0x10   : > { %v872_v1 = vld [vmem:[%s955_s11] ss:$8 sps:$4 sm:$0x1f]   ;;  %v970_v20 = vld [vmem:[%s955_s11 + $0x4] ss:$8 sps:$4 sm:$0x1f]  }
  0x11   : > { %125 = vrot.lane.b32.xlu0 %v872_v1, %s917_s12  ;;  %v211_v24 = vand.u32 %v970_v20, %v972_v23  ;;  %v267_v45 = vld [vmem:[%s1000_s22 + $0x4] sm:$0x1] }
  0x13   : > { %813 = vmatpush3.bf16.msra.mxu1 %v211_v24 }
  0x14   : > { %818 = vmatprep.subr.bf16.mxu1 %v915_v0 }
  0x83   : > { %v126_v2 = vpop.permute.xlu0 %125 }
  0x84   : > { %v132_v3 = vsel %vm127_vm1, %v126_v2, 0 }
  0x85   : > { %807 = vmatpush3.bf16.xpose.msra.mxu0 %v132_v3 }
  0x86   : > { %824 = vmatprep.subr.bf16.mxu0 %v915_v0 }
  0x8c   : > { %809 = vmatmul.mubr.msk.bf16.vlgmr.msra.gmra.mrb[0].mxu0 %vm127_vm1, %v872_v1 }
  0x8d   : > { %826 = vmatprep.mubr.msk.bf16.mxu0 %vm916_vm0, %v915_v0 }
 0x15f   : > { %v168_v4 = vpop.f32.mrb[0].mxu0 }
 0x160   : > { %v810_v5 = vpop.f32.mrb[1].mxu0  ;;  %v176_v6 = vsel %vm175_vm2, %v168_v4, -inf }
 0x161   : > { %177 = vmax.xlane.f32.xlu0 %v176_v6  ;;  %v171_v7 = vpop.f32.mrb[2].mxu0 }
 0x162   : > { %v811_v8 = vpop.f32.mrb[3].mxu0  ;;  %v180_v9 = vsel %vm179_vm3, %v171_v7, -inf }
 0x163   : > { %181 = vmax.xlane.f32.xlu1 %v180_v9 }
 0x174   : > { %272 = vrot.lane.b32.xlu1 %v872_v1, %s918_s13 }
 0x177   : > { %412 = vrot.lane.b32.xlu0 %v872_v1, %s919_s14 }
 0x1ee   : > { %v178_v10 = vpop.xlane.xlu0 %177 }
 0x1ef   : > { %v183_v11 = vsub.f32 %v168_v4, %v178_v10 }
 0x1f0   : > { %v182_v12 = vpop.xlane.xlu1 %181 }
 0x1f1   : > { %v185_v13 = vmul.f32 1.442695, %v183_v11  ;;  %v184_v14 = vsub.f32 %v171_v7, %v182_v12 }
 0x1f2   : > { %v413_v38 = vpop.permute.xlu0 %412 }
 0x1f3   : > { %875 = vpow2.f32 %v185_v13  ;;  %v187_v15 = vmul.f32 1.442695, %v184_v14 }
 0x1f4   : > { %v273_v25 = vpop.permute.xlu1 %272 }
 0x1f5   : > { %877 = vpow2.f32 %v187_v15  ;;  %v278_v34 = vsel %vm127_vm1, %v273_v25, 0 }
 0x1fd   : > { %v876_v16 = vpop.eup %875 }
 0x1fe   : > { %v189_v17 = vsel %vm175_vm2, %v876_v16, 0.0 }
 0x1ff   : > { %v878_v18 = vpop.eup %877  ;;  %190 = vadd.xlane.f32.xlu1 %v189_v17 }
 0x200   : > { %v192_v19 = vsel %vm179_vm3, %v878_v18, 0.0 }
 0x203   : > { %193 = vadd.xlane.f32.xlu1 %v192_v19 }
 0x214   : > { %270 = vrot.lane.b32.xlu1 %v872_v1, %s921_s15 }
 0x218   : > { %414 = vrot.lane.b32.xlu1 %v872_v1, %s922_s16 }
 0x21c   : > { %556 = vrot.lane.b32.xlu1 %v872_v1, %s923_s17 }
 0x220   : > { %554 = vrot.lane.b32.xlu1 %v872_v1, %s924_s18 }
 0x28c   : > { %v191_v26 = vpop.xlane.xlu1 %190 }
 0x28d   : > { %879 = vrcp.f32 %v191_v26 }
 0x290   : > { %v194_v27 = vpop.xlane.xlu1 %193 }
 0x291   : > { %881 = vrcp.f32 %v194_v27 }
 0x294   : > { %v271_v32 = vpop.permute.xlu1 %270 }
 0x297   : > { %v880_v28 = vpop.eup %879 }
 0x298   : > { %v197_v30 = vmul.f32 %v880_v28, %v876_v16  ;;  %v415_v35 = vpop.permute.xlu1 %414 }
 0x299   : > { %v420_v36 = vsel %vm127_vm1, %v415_v35, 0 }
 0x29b   : > { %v882_v29 = vpop.eup %881 }
 0x29c   : > { %v198_v31 = vmul.f32 %v882_v29, %v878_v18  ;;  %v557_v37 = vpop.permute.xlu1 %556 }
 0x29d   : > { %v562_v39 = vsel %vm127_vm1, %v557_v37, 0 }
 0x29e   : > { %v199_v33 = vpack.c.bf16 %v198_v31, %v197_v30 }
 0x2a0   : > { %815 = vmatmul.mubr.msk.bf16.vlgmr.msra.gmra.mrb[0].mxu1 %vm175_vm2, %v199_v33  ;;  %v555_v40 = vpop.permute.xlu1 %554 }
 0x2a1   : > { %819 = vmatpush3.bf16.xpose.msra.mxu1 %v278_v34  ;;  %820 = vmatprep.mubr.msk.bf16.mxu1 %vm916_vm0, %v915_v0 }
 0x2a2   : > { %830 = vmatprep.subr.bf16.mxu1 %v915_v0 }
 0x2a8   : > { %821 = vmatmul.mubr.msk.bf16.vlgmr.msra.gmra.mrb[4].mxu1 %vm127_vm1, %v271_v32 }
 0x2a9   : > { %831 = vmatpush3.bf16.xpose.msra.mxu1 %v420_v36  ;;  %832 = vmatprep.mubr.msk.bf16.mxu1 %vm916_vm0, %v915_v0 }
 0x2aa   : > { %842 = vmatprep.subr.bf16.mxu1 %v915_v0 }
 0x2b0   : > { %833 = vmatmul.mubr.msk.bf16.vlgmr.msra.gmra.mrb[8].mxu1 %vm127_vm1, %v413_v38 }
 0x2b1   : > { %843 = vmatpush3.bf16.xpose.msra.mxu1 %v562_v39  ;;  %844 = vmatprep.mubr.msk.bf16.mxu1 %vm916_vm0, %v915_v0 }
 0x2b8   : > { %845 = vmatmul.mubr.msk.bf16.vlgmr.msra.gmra.mrb[12].mxu1 %vm127_vm1, %v555_v40  ;;  %vm689_vm1 = vcmask 519552  }
 0x373   : > { %v247_v41 = vpop.f32.mrb[0].mxu1 }
 0x374   : > { %v782_v42 = vpack.c.bf16 %v247_v41, %v247_v41  ;;  %v816_v43 = vpop.f32.mrb[1].mxu1 }
 0x375   : > { %v250_v44 = vpop.f32.mrb[2].mxu1 }
 0x376   : > { %263 = vst.msk [vmem:[%s1000_s22] sm:$0xf] %vm262_vm8, %v782_v42  ;;  %v783_v46 = vpack.c.bf16 %v250_v44, %v250_v44  ;;  %v817_v47 = vpop.f32.mrb[3].mxu1 }
 0x378   : > { %v268_v48 = vsel %vm266_vm9, %v783_v46, %v267_v45 }
 0x379   : > { %269 = vst [vmem:[%s1000_s22 + $0x4] sm:$0x1] %v268_v48 }
 0x37b   : > { %v314_v49 = vpop.f32.mrb[4].mxu1 }
 0x37c   : > { %v822_v50 = vpop.f32.mrb[5].mxu1  ;;  %v321_v51 = vsel %vm175_vm2, %v314_v49, -inf }
 0x37d   : > { %322 = vmax.xlane.f32.xlu1 %v321_v51  ;;  %v317_v52 = vpop.f32.mrb[6].mxu1 }
 0x37e   : > { %v823_v53 = vpop.f32.mrb[7].mxu1  ;;  %v324_v54 = vsel %vm179_vm3, %v317_v52, -inf }
 0x37f   : > { %325 = vmax.xlane.f32.xlu0 %v324_v54 }
 0x383   : > { %v456_v55 = vpop.f32.mrb[8].mxu1 }
 0x384   : > { %v834_v56 = vpop.f32.mrb[9].mxu1  ;;  %v463_v57 = vsel %vm175_vm2, %v456_v55, -inf }
 0x385   : > { %464 = vmax.xlane.f32.xlu1 %v463_v57  ;;  %v459_v58 = vpop.f32.mrb[10].mxu1 }
 0x386   : > { %v835_v59 = vpop.f32.mrb[11].mxu1  ;;  %v466_v60 = vsel %vm179_vm3, %v459_v58, -inf }
 0x389   : > { %467 = vmax.xlane.f32.xlu1 %v466_v60 }
 0x38b   : > { %v598_v61 = vpop.f32.mrb[12].mxu1 }
 0x38c   : > { %v846_v62 = vpop.f32.mrb[13].mxu1  ;;  %v605_v63 = vsel %vm175_vm2, %v598_v61, -inf }
 0x38d   : > { %606 = vmax.xlane.f32.xlu0 %v605_v63  ;;  %v601_v1 = vpop.f32.mrb[14].mxu1 }
 0x38e   : > { %v608_v2 = vsel %vm179_vm3, %v601_v1, -inf  ;;  %v847_v3 = vpop.f32.mrb[15].mxu1 }
 0x38f   : > { %609 = vmax.xlane.f32.xlu1 %v608_v2 }
 0x40a   : > { %v323_v4 = vpop.xlane.xlu1 %322 }
 0x40b   : > { %v327_v5 = vsub.f32 %v314_v49, %v323_v4 }
 0x40c   : > { %v326_v6 = vpop.xlane.xlu0 %325 }
 0x40d   : > { %v329_v7 = vmul.f32 1.442695, %v327_v5  ;;  %v328_v8 = vsub.f32 %v317_v52, %v326_v6 }
 0x40f   : > { %883 = vpow2.f32 %v329_v7  ;;  %v331_v9 = vmul.f32 1.442695, %v328_v8 }
 0x411   : > { %885 = vpow2.f32 %v331_v9 }
 0x412   : > { %v465_v10 = vpop.xlane.xlu1 %464 }
 0x413   : > { %v469_v11 = vsub.f32 %v456_v55, %v465_v10 }
 0x415   : > { %v471_v12 = vmul.f32 1.442695, %v469_v11 }
 0x416   : > { %v468_v13 = vpop.xlane.xlu1 %467 }
 0x417   : > { %887 = vpow2.f32 %v471_v12  ;;  %v470_v14 = vsub.f32 %v459_v58, %v468_v13 }
 0x419   : > { %v884_v15 = vpop.eup %883  ;;  %v473_v16 = vmul.f32 1.442695, %v470_v14 }
 0x41a   : > { %v607_v17 = vpop.xlane.xlu0 %606  ;;  %v333_v18 = vsel %vm175_vm2, %v884_v15, 0.0 }
 0x41b   : > { %v886_v19 = vpop.eup %885  ;;  %889 = vpow2.f32 %v473_v16  ;;  %v611_v21 = vsub.f32 %v598_v61, %v607_v17  ;;  %334 = vadd.xlane.f32.xlu0 %v333_v18 }
 0x41c   : > { %v336_v22 = vsel %vm179_vm3, %v886_v19, 0.0  ;;  %v610_v31 = vpop.xlane.xlu1 %609 }
 0x41d   : > { %v613_v24 = vmul.f32 1.442695, %v611_v21  ;;  %337 = vadd.xlane.f32.xlu1 %v336_v22  ;;  %v612_v32 = vsub.f32 %v601_v1, %v610_v31 }
 0x41f   : > { %891 = vpow2.f32 %v613_v24  ;;  %v615_v33 = vmul.f32 1.442695, %v612_v32 }
 0x421   : > { %v888_v25 = vpop.eup %887  ;;  %893 = vpow2.f32 %v615_v33 }
 0x422   : > { %v475_v26 = vsel %vm175_vm2, %v888_v25, 0.0 }
 0x423   : > { %476 = vadd.xlane.f32.xlu0 %v475_v26 }
 0x425   : > { %v890_v27 = vpop.eup %889 }
 0x426   : > { %v478_v28 = vsel %vm179_vm3, %v890_v27, 0.0 }
 0x427   : > { %479 = vadd.xlane.f32.xlu1 %v478_v28 }
 0x429   : > { %v892_v29 = vpop.eup %891 }
 0x42a   : > { %v617_v30 = vsel %vm175_vm2, %v892_v29, 0.0 }
 0x42b   : > { %618 = vadd.xlane.f32.xlu0 %v617_v30  ;;  %v894_v34 = vpop.eup %893 }
 0x42c   : > { %v620_v35 = vsel %vm179_vm3, %v894_v34, 0.0 }
 0x438   : > { %486 = vrot.lane.b32.xlu1 %v970_v20, %s919_s14 }
 0x441   : > { %344 = vrot.lane.b32.xlu0 %v970_v20, %s921_s15 }
 0x45c   : > { %621 = vadd.xlane.f32.xlu1 %v620_v35 }
 0x46d   : > { %628 = vrot.lane.b32.xlu1 %v970_v20, %s924_s18 }
 0x4a8   : > { %v335_v37 = vpop.xlane.xlu0 %334 }
 0x4aa   : > { %v338_v36 = vpop.xlane.xlu1 %337 }
 0x4ab   : > { %895 = vrcp.f32 %v338_v36 }
 0x4ac   : > { %897 = vrcp.f32 %v335_v37 }
 0x4b0   : > { %v477_v38 = vpop.xlane.xlu0 %476 }
 0x4b4   : > { %v480_v39 = vpop.xlane.xlu1 %479 }
 0x4b5   : > { %899 = vrcp.f32 %v480_v39  ;;  %v896_v41 = vpop.eup %895 }
 0x4b6   : > { %901 = vrcp.f32 %v477_v38  ;;  %v898_v42 = vpop.eup %897  ;;  %v342_v43 = vmul.f32 %v896_v41, %v886_v19 }
 0x4b7   : > { %v341_v46 = vmul.f32 %v898_v42, %v884_v15  ;;  %v409_v15 = vld [vmem:[%s1000_s22 + $0x4] sm:$0x1] }
 0x4b8   : > { %v619_v40 = vpop.xlane.xlu0 %618  ;;  %v487_v47 = vpop.permute.xlu1 %486 }
 0x4b9   : > { %v343_v48 = vpack.c.bf16 %v342_v43, %v341_v46  ;;  %v492_v49 = vand.u32 %v487_v47, %v972_v23  ;;  %903 = vrcp.f32 %v619_v40 }
 0x4bc   : > { %v345_v44 = vpop.permute.xlu0 %344 }
 0x4bd   : > { %v350_v45 = vand.u32 %v345_v44, %v972_v23 }
 0x4bf   : > { %825 = vmatpush3.bf16.msra.mxu0 %v350_v45  ;;  %v900_v20 = vpop.eup %899 }
 0x4c0   : > { %836 = vmatprep.subr.bf16.mxu0 %v915_v0  ;;  %v902_v50 = vpop.eup %901  ;;  %v484_v51 = vmul.f32 %v900_v20, %v890_v27 }
 0x4c1   : > { %v483_v52 = vmul.f32 %v902_v50, %v888_v25 }
 0x4c2   : > { %827 = vmatmul.mubr.msk.bf16.vlgmr.msra.gmra.mrb[4].mxu0 %vm175_vm2, %v343_v48 }
 0x4c3   : > { %837 = vmatpush3.bf16.msra.mxu0 %v492_v49  ;;  %838 = vmatprep.mubr.msk.bf16.mxu0 %vm916_vm0, %v915_v0  ;;  %v485_v53 = vpack.c.bf16 %v484_v51, %v483_v52  ;;  %v904_v57 = vpop.eup %903 }
 0x4c4   : > { %848 = vmatprep.subr.bf16.mxu0 %v915_v0  ;;  %v625_v59 = vmul.f32 %v904_v57, %v892_v29 }
 0x4ca   : > { %839 = vmatmul.mubr.msk.bf16.vlgmr.msra.gmra.mrb[8].mxu0 %vm175_vm2, %v485_v53 }
 0x4cb   : > { %850 = vmatprep.mubr.msk.bf16.mxu0 %vm916_vm0, %v915_v0  ;;  %vm691_vm0 = vcmask 516480  }
 0x4e9   : > { %v622_v54 = vpop.xlane.xlu1 %621 }
 0x4ea   : > { %905 = vrcp.f32 %v622_v54 }
 0x4ed   : > { %v629_v55 = vpop.permute.xlu1 %628 }
 0x4ee   : > { %v634_v56 = vand.u32 %v629_v55, %v972_v23 }
 0x4f0   : > { %849 = vmatpush3.bf16.msra.mxu0 %v634_v56 }
 0x4f4   : > { %v906_v58 = vpop.eup %905 }
 0x4f5   : > { %v626_v60 = vmul.f32 %v906_v58, %v894_v34 }
 0x4f7   : > { %v627_v61 = vpack.c.bf16 %v626_v60, %v625_v59 }
 0x4f9   : > { %851 = vmatmul.mubr.msk.bf16.vlgmr.msra.gmra.mrb[12].mxu0 %vm175_vm2, %v627_v61  ;;  %vm692_vm2 = vmand %vm691_vm0, %vm265_vm7 }
 0x595   : > { %v386_v62 = vpop.f32.mrb[4].mxu0 }
 0x596   : > { %v828_v63 = vpop.f32.mrb[5].mxu0  ;;  %v784_v0 = vpack.c.bf16 %v386_v62, %v386_v62 }
 0x597   : > { %v389_v1 = vpop.f32.mrb[6].mxu0 }
 0x598   : > { %v785_v2 = vpack.c.bf16 %v389_v1, %v389_v1  ;;  %v829_v3 = vpop.f32.mrb[7].mxu0 }
 0x59a   : > { %401 = vrot.lane.b32.xlu0 %v785_v2, %s923_s17 }
 0x59d   : > { %v528_v4 = vpop.f32.mrb[8].mxu0 }
 0x59e   : > { %399 = vrot.lane.b32.xlu0 %v784_v0, %s923_s17  ;;  %v840_v23 = vpop.f32.mrb[9].mxu0  ;;  %v786_v8 = vpack.c.bf16 %v528_v4, %v528_v4 }
 0x59f   : > { %v531_v5 = vpop.f32.mrb[10].mxu0 }
 0x5a0   : > { %v787_v6 = vpack.c.bf16 %v531_v5, %v531_v5  ;;  %v841_v7 = vpop.f32.mrb[11].mxu0 }
 0x5a2   : > { %543 = vrot.lane.b32.xlu1 %v787_v6, %s922_s16 }
 0x5a6   : > { %541 = vrot.lane.b32.xlu1 %v786_v8, %s922_s16 }
 0x5cc   : > { %v670_v9 = vpop.f32.mrb[12].mxu0 }
 0x5cd   : > { %v788_v10 = vpack.c.bf16 %v670_v9, %v670_v9  ;;  %v852_v11 = vpop.f32.mrb[13].mxu0 }
 0x5ce   : > { %v673_v12 = vpop.f32.mrb[14].mxu0 }
 0x5cf   : > { %v789_v13 = vpack.c.bf16 %v673_v12, %v673_v12  ;;  %683 = vrot.lane.b32.xlu1 %v788_v10, %s918_s13  ;;  %v853_v14 = vpop.f32.mrb[15].mxu0 }
 0x5d1   : > { %685 = vrot.lane.b32.xlu0 %v789_v13, %s918_s13 }
 0x60c   : > { %v402_v16 = vpop.permute.xlu0 %401 }
 0x60d   : > { %v410_v17 = vsel %vm408_vm11, %v402_v16, %v409_v15 }
 0x60e   : > { %411 = vst [vmem:[%s1000_s22 + $0x4] sm:$0x1] %v410_v17 }
 0x610   : > { %v400_v18 = vpop.permute.xlu0 %399 }
 0x611   : > { %406 = vst.msk [vmem:[%s1000_s22] sm:$0xf] %vm405_vm12, %v400_v18 }
 0x614   : > { %v544_v19 = vpop.permute.xlu1 %543 }
 0x615   : > { %v551_v21 = vld [vmem:[%s1000_s22 + $0x4] sm:$0x1] }
 0x616   : > { %v552_v22 = vsel %vm550_vm14, %v544_v19, %v551_v21 }
 0x617   : > { %553 = vst [vmem:[%s1000_s22 + $0x4] sm:$0x1] %v552_v22 }
 0x618   : > { %v542_v24 = vpop.permute.xlu1 %541 }
 0x619   : > { %548 = vst.msk [vmem:[%s1000_s22] sm:$0xf] %vm547_vm15, %v542_v24 }
 0x61e   : > { %v693_v26 = vld [vmem:[%s1000_s22 + $0x4] sm:$0x1] }
 0x641   : > { %v684_v25 = vpop.permute.xlu1 %683 }
 0x642   : > { %690 = vst.msk [vmem:[%s1000_s22] sm:$0xf] %vm689_vm1, %v684_v25 }
 0x643   : > { %v686_v27 = vpop.permute.xlu0 %685 }
 0x644   : > { %v694_v28 = vsel %vm692_vm2, %v686_v27, %v693_v26 }
 0x645   : > { %695 = vst [vmem:[%s1000_s22 + $0x4] sm:$0x1] %v694_v28 }
 0x646 PF: > { %s11_s6 = sadd.s32 1, %s913_s6  }
 0x647   : > { %p8_p4 = scmp.ge.s32.totalorder %s11_s6, 4  }
 0x649   :  { %10 = sbr.rel (!%p8_p4) target bundleno = 1 (0x1), region = 54 }

// kernel: forward.20
= control target key start
LH: loop header
LB: loop body
LE: loop exit
PB: predicated region body
PF: predicated region fallthrough
CT: control target
= control target key end

     0   :  { %vm34_vm0 = vcmask 523264   ;;  %vm37_vm1 = vcmask 517120   ;;  %v507_v14 = vmov 0.0   ;;  %vm393_vm2 = vcmask 519168   ;;  %s636_s1 = inlined_call_operand.vmem [shape: bf16[64,128], index: 1, kind: input, shape index: {}]   ;;  %s637_s0 = inlined_call_operand.vmem [shape: bf16[18,64], index: 0, kind: input, shape index: {}, may-alias: {0,5}]   ;;  %s638_s3 = inlined_call_operand.vmem [shape: bf16[128,64], index: 3, kind: input, shape index: {}]   ;;  %s639_s2 = inlined_call_operand.vmem [shape: f32[1,128], index: 2, kind: input, shape index: {}]   ;;  %s640_s5 = inlined_call_operand.vmem [shape: bf16[18,64], index: 5, kind: input, shape index: {}, may-alias: {0,5}]   ;;  %s641_s4 = inlined_call_operand.vmem [shape: f32[1,64], index: 4, kind: input, shape index: {}]   ;;  %s642_s6 = inlined_call_operand.vmem [shape: f32[1,64], index: 6, kind: input, shape index: {}]   ;;  %s643_s7 = inlined_call_operand.vmem [shape: f32[1,64], index: 7, kind: input, shape index: {}]   ;;  %s644_s8 = inlined_call_operand.vmem [shape: bf16[18,64], index: 8, kind: output, shape index: {}]  }
   0x1   :  { %v481_v0 = vld [vmem:[%s636_s1] sm:$0xff]   ;;  %v482_v1 = vld [vmem:[%s636_s1 + $0x8] sm:$0xff]   ;;  %v483_v2 = vld [vmem:[%s636_s1 + $0x10] sm:$0xff]   ;;  %38 = vst.msk [vmem:[#allocation2 + $0x10] sm:$0x3] %vm37_vm1, %v507_v14  ;;  %vm396_vm3 = vcmask 516096  }
   0x2   :  { %448 = vmatprep.subr.bf16.mxu0 %v481_v0  ;;  %v485_v3 = vld [vmem:[%s637_s0] sm:$0xff]   ;;  %v484_v4 = vld [vmem:[%s636_s1 + $0x18] sm:$0xff]   ;;  %v486_v5 = vld [vmem:[%s637_s0 + $0x8] ss:$0 sps:$4 sm:$0x11]   ;;  %35 = vst.msk [vmem:[#allocation2] sm:$0xff] %vm34_vm0, %v507_v14 }
   0x3   :  { %449 = vmatpush3.bf16.msra.mxu0 %v481_v0  ;;  %456 = vmatprep.mubr.msk.bf16.mxu0 %vm34_vm0, %v485_v3  ;;  %v487_v6 = vld [vmem:[%s638_s3] sm:$0xff]   ;;  %v488_v7 = vld [vmem:[%s638_s3 + $0x8] sm:$0xff]   ;;  %v489_v8 = vld [vmem:[%s638_s3 + $0x10] sm:$0xff]   ;;  %36 = vst.msk [vmem:[#allocation2 + $0x8] sm:$0xff] %vm34_vm0, %v507_v14 }
   0x4   :  { %450 = vmatprep.subr.bf16.mxu0 %v482_v1  ;;  %460 = vmatprep.subr.bf16.mxu1 %v487_v6  ;;  %v490_v9 = vld [vmem:[%s638_s3 + $0x18] sm:$0xff]   ;;  %v491_v10 = vld [vmem:[%s638_s3 + $0x20] sm:$0xff]   ;;  %v492_v11 = vld [vmem:[%s638_s3 + $0x28] sm:$0xff]  }
   0x5   :  { %461 = vmatpush3.bf16.msra.mxu1 %v487_v6  ;;  %v493_v12 = vld [vmem:[%s638_s3 + $0x30] sm:$0xff]   ;;  %v494_v13 = vld [vmem:[%s638_s3 + $0x38] sm:$0xff]   ;;  %v402_v15 = vld [vmem:[%s639_s2] ss:$0 sm:$0xff] }
   0x6   :  { %462 = vmatprep.subr.bf16.mxu1 %v488_v7  ;;  %v313_v62 = vld [vmem:[%s640_s5 + $0x8] sm:$0x1]  ;;  %v429_v63 = vld [vmem:[%s640_s5] sm:$0xff]  }
   0x7   :  { %451 = vmatpush3.bf16.msra.mxu0 %v482_v1  ;;  %v419_v0 = vld [vmem:[%s641_s4] ss:$0 sm:$0xff]  ;;  %v316_v1 = vunpack.c.l.bf16 %v313_v62  ;;  %v430_v3 = vunpack.c.l.bf16 %v429_v63 }
   0x8   :  { %452 = vmatprep.subr.bf16.mxu0 %v483_v2  ;;  %v173_v52 = vld [vmem:[#allocation2 + $0x10] sm:$0x3] }
   0x9   :  { %463 = vmatpush3.bf16.msra.mxu1 %v488_v7  ;;  %v171_v53 = vld [vmem:[#allocation2] sm:$0xff]  ;;  %v431_v7 = vunpack.c.h.bf16 %v429_v63 }
   0xa   :  { %464 = vmatprep.subr.bf16.mxu1 %v489_v8  ;;  %v172_v57 = vld [vmem:[#allocation2 + $0x8] sm:$0xff] }
   0xb   :  { %453 = vmatpush3.bf16.msra.mxu0 %v483_v2 }
   0xc   :  { %454 = vmatprep.subr.bf16.mxu0 %v484_v4 }
   0xd   :  { %465 = vmatpush3.bf16.msra.mxu1 %v489_v8 }
   0xe   :  { %466 = vmatprep.subr.bf16.mxu1 %v490_v9 }
   0xf   :  { %455 = vmatpush3.bf16.msra.mxu0 %v484_v4 }
  0x11   :  { %467 = vmatpush3.bf16.msra.mxu1 %v490_v9 }
  0x12   :  { %457 = vmatmul.mubr.msk.bf16.vlgmr.msra.gmra.mrb[0].mxu0 %vm34_vm0, %v486_v5  ;;  %468 = vmatprep.subr.bf16.mxu1 %v491_v10 }
  0x15   :  { %469 = vmatpush3.bf16.msra.mxu1 %v491_v10 }
  0x16   :  { %470 = vmatprep.subr.bf16.mxu1 %v492_v11 }
  0x19   :  { %471 = vmatpush3.bf16.msra.mxu1 %v492_v11 }
  0x1a   :  { %472 = vmatprep.subr.bf16.mxu1 %v493_v12 }
  0x1d   :  { %473 = vmatpush3.bf16.msra.mxu1 %v493_v12 }
  0x1e   :  { %474 = vmatprep.subr.bf16.mxu1 %v494_v13 }
  0x21   :  { %475 = vmatpush3.bf16.msra.mxu1 %v494_v13 }
  0xe5   :  { %v458_v16 = vpop.f32.mrb[0].mxu0 }
  0xe6   :  { %v139_v17 = vadd.f32 %v458_v16, %v402_v15  ;;  %v130_v18 = vpop.f32.mrb[1].mxu0 }
  0xe7   :  { %v131_v19 = vadd.f32 %v402_v15, %v130_v18  ;;  %v459_v20 = vpop.f32.mrb[2].mxu0 }
  0xe8   :  { %v146_v21 = vmul.f32 %v139_v17, %v139_v17  ;;  %v133_v22 = vpop.f32.mrb[3].mxu0 }
  0xe9   :  { %v144_v23 = vmul.f32 %v131_v19, %v131_v19  ;;  %v134_v24 = vadd.f32 %v402_v15, %v133_v22 }
  0xea   :  { %v149_v25 = vmul.f32 %v146_v21, %v139_v17 }
  0xeb   :  { %v147_v26 = vmul.f32 %v144_v23, %v131_v19  ;;  %v145_v27 = vmul.f32 %v134_v24, %v134_v24 }
  0xec   :  { %v152_v28 = vmul.f32 0.044715, %v149_v25 }
  0xed   :  { %v150_v29 = vmul.f32 0.044715, %v147_v26  ;;  %v148_v30 = vmul.f32 %v145_v27, %v134_v24 }
  0xee   :  { %v155_v31 = vadd.f32 %v152_v28, %v139_v17 }
  0xef   :  { %v151_v32 = vmul.f32 0.044715, %v148_v30  ;;  %v153_v33 = vadd.f32 %v150_v29, %v131_v19 }
  0xf0   :  { %v158_v34 = vmul.f32 0.7978846, %v155_v31 }
  0xf1   :  { %v154_v35 = vadd.f32 %v151_v32, %v134_v24  ;;  %v156_v36 = vmul.f32 0.7978846, %v153_v33 }
  0xf2   :  { %495 = vtanh.f32 %v158_v34 }
  0xf3   :  { %v157_v37 = vmul.f32 0.7978846, %v154_v35  ;;  %497 = vtanh.f32 %v156_v36 }
  0xf5   :  { %499 = vtanh.f32 %v157_v37 }
  0xfc   :  { %v496_v38 = vpop.eup %495 }
  0xfd   :  { %v498_v39 = vpop.eup %497  ;;  %v164_v40 = vadd.f32 1.0, %v496_v38 }
  0xfe   :  { %v162_v41 = vadd.f32 1.0, %v498_v39 }
  0xff   :  { %v500_v42 = vpop.eup %499  ;;  %v167_v43 = vmul.f32 0.5, %v164_v40 }
 0x100   :  { %v163_v44 = vadd.f32 1.0, %v500_v42  ;;  %v165_v45 = vmul.f32 0.5, %v162_v41  ;;  %v420_v41 = vld [vmem:[%s642_s6] ss:$0 sm:$0xff] }
 0x101   :  { %v170_v47 = vmul.f32 %v167_v43, %v139_v17  ;;  %v421_v43 = vld [vmem:[%s643_s7] ss:$0 sm:$0xff] }
 0x102   :  { %v166_v46 = vmul.f32 0.5, %v163_v44  ;;  %v168_v48 = vmul.f32 %v165_v45, %v131_v19 }
 0x103   :  { %v175_v51 = vpack.c.bf16 %v170_v47, %v170_v47 }
 0x104   :  { %v169_v49 = vmul.f32 %v166_v46, %v134_v24 }
 0x106   :  { %v174_v50 = vpack.c.bf16 %v169_v49, %v168_v48 }
 0x108   :  { %476 = vmatprep.mubr.bf16.mxu1 %v174_v50 }
 0x109   :  { %477 = vmatmul.mubr.bf16.vlgmr.msra.gmra.mrb[0].mxu1 %v175_v51 }
 0x1dc   :  { %v478_v54 = vpop.f32.mrb[0].mxu1 }
 0x1dd   :  { %v290_v55 = vadd.f32 %v478_v54, %v173_v52  ;;  %v274_v56 = vpop.f32.mrb[1].mxu1 }
 0x1de   :  { %v288_v58 = vadd.f32 %v274_v56, %v171_v53  ;;  %v479_v59 = vpop.f32.mrb[2].mxu1 }
 0x1df   :  { %294 = vst.msk [vmem:[#allocation2 + $0x10] sm:$0x3] %vm37_vm1, %v290_v55  ;;  %v277_v60 = vpop.f32.mrb[3].mxu1 }
 0x1e0   :  { %291 = vst.msk [vmem:[#allocation2] sm:$0xff] %vm34_vm0, %v288_v58  ;;  %v289_v61 = vadd.f32 %v277_v60, %v172_v57 }
 0x1e2   :  { %292 = vst.msk [vmem:[#allocation2 + $0x8] sm:$0xff] %vm34_vm0, %v289_v61 }
 0x1e6   :  { %v300_v2 = vld [vmem:[#allocation2 + $0x10] sm:$0x3] }
 0x1e7   :  { %v310_v4 = vadd.f32 %v419_v0, %v300_v2  ;;  %v298_v5 = vld [vmem:[#allocation2] sm:$0xff] }
 0x1e8   :  { %v308_v6 = vadd.f32 %v419_v0, %v298_v5 }
 0x1e9   :  { %v319_v8 = vadd.f32 %v316_v1, %v310_v4  ;;  %v299_v9 = vld [vmem:[#allocation2 + $0x8] sm:$0xff] }
 0x1ea   :  { %v317_v10 = vadd.f32 %v430_v3, %v308_v6  ;;  %v309_v11 = vadd.f32 %v419_v0, %v299_v9 }
 0x1eb   :  { %v326_v12 = vsel %vm37_vm1, %v319_v8, 0.0 }
 0x1ec   :  { %327 = vadd.xlane.f32.xlu1 %v326_v12  ;;  %v320_v13 = vsel %vm34_vm0, %v317_v10, 0.0  ;;  %v318_v14 = vadd.f32 %v431_v7, %v309_v11 }
 0x1ed   :  { %321 = vadd.xlane.f32.xlu0 %v320_v13 }
 0x1ee   :  { %v323_v15 = vsel %vm34_vm0, %v318_v14, 0.0 }
 0x1f1   :  { %324 = vadd.xlane.f32.xlu0 %v323_v15 }
 0x279   :  { %v328_v16 = vpop.xlane.xlu1 %327 }
 0x27a   :  { %v332_v17 = vmul.f32 0.015625, %v328_v16  ;;  %v322_v18 = vpop.xlane.xlu0 %321 }
 0x27b   :  { %v330_v19 = vmul.f32 0.015625, %v322_v18 }
 0x27c   :  { %v335_v20 = vsub.f32 %v319_v8, %v332_v17 }
 0x27d   :  { %v333_v21 = vsub.f32 %v317_v10, %v330_v19 }
 0x27e   :  { %v325_v22 = vpop.xlane.xlu0 %324  ;;  %v338_v27 = vmul.f32 %v335_v20, %v335_v20 }
 0x27f   :  { %v331_v23 = vmul.f32 0.015625, %v325_v22  ;;  %v336_v24 = vmul.f32 %v333_v21, %v333_v21 }
 0x280   :  { %v345_v29 = vsel %vm37_vm1, %v338_v27, 0.0 }
 0x281   :  { %v334_v25 = vsub.f32 %v318_v14, %v331_v23  ;;  %v339_v26 = vsel %vm34_vm0, %v336_v24, 0.0 }
 0x282   :  { %340 = vadd.xlane.f32.xlu1 %v339_v26 }
 0x283   :  { %v337_v28 = vmul.f32 %v334_v25, %v334_v25 }
 0x285   :  { %v342_v30 = vsel %vm34_vm0, %v337_v28, 0.0 }
 0x286   :  { %346 = vadd.xlane.f32.xlu1 %v345_v29  ;;  %343 = vadd.xlane.f32.xlu0 %v342_v30 }
 0x30f   :  { %v341_v31 = vpop.xlane.xlu1 %340 }
 0x310   :  { %v348_v32 = vmul.f32 0.015625, %v341_v31 }
 0x312   :  { %v351_v33 = vadd.f32 1e-12, %v348_v32 }
 0x313   :  { %v347_v34 = vpop.xlane.xlu1 %346  ;;  %v344_v35 = vpop.xlane.xlu0 %343 }
 0x314   :  { %501 = vrsqrt.f32 %v351_v33  ;;  %v350_v36 = vmul.f32 0.015625, %v347_v34  ;;  %v349_v37 = vmul.f32 0.015625, %v344_v35 }
 0x316   :  { %v353_v38 = vadd.f32 1e-12, %v350_v36  ;;  %v352_v39 = vadd.f32 1e-12, %v349_v37 }
 0x318   :  { %503 = vrsqrt.f32 %v353_v38 }
 0x319   :  { %505 = vrsqrt.f32 %v352_v39 }
 0x31e   :  { %v502_v40 = vpop.eup %501 }
 0x31f   :  { %v357_v42 = vmul.f32 %v502_v40, %v333_v21 }
 0x321   :  { %v367_v44 = vmul.f32 %v420_v41, %v357_v42 }
 0x322   :  { %v504_v45 = vpop.eup %503 }
 0x323   :  { %v506_v46 = vpop.eup %505  ;;  %v377_v47 = vadd.f32 %v421_v43, %v367_v44  ;;  %v359_v48 = vmul.f32 %v504_v45, %v335_v20 }
 0x324   :  { %v358_v49 = vmul.f32 %v506_v46, %v334_v25 }
 0x325   :  { %v425_v50 = vpack.c.bf16 %v377_v47, %v377_v47  ;;  %v369_v51 = vmul.f32 %v420_v41, %v359_v48 }
 0x326   :  { %v368_v52 = vmul.f32 %v420_v41, %v358_v49 }
 0x327   :  { %394 = vst.msk [vmem:[%s644_s8] sm:$0xf] %vm393_vm2, %v425_v50  ;;  %v379_v53 = vadd.f32 %v421_v43, %v369_v51 }
 0x328   :  { %v378_v54 = vadd.f32 %v421_v43, %v368_v52 }
 0x329   :  { %v427_v55 = vpack.c.bf16 %v379_v53, %v379_v53 }
 0x32a   :  { %v426_v56 = vpack.c.bf16 %v378_v54, %v378_v54 }
 0x32b   :  { %397 = vst.msk [vmem:[%s644_s8 + $0x8] sm:$0x1] %vm396_vm3, %v427_v55 }
 0x32c   :  { %395 = vst.msk [vmem:[%s644_s8 + $0x4] sm:$0xf] %vm393_vm2, %v426_v56 }

// kernel: forward.25
= control target key start
LH: loop header
LB: loop body
LE: loop exit
PB: predicated region body
PF: predicated region fallthrough
CT: control target
= control target key end

     0   :  { %v182_v1 = vmov 0.0   ;;  %vm183_vm0 = vmmov 0   ;;  %s235_s0 = inlined_call_operand.vmem [shape: bf16[2,64], index: 0, kind: input, shape index: {}]   ;;  %s236_s1 = inlined_call_operand.vmem [shape: bf16[64,128], index: 1, kind: input, shape index: {}]   ;;  %s237_s2 = inlined_call_operand.vmem [shape: f32[1,128], index: 2, kind: input, shape index: {}]   ;;  %s238_s3 = inlined_call_operand.hbm [shape: f32[2,128], index: 3, kind: output, shape index: {}]  }
   0x1   :  { %v154_v0 = vld [vmem:[%s236_s1] sm:$0xff]   ;;  %139 = vmatprep.subr.bf16.mxu0 %v182_v1  ;;  %20 = vst [vmem:[#allocation2] sm:$0x3] %v182_v1  ;;  %v155_v2 = vld [vmem:[%s236_s1 + $0x8] sm:$0xff]   ;;  %147 = vmatprep.mubr.msk.bf16.mxu0 %vm183_vm0, %v182_v1 }
   0x2   :  { %140 = vmatpush3.bf16.msra.mxu0 %v154_v0 }
   0x3   :  { %141 = vmatprep.subr.bf16.mxu0 %v182_v1 }
   0x4   :  { %8 = vsyncpa [#allocation4], 0  ;;  %v156_v3 = vld [vmem:[%s236_s1 + $0x10] sm:$0xff]   ;;  %v157_v4 = vld [vmem:[%s236_s1 + $0x18] sm:$0xff]   ;;  %vm55_vm1 = vcmask 523264   ;;  %s184_s1 = smov [#allocation3]  }
   0x5   :  { %v22_v5 = vld [vmem:[%s235_s0] sm:$0x1]  ;;  %s120_s24 = sshll.u32 %s184_s1, 4  ;;  %s121_s24 = int_to_ptr.vmem [resolvable:$true] %s120_s24 }
   0x6   :  { %142 = vmatpush3.bf16.msra.mxu0 %v155_v2  ;;  %v133_v12 = vld [vmem:[%s237_s2] ss:$0 sm:$0xff]  ;;  %s158_s0 = scalar_lea.vmem %s121_s24, 32  ;;  %p163_p1 = scmp.lt.s32.totalorder %s121_s24, %s121_s24 }
   0x7   :  { %143 = vmatprep.subr.bf16.mxu0 %v182_v1  ;;  %p159_p0 = scmp.ne.s32.totalorder %s121_s24, %s158_s0  ;;  %p164_p2 = scmp.lt.s32.totalorder %s158_s0, %s158_s0 }
   0x8   :  { %v21_v6 = vld [vmem:[#allocation2] sm:$0x3] }
   0x9   :  { %p165_p3 = por %p164_p2, %p163_p1 }
   0xa   :  { %144 = vmatpush3.bf16.msra.mxu0 %v156_v3 }
   0xb   :  { %145 = vmatprep.subr.bf16.mxu0 %v182_v1  ;;  %p166_p4 = pnand %p165_p3, %p159_p0 }
   0xe   :  { %146 = vmatpush3.bf16.msra.mxu0 %v157_v4 }
  0x11   :  { %148 = vmatmul.mubr.msk.bf16.vlgmr.msra.gmra.mrb[0].mxu0 %vm55_vm1, %v22_v5 }
  0xe4   :  { %v93_v7 = vpop.f32.mrb[0].mxu0 }
  0xe5   :  { %v99_v8 = vadd.f32 %v93_v7, %v21_v6  ;;  %v149_v9 = vpop.f32.mrb[1].mxu0 }
  0xe6   :  { %v96_v10 = vpop.f32.mrb[2].mxu0 }
  0xe7   :  { %100 = vst [vmem:[#allocation2] sm:$0x3] %v99_v8  ;;  %v150_v11 = vpop.f32.mrb[3].mxu0 }
  0xee   :  { %v104_v13 = vld [vmem:[#allocation2] sm:$0x3] }
  0xef   :  { %v112_v14 = vadd.f32 %v133_v12, %v104_v13 }
  0xf1   :  { %113 = vst [vmem:[#allocation3] sm:$0x3] %v112_v14 }
  0xf2   :  { %169 = shalt.err (!%p166_p4)
}
  0xf3   :  { %s170_s27 = scalar_lea.hbm %s238_s3, 32 }
  0xf4   :  { %p171_p5 = scmp.ne.s32.totalorder %s238_s3, %s170_s27  ;;  %p174_p6 = scmp.lt.u32.totalorder %s170_s27, %s238_s3 }
  0xf6   :  { %p176_p7 = pnand %p174_p6, %p171_p5 }
  0xf8   :  { %179 = shalt.err (!%p176_p7)
}
  0xf9   :  { %123 = dma.vmem_to_hbm [thread:$0]  %s121_s24, 32, %s238_s3, [#allocation4]  }
  0xfa   :  { %180 = dma.done.wait [#allocation4], 32  }
  0xfb   :  { %181 = vsyncadd [#allocation4], 4294967264 }
  0xfc   :  { %127 = vsyncpa [#allocation4], 1 }

</bundles_post_ra>
